<compile_context>
chip_gen: v7x
topology: tpu7x:2x2x1
jax: 0.10.0
libtpu: 0.0.40
codegen_flags: <defaults>
</compile_context>

<pallas_src>
import functools

import jax
import jax.numpy as jnp
from jax.experimental import pallas as pl
from jax.experimental.pallas import tpu as pltpu


def _round_up(x, m):
    return ((x + m - 1) // m) * m


def _choose_tiles(n, tm_max=256, tk_max=1024, max_pad_frac=0.10):
    """Pick (row tile, reduction tile, padded node count).

    Prefers the largest reduction tile (fewer grid steps -> less per-step
    overhead) whose padding keeps the N^2 waste below ~max_pad_frac.
    """
    n128 = _round_up(n, 128)
    if n128 <= tk_max:
        tk = n128
    else:
        tk = 128
        for cand in (1024, 512, 256):
            if cand <= tk_max and _round_up(n, cand) <= (1.0 + max_pad_frac) * n128:
                tk = cand
                break
    n_pad = _round_up(n, tk)
    tm = tm_max if tk % tm_max == 0 else 128   # tm always divides tk (and n_pad)
    return tm, tk, n_pad


# --------------------------------------------------------------------------
# Kernel bodies
# --------------------------------------------------------------------------

def _agg_transform_kernel(adj_ref, x_ref, w_ref, scale_ref, shift_ref, o_ref,
                          acc_ref, *, apply_relu):
    """Fused layer (aggregate-first): acc = Â@X (K-tiled), then (acc@W)*s+t.

    grid = (n_pad // tm, n_pad // tk)
      adj_ref:   (tm, tk)        bf16 tile of Â
      x_ref:     (tk, Cin)       bf16 tile of node features
      w_ref:     (Cin, Cout)     f32 weight (lane-padded)
      scale_ref: (1, Cout)       f32 folded BN scale (ones for last layer)
      shift_ref: (1, Cout)       f32 folded BN shift + conv bias
      o_ref:     (tm, Cout)      output tile
      acc_ref:   (tm, Cin)       f32 accumulator scratch
    """
    k = pl.program_id(1)

    @pl.when(k == 0)
    def _():
        acc_ref[...] = jnp.zeros_like(acc_ref)

    # Neighborhood aggregation on the MXU (f32 accumulate).
    acc_ref[...] += jnp.dot(adj_ref[...], x_ref[...],
                            preferred_element_type=jnp.float32)

    @pl.when(k == pl.num_programs(1) - 1)
    def _():
        # Feature transform once per row tile: h = (Â X) W
        h = jnp.dot(acc_ref[...], w_ref[...],
                    preferred_element_type=jnp.float32)
        # Eval-mode BatchNorm1d with conv bias folded in.
        h = h * scale_ref[...] + shift_ref[...]
        if apply_relu:
            h = jnp.maximum(h, 0.0)
        o_ref[...] = h.astype(o_ref.dtype)


def _transform_kernel(x_ref, w_ref, o_ref):
    """Feature transform only: o = X_tile @ W  (bf16 in, f32 acc, bf16 out)."""
    o_ref[...] = jnp.dot(x_ref[...], w_ref[...],
                         preferred_element_type=jnp.float32).astype(o_ref.dtype)


def _aggregate_kernel(adj_ref, h_ref, scale_ref, shift_ref, o_ref, acc_ref, *,
                      apply_relu):
    """Aggregation only (transform-first path): acc = Â@H, epilogue s/t/relu."""
    k = pl.program_id(1)

    @pl.when(k == 0)
    def _():
        acc_ref[...] = jnp.zeros_like(acc_ref)

    acc_ref[...] += jnp.dot(adj_ref[...], h_ref[...],
                            preferred_element_type=jnp.float32)

    @pl.when(k == pl.num_programs(1) - 1)
    def _():
        out = acc_ref[...] * scale_ref[...] + shift_ref[...]
        if apply_relu:
            out = jnp.maximum(out, 0.0)
        o_ref[...] = out.astype(o_ref.dtype)


# --------------------------------------------------------------------------
# pallas_call wrappers
# --------------------------------------------------------------------------

_VMEM_LIMIT = 32 * 1024 * 1024


def gcn_layer_fused(adj, x, w, scale, shift, *, apply_relu, out_dtype, tm, tk):
    """One GCN layer (aggregate-first order).  adj: [Np,Np] bf16."""
    n_pad = adj.shape[0]
    c_in = x.shape[1]
    c_out = w.shape[1]
    kernel = functools.partial(_agg_transform_kernel, apply_relu=apply_relu)
    return pl.pallas_call(
        kernel,
        out_shape=jax.ShapeDtypeStruct((n_pad, c_out), out_dtype),
        grid_spec=pltpu.PrefetchScalarGridSpec(
            num_scalar_prefetch=0,
            grid=(n_pad // tm, n_pad // tk),
            in_specs=[
                pl.BlockSpec((tm, tk), lambda i, k: (i, k)),       # Â tile
                pl.BlockSpec((tk, c_in), lambda i, k: (k, 0)),     # X tile
                pl.BlockSpec((c_in, c_out), lambda i, k: (0, 0)),  # W (resident)
                pl.BlockSpec((1, c_out), lambda i, k: (0, 0)),     # BN scale
                pl.BlockSpec((1, c_out), lambda i, k: (0, 0)),     # BN shift
            ],
            out_specs=pl.BlockSpec((tm, c_out), lambda i, k: (i, 0)),
            scratch_shapes=[pltpu.VMEM((tm, c_in), jnp.float32)],
        ),
        compiler_params=pltpu.CompilerParams(
            dimension_semantics=("parallel", "arbitrary"),
            vmem_limit_bytes=_VMEM_LIMIT,
        ),
    )(adj, x, w, scale, shift)


def feature_transform(x, w_bf16, *, tm):
    """H = X @ W in bf16 (f32 accumulate).  x: [Np,Cin] -> [Np,Cout]."""
    n_pad, c_in = x.shape
    c_out = w_bf16.shape[1]
    return pl.pallas_call(
        _transform_kernel,
        out_shape=jax.ShapeDtypeStruct((n_pad, c_out), jnp.bfloat16),
        grid_spec=pltpu.PrefetchScalarGridSpec(
            num_scalar_prefetch=0,
            grid=(n_pad // tm,),
            in_specs=[
                pl.BlockSpec((tm, c_in), lambda i: (i, 0)),
                pl.BlockSpec((c_in, c_out), lambda i: (0, 0)),
            ],
            out_specs=pl.BlockSpec((tm, c_out), lambda i: (i, 0)),
        ),
        compiler_params=pltpu.CompilerParams(
            dimension_semantics=("parallel",),
            vmem_limit_bytes=_VMEM_LIMIT,
        ),
    )(x, w_bf16)


def aggregate(adj, h, scale, shift, *, apply_relu, out_dtype, tm, tk):
    """O = Â @ H with fused scale/shift (+ReLU) epilogue."""
    n_pad = adj.shape[0]
    c = h.shape[1]
    kernel = functools.partial(_aggregate_kernel, apply_relu=apply_relu)
    return pl.pallas_call(
        kernel,
        out_shape=jax.ShapeDtypeStruct((n_pad, c), out_dtype),
        grid_spec=pltpu.PrefetchScalarGridSpec(
            num_scalar_prefetch=0,
            grid=(n_pad // tm, n_pad // tk),
            in_specs=[
                pl.BlockSpec((tm, tk), lambda i, k: (i, k)),   # Â tile
                pl.BlockSpec((tk, c), lambda i, k: (k, 0)),    # H tile
                pl.BlockSpec((1, c), lambda i, k: (0, 0)),     # BN scale
                pl.BlockSpec((1, c), lambda i, k: (0, 0)),     # BN shift
            ],
            out_specs=pl.BlockSpec((tm, c), lambda i, k: (i, 0)),
            scratch_shapes=[pltpu.VMEM((tm, c), jnp.float32)],
        ),
        compiler_params=pltpu.CompilerParams(
            dimension_semantics=("parallel", "arbitrary"),
            vmem_limit_bytes=_VMEM_LIMIT,
        ),
    )(adj, h, scale, shift)


# --------------------------------------------------------------------------
# Host-side parameter prep & full forward
# --------------------------------------------------------------------------

def _pad_layer_params(p):
    """Zero-pad W to 128-lane multiples; fold conv bias into the BN shift."""
    ci, co = p["w"].shape
    ci_p, co_p = _round_up(ci, 128), _round_up(co, 128)
    w = jnp.zeros((ci_p, co_p), jnp.float32).at[:ci, :co].set(p["w"])
    scale = jnp.ones((1, co_p), jnp.float32).at[0, :co].set(p["scale"])
    shift_fold = p["b"] * p["scale"] + p["shift"]
    shift = jnp.zeros((1, co_p), jnp.float32).at[0, :co].set(shift_fold)
    return w, scale, shift


def gnn_forward(x, adj, raw_params, *, tm_max=256, tk_max=1024):
    """Full GNN forward: every layer but the last is conv + BN + ReLU."""
    n, c_in = x.shape
    n_layers = len(raw_params)
    tm, tk, n_pad = _choose_tiles(n, tm_max, tk_max)

    # Zero-padded nodes have zero adjacency rows/cols and zero features, so
    # they stay inert through every layer and are sliced off at the end.
    adj_p = jnp.zeros((n_pad, n_pad), jnp.bfloat16).at[:n, :n].set(
        adj.astype(jnp.bfloat16))
    c_in_pad = _round_up(c_in, 128)
    h = jnp.zeros((n_pad, c_in_pad), jnp.bfloat16).at[:n, :c_in].set(
        x.astype(jnp.bfloat16))

    for i, p in enumerate(raw_params):
        last = i == n_layers - 1
        w, scale, shift = _pad_layer_params(p)
        ci_p, co_p = w.shape
        out_dtype = jnp.float32 if last else jnp.bfloat16
        if co_p < ci_p:
            # Transform-first: aggregate over the narrower (output) width.
            hw = feature_transform(h, w.astype(jnp.bfloat16), tm=tm)
            h = aggregate(adj_p, hw, scale, shift, apply_relu=not last,
                          out_dtype=out_dtype, tm=tm, tk=tk)
        else:
            # Aggregate-first: single fused kernel.
            h = gcn_layer_fused(adj_p, h, w, scale, shift, apply_relu=not last,
                                out_dtype=out_dtype, tm=tm, tk=tk)

    c_out = raw_params[-1]["w"].shape[1]
    return h[:n, :c_out]


def gnn_reference(x, adj, raw_params):
    """Pure-JAX reference of the same eval-mode forward (f32 throughout)."""
    h = x
    n_layers = len(raw_params)
    for i, p in enumerate(raw_params):
        h = adj @ (h @ p["w"]) + p["b"]
        if i != n_layers - 1:
            h = h * p["scale"] + p["shift"]
            h = jnp.maximum(h, 0.0)
    return h


def make_params(key, in_channels, hidden_channels, out_channels, num_layers):
    dims_in = [in_channels] + [hidden_channels] * (num_layers - 1)
    dims_out = [hidden_channels] * (num_layers - 1) + [out_channels]
    params = []
    for i, (ci, co) in enumerate(zip(dims_in, dims_out)):
        key, kw, kg, kb, km, kv = jax.random.split(key, 6)
        lim = (6.0 / (ci + co)) ** 0.5
        w = jax.random.uniform(kw, (ci, co), jnp.float32, -lim, lim)
        b = jnp.zeros((co,), jnp.float32)
        if i != num_layers - 1:
            gamma = 1.0 + 0.1 * jax.random.normal(kg, (co,), jnp.float32)
            beta = 0.1 * jax.random.normal(kb, (co,), jnp.float32)
            rmean = 0.1 * jax.random.normal(km, (co,), jnp.float32)
            rvar = jnp.abs(1.0 + 0.1 * jax.random.normal(kv, (co,), jnp.float32))
            scale = gamma / jnp.sqrt(rvar + 1e-5)      # eval-mode BN folded
            shift = beta - rmean * scale
        else:
            scale = jnp.ones((co,), jnp.float32)
            shift = jnp.zeros((co,), jnp.float32)
        params.append({"w": w, "b": b, "scale": scale, "shift": shift})
    return params


def make_normalized_adj(key, n):
    """Dense symmetric normalized adjacency: D^-1/2 (A + I) D^-1/2."""
    a = (jax.random.uniform(key, (n, n)) < 0.05).astype(jnp.float32)
    a = jnp.maximum(a, a.T)                                 # symmetrize
    a = jnp.maximum(a, jnp.eye(n, dtype=jnp.float32))       # self loops
    deg = a.sum(axis=1)
    d_inv_sqrt = 1.0 / jnp.sqrt(deg)
    return a * d_inv_sqrt[:, None] * d_inv_sqrt[None, :]


if __name__ == "__main__":
    key = jax.random.PRNGKey(0)
    k_adj, k_x, k_p = jax.random.split(key, 3)

    # Small shapes consistent with the module's forward. N is deliberately not
    # a multiple of 128 (exercises padding); hidden > 128 makes the last layer
    # take the transform-first path and earlier layers the fused path.
    N = 200
    in_channels = 16
    hidden_channels = 160
    out_channels = 8
    num_layers = 3

    adj = make_normalized_adj(k_adj, N)                        # [N, N]
    x = jax.random.normal(k_x, (N, in_channels), jnp.float32)  # [N, Cin]
    params = make_params(k_p, in_channels, hidden_channels,
                         out_channels, num_layers)

    fwd = jax.jit(gnn_forward)
    out = fwd(x, adj, params)
    jax.block_until_ready(out)

    assert out.shape == (N, out_channels)
    assert bool(jnp.all(jnp.isfinite(out)))
    ref = gnn_reference(x, adj, params)
    # bf16 adjacency / activation stream vs f32 reference: loose tolerance.
    assert bool(jnp.allclose(out, ref, atol=5e-2, rtol=5e-2))
    print("KERNEL_OK")
</pallas_src>

<mosaic_0001>
module attributes {stable_mosaic.version = 11 : i64} {
  func.func @_agg_transform_kernel(%arg0: i32, %arg1: i32, %arg2: memref<256x256xbf16, #tpu.memory_space<vmem>>, %arg3: memref<256x128xbf16, #tpu.memory_space<vmem>>, %arg4: memref<128x256xf32, #tpu.memory_space<vmem>>, %arg5: memref<1x256xf32, #tpu.memory_space<vmem>>, %arg6: memref<1x256xf32, #tpu.memory_space<vmem>>, %arg7: memref<256x256xbf16, #tpu.memory_space<vmem>>, %arg8: memref<256x128xf32, #tpu.memory_space<vmem>>) attributes {dimension_semantics = [#tpu.dimension_semantics<parallel>, #tpu.dimension_semantics<arbitrary>], iteration_bounds = array<i64: 1, 1>, scalar_prefetch = 0 : i64, scratch_operands = 1 : i64, tpu.core_type = #tpu.core_type<tc>, window_params = [{transform_indices = @transform_0, window_bounds = array<i64: 256, 256>}, {transform_indices = @transform_1, window_bounds = array<i64: 256, 128>}, {pipeline_mode = #tpu.pipeline_mode<synchronous>, transform_indices = @transform_2, window_bounds = array<i64: 128, 256>}, {pipeline_mode = #tpu.pipeline_mode<synchronous>, transform_indices = @transform_3, window_bounds = array<i64: 1, 256>}, {pipeline_mode = #tpu.pipeline_mode<synchronous>, transform_indices = @transform_4, window_bounds = array<i64: 1, 256>}, {transform_indices = @transform_5, window_bounds = array<i64: 256, 256>}]} {
    %c0_i32 = arith.constant 0 : i32
    %0 = arith.cmpi eq, %arg1, %c0_i32 : i32
    %1 = arith.extui %0 : i1 to i32
    %c0_i32_0 = arith.constant 0 : i32
    %2 = arith.cmpi ne, %1, %c0_i32_0 : i32
    scf.if %2 {
      %cst_10 = arith.constant 0.000000e+00 : f32
      %12 = vector.broadcast %cst_10 : f32 to vector<256x128xf32>
      %c0_11 = arith.constant 0 : index
      %c0_12 = arith.constant 0 : index
      %13 = vector.load %arg8[%c0_11, %c0_12] : memref<256x128xf32, #tpu.memory_space<vmem>>, vector<256x128xf32>
      tpu.vector_store %arg8[%c0_11, %c0_12], %12 {strides = array<i32>} : memref<256x128xf32, #tpu.memory_space<vmem>>, vector<256x128xf32>,
    } else {
    }
    %c0 = arith.constant 0 : index
    %c0_1 = arith.constant 0 : index
    %3 = vector.load %arg8[%c0, %c0_1] : memref<256x128xf32, #tpu.memory_space<vmem>>, vector<256x128xf32>
    %c0_2 = arith.constant 0 : index
    %c0_3 = arith.constant 0 : index
    %4 = vector.load %arg2[%c0_2, %c0_3] : memref<256x256xbf16, #tpu.memory_space<vmem>>, vector<256x256xbf16>
    %c0_4 = arith.constant 0 : index
    %c0_5 = arith.constant 0 : index
    %5 = vector.load %arg3[%c0_4, %c0_5] : memref<256x128xbf16, #tpu.memory_space<vmem>>, vector<256x128xbf16>
    %cst = arith.constant dense<0.000000e+00> : vector<256x128xf32>
    %6 = tpu.matmul %4, %5, %cst {dimension_numbers = #tpu.dot_dimension_numbers<[1], [0], [0], [1], [0, 0, 1, 1], [], []>} : vector<256x256xbf16>, vector<256x128xbf16>, vector<256x128xf32> -> vector<256x128xf32>
    %7 = arith.addf %3, %6 : vector<256x128xf32>
    %c0_6 = arith.constant 0 : index
    %c0_7 = arith.constant 0 : index
    %8 = vector.load %arg8[%c0_6, %c0_7] : memref<256x128xf32, #tpu.memory_space<vmem>>, vector<256x128xf32>
    tpu.vector_store %arg8[%c0_6, %c0_7], %7 {strides = array<i32>} : memref<256x128xf32, #tpu.memory_space<vmem>>, vector<256x128xf32>,
    %c0_i32_8 = arith.constant 0 : i32
    %9 = arith.cmpi eq, %arg1, %c0_i32_8 : i32
    %10 = arith.extui %9 : i1 to i32
    %c0_i32_9 = arith.constant 0 : i32
    %11 = arith.cmpi ne, %10, %c0_i32_9 : i32
    scf.if %11 {
      %c0_10 = arith.constant 0 : index
      %c0_11 = arith.constant 0 : index
      %12 = vector.load %arg8[%c0_10, %c0_11] : memref<256x128xf32, #tpu.memory_space<vmem>>, vector<256x128xf32>
      %c0_12 = arith.constant 0 : index
      %c0_13 = arith.constant 0 : index
      %13 = vector.load %arg4[%c0_12, %c0_13] : memref<128x256xf32, #tpu.memory_space<vmem>>, vector<128x256xf32>
      %cst_14 = arith.constant dense<0.000000e+00> : vector<256x256xf32>
      %14 = tpu.matmul %12, %13, %cst_14 {dimension_numbers = #tpu.dot_dimension_numbers<[1], [0], [0], [1], [0, 0, 1, 1], [], []>} : vector<256x128xf32>, vector<128x256xf32>, vector<256x256xf32> -> vector<256x256xf32>
      %c0_15 = arith.constant 0 : index
      %c0_16 = arith.constant 0 : index
      %15 = vector.load %arg5[%c0_15, %c0_16] : memref<1x256xf32, #tpu.memory_space<vmem>>, vector<1x256xf32>
      %16 = vector.broadcast %15 : vector<1x256xf32> to vector<256x256xf32>
      %17 = arith.mulf %14, %16 : vector<256x256xf32>
      %c0_17 = arith.constant 0 : index
      %c0_18 = arith.constant 0 : index
      %18 = vector.load %arg6[%c0_17, %c0_18] : memref<1x256xf32, #tpu.memory_space<vmem>>, vector<1x256xf32>
      %19 = vector.broadcast %18 : vector<1x256xf32> to vector<256x256xf32>
      %20 = arith.addf %17, %19 : vector<256x256xf32>
      %cst_19 = arith.constant 0.000000e+00 : f32
      %21 = vector.broadcast %cst_19 : f32 to vector<256x256xf32>
      %22 = arith.maximumf %20, %21 : vector<256x256xf32>
      %23 = arith.truncf %22 : vector<256x256xf32> to vector<256x256xbf16>
      %c0_20 = arith.constant 0 : index
      %c0_21 = arith.constant 0 : index
      %24 = vector.load %arg7[%c0_20, %c0_21] : memref<256x256xbf16, #tpu.memory_space<vmem>>, vector<256x256xbf16>
      tpu.vector_store %arg7[%c0_20, %c0_21], %23 {strides = array<i32>} : memref<256x256xbf16, #tpu.memory_space<vmem>>, vector<256x256xbf16>,
    } else {
    }
    return
  }
  func.func @transform_0(%arg0: i32, %arg1: i32) -> (i32, i32) {
    %c0_i32 = arith.constant 0 : i32
    return %arg0, %arg1 : i32, i32
  }
  func.func @transform_1(%arg0: i32, %arg1: i32) -> (i32, i32) {
    %c0_i32 = arith.constant 0 : i32
    %c0_i32_0 = arith.constant 0 : i32
    return %arg1, %c0_i32 : i32, i32
  }
  func.func @transform_2(%arg0: i32, %arg1: i32) -> (i32, i32) {
    %c0_i32 = arith.constant 0 : i32
    %c0_i32_0 = arith.constant 0 : i32
    %c0_i32_1 = arith.constant 0 : i32
    return %c0_i32, %c0_i32_0 : i32, i32
  }
  func.func @transform_3(%arg0: i32, %arg1: i32) -> (i32, i32) {
    %c0_i32 = arith.constant 0 : i32
    %c0_i32_0 = arith.constant 0 : i32
    %c0_i32_1 = arith.constant 0 : i32
    return %c0_i32, %c0_i32_0 : i32, i32
  }
  func.func @transform_4(%arg0: i32, %arg1: i32) -> (i32, i32) {
    %c0_i32 = arith.constant 0 : i32
    %c0_i32_0 = arith.constant 0 : i32
    %c0_i32_1 = arith.constant 0 : i32
    return %c0_i32, %c0_i32_0 : i32, i32
  }
  func.func @transform_5(%arg0: i32, %arg1: i32) -> (i32, i32) {
    %c0_i32 = arith.constant 0 : i32
    %c0_i32_0 = arith.constant 0 : i32
    return %arg0, %c0_i32 : i32, i32
  }
}

module attributes {stable_mosaic.version = 11 : i64} {
  func.func @_agg_transform_kernel(%arg0: i32, %arg1: i32, %arg2: memref<256x256xbf16, #tpu.memory_space<vmem>>, %arg3: memref<256x256xbf16, #tpu.memory_space<vmem>>, %arg4: memref<256x256xf32, #tpu.memory_space<vmem>>, %arg5: memref<1x256xf32, #tpu.memory_space<vmem>>, %arg6: memref<1x256xf32, #tpu.memory_space<vmem>>, %arg7: memref<256x256xbf16, #tpu.memory_space<vmem>>, %arg8: memref<256x256xf32, #tpu.memory_space<vmem>>) attributes {dimension_semantics = [#tpu.dimension_semantics<parallel>, #tpu.dimension_semantics<arbitrary>], iteration_bounds = array<i64: 1, 1>, scalar_prefetch = 0 : i64, scratch_operands = 1 : i64, tpu.core_type = #tpu.core_type<tc>, window_params = [{transform_indices = @transform_0, window_bounds = array<i64: 256, 256>}, {transform_indices = @transform_1, window_bounds = array<i64: 256, 256>}, {pipeline_mode = #tpu.pipeline_mode<synchronous>, transform_indices = @transform_2, window_bounds = array<i64: 256, 256>}, {pipeline_mode = #tpu.pipeline_mode<synchronous>, transform_indices = @transform_3, window_bounds = array<i64: 1, 256>}, {pipeline_mode = #tpu.pipeline_mode<synchronous>, transform_indices = @transform_4, window_bounds = array<i64: 1, 256>}, {transform_indices = @transform_5, window_bounds = array<i64: 256, 256>}]} {
    %c0_i32 = arith.constant 0 : i32
    %0 = arith.cmpi eq, %arg1, %c0_i32 : i32
    %1 = arith.extui %0 : i1 to i32
    %c0_i32_0 = arith.constant 0 : i32
    %2 = arith.cmpi ne, %1, %c0_i32_0 : i32
    scf.if %2 {
      %cst_10 = arith.constant 0.000000e+00 : f32
      %12 = vector.broadcast %cst_10 : f32 to vector<256x256xf32>
      %c0_11 = arith.constant 0 : index
      %c0_12 = arith.constant 0 : index
      %13 = vector.load %arg8[%c0_11, %c0_12] : memref<256x256xf32, #tpu.memory_space<vmem>>, vector<256x256xf32>
      tpu.vector_store %arg8[%c0_11, %c0_12], %12 {strides = array<i32>} : memref<256x256xf32, #tpu.memory_space<vmem>>, vector<256x256xf32>,
    } else {
    }
    %c0 = arith.constant 0 : index
    %c0_1 = arith.constant 0 : index
    %3 = vector.load %arg8[%c0, %c0_1] : memref<256x256xf32, #tpu.memory_space<vmem>>, vector<256x256xf32>
    %c0_2 = arith.constant 0 : index
    %c0_3 = arith.constant 0 : index
    %4 = vector.load %arg2[%c0_2, %c0_3] : memref<256x256xbf16, #tpu.memory_space<vmem>>, vector<256x256xbf16>
    %c0_4 = arith.constant 0 : index
    %c0_5 = arith.constant 0 : index
    %5 = vector.load %arg3[%c0_4, %c0_5] : memref<256x256xbf16, #tpu.memory_space<vmem>>, vector<256x256xbf16>
    %cst = arith.constant dense<0.000000e+00> : vector<256x256xf32>
    %6 = tpu.matmul %4, %5, %cst {dimension_numbers = #tpu.dot_dimension_numbers<[1], [0], [0], [1], [0, 0, 1, 1], [], []>} : vector<256x256xbf16>, vector<256x256xbf16>, vector<256x256xf32> -> vector<256x256xf32>
    %7 = arith.addf %3, %6 : vector<256x256xf32>
    %c0_6 = arith.constant 0 : index
    %c0_7 = arith.constant 0 : index
    %8 = vector.load %arg8[%c0_6, %c0_7] : memref<256x256xf32, #tpu.memory_space<vmem>>, vector<256x256xf32>
    tpu.vector_store %arg8[%c0_6, %c0_7], %7 {strides = array<i32>} : memref<256x256xf32, #tpu.memory_space<vmem>>, vector<256x256xf32>,
    %c0_i32_8 = arith.constant 0 : i32
    %9 = arith.cmpi eq, %arg1, %c0_i32_8 : i32
    %10 = arith.extui %9 : i1 to i32
    %c0_i32_9 = arith.constant 0 : i32
    %11 = arith.cmpi ne, %10, %c0_i32_9 : i32
    scf.if %11 {
      %c0_10 = arith.constant 0 : index
      %c0_11 = arith.constant 0 : index
      %12 = vector.load %arg8[%c0_10, %c0_11] : memref<256x256xf32, #tpu.memory_space<vmem>>, vector<256x256xf32>
      %c0_12 = arith.constant 0 : index
      %c0_13 = arith.constant 0 : index
      %13 = vector.load %arg4[%c0_12, %c0_13] : memref<256x256xf32, #tpu.memory_space<vmem>>, vector<256x256xf32>
      %cst_14 = arith.constant dense<0.000000e+00> : vector<256x256xf32>
      %14 = tpu.matmul %12, %13, %cst_14 {dimension_numbers = #tpu.dot_dimension_numbers<[1], [0], [0], [1], [0, 0, 1, 1], [], []>} : vector<256x256xf32>, vector<256x256xf32>, vector<256x256xf32> -> vector<256x256xf32>
      %c0_15 = arith.constant 0 : index
      %c0_16 = arith.constant 0 : index
      %15 = vector.load %arg5[%c0_15, %c0_16] : memref<1x256xf32, #tpu.memory_space<vmem>>, vector<1x256xf32>
      %16 = vector.broadcast %15 : vector<1x256xf32> to vector<256x256xf32>
      %17 = arith.mulf %14, %16 : vector<256x256xf32>
      %c0_17 = arith.constant 0 : index
      %c0_18 = arith.constant 0 : index
      %18 = vector.load %arg6[%c0_17, %c0_18] : memref<1x256xf32, #tpu.memory_space<vmem>>, vector<1x256xf32>
      %19 = vector.broadcast %18 : vector<1x256xf32> to vector<256x256xf32>
      %20 = arith.addf %17, %19 : vector<256x256xf32>
      %cst_19 = arith.constant 0.000000e+00 : f32
      %21 = vector.broadcast %cst_19 : f32 to vector<256x256xf32>
      %22 = arith.maximumf %20, %21 : vector<256x256xf32>
      %23 = arith.truncf %22 : vector<256x256xf32> to vector<256x256xbf16>
      %c0_20 = arith.constant 0 : index
      %c0_21 = arith.constant 0 : index
      %24 = vector.load %arg7[%c0_20, %c0_21] : memref<256x256xbf16, #tpu.memory_space<vmem>>, vector<256x256xbf16>
      tpu.vector_store %arg7[%c0_20, %c0_21], %23 {strides = array<i32>} : memref<256x256xbf16, #tpu.memory_space<vmem>>, vector<256x256xbf16>,
    } else {
    }
    return
  }
  func.func @transform_0(%arg0: i32, %arg1: i32) -> (i32, i32) {
    %c0_i32 = arith.constant 0 : i32
    return %arg0, %arg1 : i32, i32
  }
  func.func @transform_1(%arg0: i32, %arg1: i32) -> (i32, i32) {
    %c0_i32 = arith.constant 0 : i32
    %c0_i32_0 = arith.constant 0 : i32
    return %arg1, %c0_i32 : i32, i32
  }
  func.func @transform_2(%arg0: i32, %arg1: i32) -> (i32, i32) {
    %c0_i32 = arith.constant 0 : i32
    %c0_i32_0 = arith.constant 0 : i32
    %c0_i32_1 = arith.constant 0 : i32
    return %c0_i32, %c0_i32_0 : i32, i32
  }
  func.func @transform_3(%arg0: i32, %arg1: i32) -> (i32, i32) {
    %c0_i32 = arith.constant 0 : i32
    %c0_i32_0 = arith.constant 0 : i32
    %c0_i32_1 = arith.constant 0 : i32
    return %c0_i32, %c0_i32_0 : i32, i32
  }
  func.func @transform_4(%arg0: i32, %arg1: i32) -> (i32, i32) {
    %c0_i32 = arith.constant 0 : i32
    %c0_i32_0 = arith.constant 0 : i32
    %c0_i32_1 = arith.constant 0 : i32
    return %c0_i32, %c0_i32_0 : i32, i32
  }
  func.func @transform_5(%arg0: i32, %arg1: i32) -> (i32, i32) {
    %c0_i32 = arith.constant 0 : i32
    %c0_i32_0 = arith.constant 0 : i32
    return %arg0, %c0_i32 : i32, i32
  }
}

module attributes {stable_mosaic.version = 11 : i64} {
  func.func @_transform_kernel(%arg0: i32, %arg1: memref<256x256xbf16, #tpu.memory_space<vmem>>, %arg2: memref<256x128xbf16, #tpu.memory_space<vmem>>, %arg3: memref<256x128xbf16, #tpu.memory_space<vmem>>) attributes {dimension_semantics = [#tpu.dimension_semantics<parallel>], iteration_bounds = array<i64: 1>, scalar_prefetch = 0 : i64, scratch_operands = 0 : i64, tpu.core_type = #tpu.core_type<tc>, window_params = [{transform_indices = @transform_0, window_bounds = array<i64: 256, 256>}, {pipeline_mode = #tpu.pipeline_mode<synchronous>, transform_indices = @transform_1, window_bounds = array<i64: 256, 128>}, {transform_indices = @transform_2, window_bounds = array<i64: 256, 128>}]} {
    %c0 = arith.constant 0 : index
    %c0_0 = arith.constant 0 : index
    %0 = vector.load %arg1[%c0, %c0_0] : memref<256x256xbf16, #tpu.memory_space<vmem>>, vector<256x256xbf16>
    %c0_1 = arith.constant 0 : index
    %c0_2 = arith.constant 0 : index
    %1 = vector.load %arg2[%c0_1, %c0_2] : memref<256x128xbf16, #tpu.memory_space<vmem>>, vector<256x128xbf16>
    %cst = arith.constant dense<0.000000e+00> : vector<256x128xf32>
    %2 = tpu.matmul %0, %1, %cst {dimension_numbers = #tpu.dot_dimension_numbers<[1], [0], [0], [1], [0, 0, 1, 1], [], []>} : vector<256x256xbf16>, vector<256x128xbf16>, vector<256x128xf32> -> vector<256x128xf32>
    %3 = arith.truncf %2 : vector<256x128xf32> to vector<256x128xbf16>
    %c0_3 = arith.constant 0 : index
    %c0_4 = arith.constant 0 : index
    %4 = vector.load %arg3[%c0_3, %c0_4] : memref<256x128xbf16, #tpu.memory_space<vmem>>, vector<256x128xbf16>
    tpu.vector_store %arg3[%c0_3, %c0_4], %3 {strides = array<i32>} : memref<256x128xbf16, #tpu.memory_space<vmem>>, vector<256x128xbf16>,
    return
  }
  func.func @transform_0(%arg0: i32) -> (i32, i32) {
    %c0_i32 = arith.constant 0 : i32
    %c0_i32_0 = arith.constant 0 : i32
    return %arg0, %c0_i32 : i32, i32
  }
  func.func @transform_1(%arg0: i32) -> (i32, i32) {
    %c0_i32 = arith.constant 0 : i32
    %c0_i32_0 = arith.constant 0 : i32
    %c0_i32_1 = arith.constant 0 : i32
    return %c0_i32, %c0_i32_0 : i32, i32
  }
  func.func @transform_2(%arg0: i32) -> (i32, i32) {
    %c0_i32 = arith.constant 0 : i32
    %c0_i32_0 = arith.constant 0 : i32
    return %arg0, %c0_i32 : i32, i32
  }
}

module attributes {stable_mosaic.version = 11 : i64} {
  func.func @_aggregate_kernel(%arg0: i32, %arg1: i32, %arg2: memref<256x256xbf16, #tpu.memory_space<vmem>>, %arg3: memref<256x128xbf16, #tpu.memory_space<vmem>>, %arg4: memref<1x128xf32, #tpu.memory_space<vmem>>, %arg5: memref<1x128xf32, #tpu.memory_space<vmem>>, %arg6: memref<256x128xf32, #tpu.memory_space<vmem>>, %arg7: memref<256x128xf32, #tpu.memory_space<vmem>>) attributes {dimension_semantics = [#tpu.dimension_semantics<parallel>, #tpu.dimension_semantics<arbitrary>], iteration_bounds = array<i64: 1, 1>, scalar_prefetch = 0 : i64, scratch_operands = 1 : i64, tpu.core_type = #tpu.core_type<tc>, window_params = [{transform_indices = @transform_0, window_bounds = array<i64: 256, 256>}, {transform_indices = @transform_1, window_bounds = array<i64: 256, 128>}, {pipeline_mode = #tpu.pipeline_mode<synchronous>, transform_indices = @transform_2, window_bounds = array<i64: 1, 128>}, {pipeline_mode = #tpu.pipeline_mode<synchronous>, transform_indices = @transform_3, window_bounds = array<i64: 1, 128>}, {transform_indices = @transform_4, window_bounds = array<i64: 256, 128>}]} {
    %c0_i32 = arith.constant 0 : i32
    %0 = arith.cmpi eq, %arg1, %c0_i32 : i32
    %1 = arith.extui %0 : i1 to i32
    %c0_i32_0 = arith.constant 0 : i32
    %2 = arith.cmpi ne, %1, %c0_i32_0 : i32
    scf.if %2 {
      %cst_10 = arith.constant 0.000000e+00 : f32
      %12 = vector.broadcast %cst_10 : f32 to vector<256x128xf32>
      %c0_11 = arith.constant 0 : index
      %c0_12 = arith.constant 0 : index
      %13 = vector.load %arg7[%c0_11, %c0_12] : memref<256x128xf32, #tpu.memory_space<vmem>>, vector<256x128xf32>
      tpu.vector_store %arg7[%c0_11, %c0_12], %12 {strides = array<i32>} : memref<256x128xf32, #tpu.memory_space<vmem>>, vector<256x128xf32>,
    } else {
    }
    %c0 = arith.constant 0 : index
    %c0_1 = arith.constant 0 : index
    %3 = vector.load %arg7[%c0, %c0_1] : memref<256x128xf32, #tpu.memory_space<vmem>>, vector<256x128xf32>
    %c0_2 = arith.constant 0 : index
    %c0_3 = arith.constant 0 : index
    %4 = vector.load %arg2[%c0_2, %c0_3] : memref<256x256xbf16, #tpu.memory_space<vmem>>, vector<256x256xbf16>
    %c0_4 = arith.constant 0 : index
    %c0_5 = arith.constant 0 : index
    %5 = vector.load %arg3[%c0_4, %c0_5] : memref<256x128xbf16, #tpu.memory_space<vmem>>, vector<256x128xbf16>
    %cst = arith.constant dense<0.000000e+00> : vector<256x128xf32>
    %6 = tpu.matmul %4, %5, %cst {dimension_numbers = #tpu.dot_dimension_numbers<[1], [0], [0], [1], [0, 0, 1, 1], [], []>} : vector<256x256xbf16>, vector<256x128xbf16>, vector<256x128xf32> -> vector<256x128xf32>
    %7 = arith.addf %3, %6 : vector<256x128xf32>
    %c0_6 = arith.constant 0 : index
    %c0_7 = arith.constant 0 : index
    %8 = vector.load %arg7[%c0_6, %c0_7] : memref<256x128xf32, #tpu.memory_space<vmem>>, vector<256x128xf32>
    tpu.vector_store %arg7[%c0_6, %c0_7], %7 {strides = array<i32>} : memref<256x128xf32, #tpu.memory_space<vmem>>, vector<256x128xf32>,
    %c0_i32_8 = arith.constant 0 : i32
    %9 = arith.cmpi eq, %arg1, %c0_i32_8 : i32
    %10 = arith.extui %9 : i1 to i32
    %c0_i32_9 = arith.constant 0 : i32
    %11 = arith.cmpi ne, %10, %c0_i32_9 : i32
    scf.if %11 {
      %c0_10 = arith.constant 0 : index
      %c0_11 = arith.constant 0 : index
      %12 = vector.load %arg7[%c0_10, %c0_11] : memref<256x128xf32, #tpu.memory_space<vmem>>, vector<256x128xf32>
      %c0_12 = arith.constant 0 : index
      %c0_13 = arith.constant 0 : index
      %13 = vector.load %arg4[%c0_12, %c0_13] : memref<1x128xf32, #tpu.memory_space<vmem>>, vector<1x128xf32>
      %14 = vector.broadcast %13 : vector<1x128xf32> to vector<256x128xf32>
      %15 = arith.mulf %12, %14 : vector<256x128xf32>
      %c0_14 = arith.constant 0 : index
      %c0_15 = arith.constant 0 : index
      %16 = vector.load %arg5[%c0_14, %c0_15] : memref<1x128xf32, #tpu.memory_space<vmem>>, vector<1x128xf32>
      %17 = vector.broadcast %16 : vector<1x128xf32> to vector<256x128xf32>
      %18 = arith.addf %15, %17 : vector<256x128xf32>
      %c0_16 = arith.constant 0 : index
      %c0_17 = arith.constant 0 : index
      %19 = vector.load %arg6[%c0_16, %c0_17] : memref<256x128xf32, #tpu.memory_space<vmem>>, vector<256x128xf32>
      tpu.vector_store %arg6[%c0_16, %c0_17], %18 {strides = array<i32>} : memref<256x128xf32, #tpu.memory_space<vmem>>, vector<256x128xf32>,
    } else {
    }
    return
  }
  func.func @transform_0(%arg0: i32, %arg1: i32) -> (i32, i32) {
    %c0_i32 = arith.constant 0 : i32
    return %arg0, %arg1 : i32, i32
  }
  func.func @transform_1(%arg0: i32, %arg1: i32) -> (i32, i32) {
    %c0_i32 = arith.constant 0 : i32
    %c0_i32_0 = arith.constant 0 : i32
    return %arg1, %c0_i32 : i32, i32
  }
  func.func @transform_2(%arg0: i32, %arg1: i32) -> (i32, i32) {
    %c0_i32 = arith.constant 0 : i32
    %c0_i32_0 = arith.constant 0 : i32
    %c0_i32_1 = arith.constant 0 : i32
    return %c0_i32, %c0_i32_0 : i32, i32
  }
  func.func @transform_3(%arg0: i32, %arg1: i32) -> (i32, i32) {
    %c0_i32 = arith.constant 0 : i32
    %c0_i32_0 = arith.constant 0 : i32
    %c0_i32_1 = arith.constant 0 : i32
    return %c0_i32, %c0_i32_0 : i32, i32
  }
  func.func @transform_4(%arg0: i32, %arg1: i32) -> (i32, i32) {
    %c0_i32 = arith.constant 0 : i32
    %c0_i32_0 = arith.constant 0 : i32
    return %arg0, %c0_i32 : i32, i32
  }
}

</mosaic_0001>

<bundles_post_ra>
// kernel: gnn_forward.6
= control target key start
LH: loop header
LB: loop body
LE: loop exit
PB: predicated region body
PF: predicated region fallthrough
CT: control target
= control target key end

     0   :  { %s1263_s1 = inlined_call_operand.vmem [shape: bf16[256,128], index: 1, kind: input, shape index: {}]   ;;  %s1264_s0 = inlined_call_operand.vmem [shape: bf16[256,256], index: 0, kind: input, shape index: {}]   ;;  %s1265_s2 = inlined_call_operand.vmem [shape: bf16[256,128], index: 2, kind: output, shape index: {}]  }
   0x1   :  { %v992_v0 = vld [vmem:[%s1263_s1 + $0x40] sm:$0xff]   ;;  %v994_v2 = vld [vmem:[%s1263_s1 + $0x48] sm:$0xff]   ;;  %v996_v4 = vld [vmem:[%s1263_s1 + $0x50] sm:$0xff]  }
   0x2   :  { %v993_v1 = vld [vmem:[%s1263_s1] sm:$0xff]   ;;  %864 = vmatprep.subr.bf16.mxu0 %v992_v0  ;;  %976 = vmatprep.subr.bf16.mxu1 %v992_v0  ;;  %v995_v3 = vld [vmem:[%s1263_s1 + $0x8] sm:$0xff]   ;;  %v997_v5 = vld [vmem:[%s1263_s1 + $0x10] sm:$0xff]  }
   0x3   :  { %865 = vmatpush3.bf16.msra.mxu0 %v993_v1  ;;  %984 = vmatpush3.bf16.msra.mxu1 %v993_v1  ;;  %v998_v6 = vld [vmem:[%s1263_s1 + $0x58] sm:$0xff]   ;;  %v1000_v8 = vld [vmem:[%s1263_s1 + $0x60] sm:$0xff]   ;;  %v1002_v10 = vld [vmem:[%s1263_s1 + $0x68] sm:$0xff]  }
   0x4   :  { %866 = vmatprep.subr.bf16.mxu0 %v994_v2  ;;  %977 = vmatprep.subr.bf16.mxu1 %v994_v2  ;;  %v999_v7 = vld [vmem:[%s1263_s1 + $0x18] sm:$0xff]   ;;  %v1001_v9 = vld [vmem:[%s1263_s1 + $0x20] sm:$0xff]   ;;  %v1003_v13 = vld [vmem:[%s1263_s1 + $0x28] sm:$0xff]  }
   0x5   :  { %v1010_v11 = vld [vmem:[%s1264_s0 + $0x4] ss:$8 sps:$4 sm:$0xff]   ;;  %v1004_v14 = vld [vmem:[%s1263_s1 + $0x70] sm:$0xff]   ;;  %v1006_v16 = vld [vmem:[%s1263_s1 + $0x78] sm:$0xff]  }
   0x6   :  { %v1013_v12 = vld [vmem:[%s1264_s0 + $0x84] ss:$8 sps:$4 sm:$0xff]   ;;  %364 = vmatprep.mubr.bf16.mxu0 %v1010_v11  ;;  %v1005_v15 = vld [vmem:[%s1263_s1 + $0x30] sm:$0xff]   ;;  %v1007_v17 = vld [vmem:[%s1263_s1 + $0x38] sm:$0xff]  }
   0x7   :  { %867 = vmatpush3.bf16.msra.mxu0 %v995_v3  ;;  %985 = vmatpush3.bf16.msra.mxu1 %v995_v3  ;;  %v1008_v18 = vld [vmem:[%s1264_s0] ss:$8 sps:$4 sm:$0xff]   ;;  %v1014_v20 = vld [vmem:[%s1264_s0 + $0x14] ss:$8 sps:$4 sm:$0xff]   ;;  %v1018_v22 = vld [vmem:[%s1264_s0 + $0x10] ss:$8 sps:$4 sm:$0xff]  }
   0x8   :  { %868 = vmatprep.subr.bf16.mxu0 %v996_v4  ;;  %978 = vmatprep.subr.bf16.mxu1 %v996_v4  ;;  %v1011_v19 = vld [vmem:[%s1264_s0 + $0x80] ss:$8 sps:$4 sm:$0xff]   ;;  %v1016_v21 = vld [vmem:[%s1264_s0 + $0x94] ss:$8 sps:$4 sm:$0xff]   ;;  %v1019_v23 = vld [vmem:[%s1264_s0 + $0x90] ss:$8 sps:$4 sm:$0xff]  }
   0x9   :  { %428 = vmatprep.mubr.bf16.mxu1 %v1013_v12  ;;  %v1020_v24 = vld [vmem:[%s1264_s0 + $0x24] ss:$8 sps:$4 sm:$0xff]   ;;  %v1024_v26 = vld [vmem:[%s1264_s0 + $0x20] ss:$8 sps:$4 sm:$0xff]   ;;  %v1026_v28 = vld [vmem:[%s1264_s0 + $0x34] ss:$8 sps:$4 sm:$0xff]  }
   0xa   :  { %v1022_v25 = vld [vmem:[%s1264_s0 + $0xa4] ss:$8 sps:$4 sm:$0xff]   ;;  %v1025_v27 = vld [vmem:[%s1264_s0 + $0xa0] ss:$8 sps:$4 sm:$0xff]   ;;  %v1028_v29 = vld [vmem:[%s1264_s0 + $0xb4] ss:$8 sps:$4 sm:$0xff]  }
   0xb   :  { %869 = vmatpush3.bf16.msra.mxu0 %v997_v5  ;;  %986 = vmatpush3.bf16.msra.mxu1 %v997_v5  ;;  %v1030_v30 = vld [vmem:[%s1264_s0 + $0x30] ss:$8 sps:$4 sm:$0xff]   ;;  %v1032_v32 = vld [vmem:[%s1264_s0 + $0x44] ss:$8 sps:$4 sm:$0xff]   ;;  %v1036_v34 = vld [vmem:[%s1264_s0 + $0x40] ss:$8 sps:$4 sm:$0xff]  }
   0xc   :  { %870 = vmatprep.subr.bf16.mxu0 %v998_v6  ;;  %979 = vmatprep.subr.bf16.mxu1 %v998_v6  ;;  %v1031_v31 = vld [vmem:[%s1264_s0 + $0xb0] ss:$8 sps:$4 sm:$0xff]   ;;  %v1034_v33 = vld [vmem:[%s1264_s0 + $0xc4] ss:$8 sps:$4 sm:$0xff]   ;;  %v1037_v35 = vld [vmem:[%s1264_s0 + $0xc0] ss:$8 sps:$4 sm:$0xff]  }
   0xd   :  { %v1038_v36 = vld [vmem:[%s1264_s0 + $0x54] ss:$8 sps:$4 sm:$0xff]   ;;  %v1042_v38 = vld [vmem:[%s1264_s0 + $0x50] ss:$8 sps:$4 sm:$0xff]   ;;  %v1044_v40 = vld [vmem:[%s1264_s0 + $0x64] ss:$8 sps:$4 sm:$0xff]  }
   0xe   :  { %v1040_v37 = vld [vmem:[%s1264_s0 + $0xd4] ss:$8 sps:$4 sm:$0xff]   ;;  %v1043_v39 = vld [vmem:[%s1264_s0 + $0xd0] ss:$8 sps:$4 sm:$0xff]   ;;  %v1046_v41 = vld [vmem:[%s1264_s0 + $0xe4] ss:$8 sps:$4 sm:$0xff]  }
   0xf   :  { %871 = vmatpush3.bf16.msra.mxu0 %v999_v7  ;;  %987 = vmatpush3.bf16.msra.mxu1 %v999_v7  ;;  %v1048_v42 = vld [vmem:[%s1264_s0 + $0x60] ss:$8 sps:$4 sm:$0xff]   ;;  %v1050_v44 = vld [vmem:[%s1264_s0 + $0x74] ss:$8 sps:$4 sm:$0xff]   ;;  %v1054_v46 = vld [vmem:[%s1264_s0 + $0x70] ss:$8 sps:$4 sm:$0xff]  }
  0x10   :  { %872 = vmatprep.subr.bf16.mxu0 %v1000_v8  ;;  %980 = vmatprep.subr.bf16.mxu1 %v1000_v8  ;;  %v1049_v43 = vld [vmem:[%s1264_s0 + $0xe0] ss:$8 sps:$4 sm:$0xff]   ;;  %v1052_v45 = vld [vmem:[%s1264_s0 + $0xf4] ss:$8 sps:$4 sm:$0xff]   ;;  %v1055_v47 = vld [vmem:[%s1264_s0 + $0xf0] ss:$8 sps:$4 sm:$0xff]  }
  0x13   :  { %873 = vmatpush3.bf16.msra.mxu0 %v1001_v9  ;;  %988 = vmatpush3.bf16.msra.mxu1 %v1001_v9 }
  0x14   :  { %874 = vmatprep.subr.bf16.mxu0 %v1002_v10  ;;  %981 = vmatprep.subr.bf16.mxu1 %v1002_v10 }
  0x17   :  { %875 = vmatpush3.bf16.msra.mxu0 %v1003_v13  ;;  %989 = vmatpush3.bf16.msra.mxu1 %v1003_v13 }
  0x18   :  { %876 = vmatprep.subr.bf16.mxu0 %v1004_v14  ;;  %982 = vmatprep.subr.bf16.mxu1 %v1004_v14 }
  0x1b   :  { %877 = vmatpush3.bf16.msra.mxu0 %v1005_v15  ;;  %990 = vmatpush3.bf16.msra.mxu1 %v1005_v15 }
  0x1c   :  { %878 = vmatprep.subr.bf16.mxu0 %v1006_v16  ;;  %983 = vmatprep.subr.bf16.mxu1 %v1006_v16 }
  0x1f   :  { %879 = vmatpush3.bf16.msra.mxu0 %v1007_v17  ;;  %991 = vmatpush3.bf16.msra.mxu1 %v1007_v17 }
  0x22   :  { %365 = vmatmul.mubr.bf16.vlgmr.msra.gmra.mrb[0].mxu0 %v1008_v18  ;;  %429 = vmatmul.mubr.bf16.vlgmr.msra.gmra.mrb[0].mxu1 %v1011_v19 }
  0x23   :  { %372 = vmatprep.mubr.bf16.mxu0 %v1014_v20  ;;  %436 = vmatprep.mubr.bf16.mxu1 %v1016_v21 }
  0x2a   :  { %373 = vmatmul.mubr.bf16.gmra.mrb[4].mxu0 %v1018_v22  ;;  %437 = vmatmul.mubr.bf16.gmra.mrb[4].mxu1 %v1019_v23 }
  0x2b   :  { %380 = vmatprep.mubr.bf16.mxu0 %v1020_v24  ;;  %444 = vmatprep.mubr.bf16.mxu1 %v1022_v25 }
  0x32   :  { %381 = vmatmul.mubr.bf16.gmra.mrb[8].mxu0 %v1024_v26  ;;  %445 = vmatmul.mubr.bf16.gmra.mrb[8].mxu1 %v1025_v27 }
  0x33   :  { %388 = vmatprep.mubr.bf16.mxu0 %v1026_v28  ;;  %452 = vmatprep.mubr.bf16.mxu1 %v1028_v29 }
  0x3a   :  { %389 = vmatmul.mubr.bf16.gmra.mrb[12].mxu0 %v1030_v30  ;;  %453 = vmatmul.mubr.bf16.gmra.mrb[12].mxu1 %v1031_v31 }
  0x3b   :  { %396 = vmatprep.mubr.bf16.mxu0 %v1032_v32  ;;  %460 = vmatprep.mubr.bf16.mxu1 %v1034_v33 }
  0x42   :  { %397 = vmatmul.mubr.bf16.gmra.mrb[16].mxu0 %v1036_v34  ;;  %461 = vmatmul.mubr.bf16.gmra.mrb[16].mxu1 %v1037_v35 }
  0x43   :  { %404 = vmatprep.mubr.bf16.mxu0 %v1038_v36  ;;  %468 = vmatprep.mubr.bf16.mxu1 %v1040_v37 }
  0x4a   :  { %405 = vmatmul.mubr.bf16.gmra.mrb[20].mxu0 %v1042_v38  ;;  %469 = vmatmul.mubr.bf16.gmra.mrb[20].mxu1 %v1043_v39 }
  0x4b   :  { %412 = vmatprep.mubr.bf16.mxu0 %v1044_v40  ;;  %476 = vmatprep.mubr.bf16.mxu1 %v1046_v41 }
  0x52   :  { %413 = vmatmul.mubr.bf16.gmra.mrb[24].mxu0 %v1048_v42  ;;  %477 = vmatmul.mubr.bf16.gmra.mrb[24].mxu1 %v1049_v43 }
  0x53   :  { %420 = vmatprep.mubr.bf16.mxu0 %v1050_v44  ;;  %484 = vmatprep.mubr.bf16.mxu1 %v1052_v45 }
  0x5a   :  { %421 = vmatmul.mubr.bf16.gmra.mrb[28].mxu0 %v1054_v46  ;;  %485 = vmatmul.mubr.bf16.gmra.mrb[28].mxu1 %v1055_v47 }
  0xf5   :  { %v880_v48 = vpop.f32.mrb[0].mxu0  ;;  %v928_v49 = vpop.f32.mrb[0].mxu1 }
  0xf6   :  { %v881_v50 = vpop.f32.mrb[1].mxu0  ;;  %v929_v51 = vpop.f32.mrb[1].mxu1 }
  0xf7   :  { %v882_v52 = vadd.f32 %v881_v50, %v880_v48  ;;  %v930_v53 = vadd.f32 %v929_v51, %v928_v49  ;;  %v883_v54 = vpop.f32.mrb[2].mxu0  ;;  %v931_v55 = vpop.f32.mrb[2].mxu1 }
  0xf8   :  { %v884_v56 = vpop.f32.mrb[3].mxu0  ;;  %v932_v57 = vpop.f32.mrb[3].mxu1 }
  0xf9   :  { %v885_v58 = vadd.f32 %v884_v56, %v883_v54  ;;  %v933_v59 = vadd.f32 %v932_v57, %v931_v55 }
  0xfb   :  { %v772_v60 = vpack.c.bf16 %v885_v58, %v882_v52  ;;  %v812_v61 = vpack.c.bf16 %v933_v59, %v930_v53 }
  0xfd   :  { %773 = vst [vmem:[%s1265_s2] sm:$0xff] %v772_v60   ;;  %856 = vst [vmem:[%s1265_s2 + $0x40] sm:$0xff] %v812_v61   ;;  %v886_v62 = vpop.f32.mrb[4].mxu0  ;;  %v934_v63 = vpop.f32.mrb[4].mxu1 }
  0xfe   :  { %v887_v0 = vpop.f32.mrb[5].mxu0  ;;  %v935_v1 = vpop.f32.mrb[5].mxu1 }
  0xff   :  { %v888_v2 = vadd.f32 %v887_v0, %v886_v62  ;;  %v936_v3 = vadd.f32 %v935_v1, %v934_v63  ;;  %v889_v4 = vpop.f32.mrb[6].mxu0  ;;  %v937_v5 = vpop.f32.mrb[6].mxu1 }
 0x100   :  { %v890_v6 = vpop.f32.mrb[7].mxu0  ;;  %v938_v7 = vpop.f32.mrb[7].mxu1 }
 0x101   :  { %v891_v8 = vadd.f32 %v890_v6, %v889_v4  ;;  %v939_v9 = vadd.f32 %v938_v7, %v937_v5 }
 0x103   :  { %v777_v10 = vpack.c.bf16 %v891_v8, %v888_v2  ;;  %v817_v11 = vpack.c.bf16 %v939_v9, %v936_v3 }
 0x105   :  { %849 = vst [vmem:[%s1265_s2 + $0x8] sm:$0xff] %v777_v10   ;;  %857 = vst [vmem:[%s1265_s2 + $0x48] sm:$0xff] %v817_v11   ;;  %v892_v12 = vpop.f32.mrb[8].mxu0  ;;  %v940_v13 = vpop.f32.mrb[8].mxu1 }
 0x106   :  { %v893_v14 = vpop.f32.mrb[9].mxu0  ;;  %v941_v15 = vpop.f32.mrb[9].mxu1 }
 0x107   :  { %v894_v16 = vadd.f32 %v893_v14, %v892_v12  ;;  %v942_v17 = vadd.f32 %v941_v15, %v940_v13  ;;  %v895_v18 = vpop.f32.mrb[10].mxu0  ;;  %v943_v19 = vpop.f32.mrb[10].mxu1 }
 0x108   :  { %v896_v20 = vpop.f32.mrb[11].mxu0  ;;  %v944_v21 = vpop.f32.mrb[11].mxu1 }
 0x109   :  { %v897_v22 = vadd.f32 %v896_v20, %v895_v18  ;;  %v945_v23 = vadd.f32 %v944_v21, %v943_v19 }
 0x10b   :  { %v782_v24 = vpack.c.bf16 %v897_v22, %v894_v16  ;;  %v822_v25 = vpack.c.bf16 %v945_v23, %v942_v17 }
 0x10d   :  { %850 = vst [vmem:[%s1265_s2 + $0x10] sm:$0xff] %v782_v24   ;;  %858 = vst [vmem:[%s1265_s2 + $0x50] sm:$0xff] %v822_v25   ;;  %v898_v26 = vpop.f32.mrb[12].mxu0  ;;  %v946_v27 = vpop.f32.mrb[12].mxu1 }
 0x10e   :  { %v899_v28 = vpop.f32.mrb[13].mxu0  ;;  %v947_v29 = vpop.f32.mrb[13].mxu1 }
 0x10f   :  { %v900_v30 = vadd.f32 %v899_v28, %v898_v26  ;;  %v948_v31 = vadd.f32 %v947_v29, %v946_v27  ;;  %v901_v32 = vpop.f32.mrb[14].mxu0  ;;  %v949_v33 = vpop.f32.mrb[14].mxu1 }
 0x110   :  { %v902_v34 = vpop.f32.mrb[15].mxu0  ;;  %v950_v35 = vpop.f32.mrb[15].mxu1 }
 0x111   :  { %v903_v36 = vadd.f32 %v902_v34, %v901_v32  ;;  %v951_v37 = vadd.f32 %v950_v35, %v949_v33 }
 0x113   :  { %v787_v38 = vpack.c.bf16 %v903_v36, %v900_v30  ;;  %v827_v39 = vpack.c.bf16 %v951_v37, %v948_v31 }
 0x115   :  { %851 = vst [vmem:[%s1265_s2 + $0x18] sm:$0xff] %v787_v38   ;;  %859 = vst [vmem:[%s1265_s2 + $0x58] sm:$0xff] %v827_v39   ;;  %v904_v40 = vpop.f32.mrb[16].mxu0  ;;  %v952_v41 = vpop.f32.mrb[16].mxu1 }
 0x116   :  { %v905_v42 = vpop.f32.mrb[17].mxu0  ;;  %v953_v43 = vpop.f32.mrb[17].mxu1 }
 0x117   :  { %v906_v44 = vadd.f32 %v905_v42, %v904_v40  ;;  %v954_v45 = vadd.f32 %v953_v43, %v952_v41  ;;  %v907_v46 = vpop.f32.mrb[18].mxu0  ;;  %v955_v47 = vpop.f32.mrb[18].mxu1 }
 0x118   :  { %v908_v48 = vpop.f32.mrb[19].mxu0  ;;  %v956_v49 = vpop.f32.mrb[19].mxu1 }
 0x119   :  { %v909_v50 = vadd.f32 %v908_v48, %v907_v46  ;;  %v957_v51 = vadd.f32 %v956_v49, %v955_v47 }
 0x11b   :  { %v792_v52 = vpack.c.bf16 %v909_v50, %v906_v44  ;;  %v832_v53 = vpack.c.bf16 %v957_v51, %v954_v45 }
 0x11d   :  { %852 = vst [vmem:[%s1265_s2 + $0x20] sm:$0xff] %v792_v52   ;;  %860 = vst [vmem:[%s1265_s2 + $0x60] sm:$0xff] %v832_v53   ;;  %v910_v54 = vpop.f32.mrb[20].mxu0  ;;  %v958_v55 = vpop.f32.mrb[20].mxu1 }
 0x11e   :  { %v911_v56 = vpop.f32.mrb[21].mxu0  ;;  %v959_v57 = vpop.f32.mrb[21].mxu1 }
 0x11f   :  { %v912_v58 = vadd.f32 %v911_v56, %v910_v54  ;;  %v960_v59 = vadd.f32 %v959_v57, %v958_v55  ;;  %v913_v60 = vpop.f32.mrb[22].mxu0  ;;  %v961_v61 = vpop.f32.mrb[22].mxu1 }
 0x120   :  { %v914_v62 = vpop.f32.mrb[23].mxu0  ;;  %v962_v63 = vpop.f32.mrb[23].mxu1 }
 0x121   :  { %v915_v0 = vadd.f32 %v914_v62, %v913_v60  ;;  %v963_v1 = vadd.f32 %v962_v63, %v961_v61 }
 0x123   :  { %v797_v2 = vpack.c.bf16 %v915_v0, %v912_v58  ;;  %v837_v3 = vpack.c.bf16 %v963_v1, %v960_v59 }
 0x125   :  { %853 = vst [vmem:[%s1265_s2 + $0x28] sm:$0xff] %v797_v2   ;;  %861 = vst [vmem:[%s1265_s2 + $0x68] sm:$0xff] %v837_v3   ;;  %v916_v4 = vpop.f32.mrb[24].mxu0  ;;  %v964_v5 = vpop.f32.mrb[24].mxu1 }
 0x126   :  { %v917_v6 = vpop.f32.mrb[25].mxu0  ;;  %v965_v7 = vpop.f32.mrb[25].mxu1 }
 0x127   :  { %v918_v8 = vadd.f32 %v917_v6, %v916_v4  ;;  %v966_v9 = vadd.f32 %v965_v7, %v964_v5  ;;  %v919_v10 = vpop.f32.mrb[26].mxu0  ;;  %v967_v11 = vpop.f32.mrb[26].mxu1 }
 0x128   :  { %v920_v12 = vpop.f32.mrb[27].mxu0  ;;  %v968_v13 = vpop.f32.mrb[27].mxu1 }
 0x129   :  { %v921_v14 = vadd.f32 %v920_v12, %v919_v10  ;;  %v969_v15 = vadd.f32 %v968_v13, %v967_v11 }
 0x12b   :  { %v802_v16 = vpack.c.bf16 %v921_v14, %v918_v8  ;;  %v842_v17 = vpack.c.bf16 %v969_v15, %v966_v9 }
 0x12d   :  { %854 = vst [vmem:[%s1265_s2 + $0x30] sm:$0xff] %v802_v16   ;;  %862 = vst [vmem:[%s1265_s2 + $0x70] sm:$0xff] %v842_v17   ;;  %v922_v18 = vpop.f32.mrb[28].mxu0  ;;  %v970_v19 = vpop.f32.mrb[28].mxu1 }
 0x12e   :  { %v923_v20 = vpop.f32.mrb[29].mxu0  ;;  %v971_v21 = vpop.f32.mrb[29].mxu1 }
 0x12f   :  { %v924_v22 = vadd.f32 %v923_v20, %v922_v18  ;;  %v972_v23 = vadd.f32 %v971_v21, %v970_v19  ;;  %v925_v24 = vpop.f32.mrb[30].mxu0  ;;  %v973_v25 = vpop.f32.mrb[30].mxu1 }
 0x130   :  { %v926_v26 = vpop.f32.mrb[31].mxu0  ;;  %v974_v27 = vpop.f32.mrb[31].mxu1 }
 0x131   :  { %v927_v28 = vadd.f32 %v926_v26, %v925_v24  ;;  %v975_v29 = vadd.f32 %v974_v27, %v973_v25 }
 0x133   :  { %v807_v30 = vpack.c.bf16 %v927_v28, %v924_v22  ;;  %v847_v31 = vpack.c.bf16 %v975_v29, %v972_v23 }
 0x135   :  { %855 = vst [vmem:[%s1265_s2 + $0x38] sm:$0xff] %v807_v30   ;;  %863 = vst [vmem:[%s1265_s2 + $0x78] sm:$0xff] %v847_v31  }

// kernel: gnn_forward.4
= control target key start
LH: loop header
LB: loop body
LE: loop exit
PB: predicated region body
PF: predicated region fallthrough
CT: control target
= control target key end

     0   :  { %s2264_s1 = inlined_call_operand.vmem [shape: bf16[256,128], index: 1, kind: input, shape index: {}]   ;;  %s2265_s0 = inlined_call_operand.vmem [shape: bf16[256,256], index: 0, kind: input, shape index: {}]   ;;  %s2266_s2 = inlined_call_operand.vmem [shape: f32[128,256], index: 2, kind: input, shape index: {}]   ;;  %s2267_s3 = inlined_call_operand.vmem [shape: f32[1,256], index: 3, kind: input, shape index: {}]   ;;  %s2268_s4 = inlined_call_operand.vmem [shape: f32[1,256], index: 4, kind: input, shape index: {}]   ;;  %s2269_s5 = inlined_call_operand.vmem [shape: bf16[256,256], index: 5, kind: output, shape index: {}]  }
   0x1   :  { %v1659_v0 = vld [vmem:[%s2264_s1 + $0x40] sm:$0xff]   ;;  %v1661_v2 = vld [vmem:[%s2264_s1 + $0x48] sm:$0xff]   ;;  %v1663_v4 = vld [vmem:[%s2264_s1 + $0x50] sm:$0xff]  }
   0x2   :  { %v1660_v1 = vld [vmem:[%s2264_s1] sm:$0xff]   ;;  %1514 = vmatprep.subr.bf16.mxu0 %v1659_v0  ;;  %v1662_v3 = vld [vmem:[%s2264_s1 + $0x8] sm:$0xff]   ;;  %v1664_v5 = vld [vmem:[%s2264_s1 + $0x10] sm:$0xff]  }
   0x3   :  { %1515 = vmatpush3.bf16.msra.mxu0 %v1660_v1  ;;  %v1665_v6 = vld [vmem:[%s2264_s1 + $0x58] sm:$0xff]   ;;  %v1667_v8 = vld [vmem:[%s2264_s1 + $0x60] sm:$0xff]   ;;  %v1669_v10 = vld [vmem:[%s2264_s1 + $0x68] sm:$0xff]  }
   0x4   :  { %1516 = vmatprep.subr.bf16.mxu0 %v1661_v2  ;;  %v1666_v7 = vld [vmem:[%s2264_s1 + $0x18] sm:$0xff]   ;;  %v1668_v9 = vld [vmem:[%s2264_s1 + $0x20] sm:$0xff]   ;;  %v1670_v12 = vld [vmem:[%s2264_s1 + $0x28] sm:$0xff]  }
   0x5   :  { %v1677_v11 = vld [vmem:[%s2265_s0 + $0x4] ss:$8 sps:$4 sm:$0xff]   ;;  %v1671_v13 = vld [vmem:[%s2264_s1 + $0x70] sm:$0xff]   ;;  %v1673_v15 = vld [vmem:[%s2264_s1 + $0x78] sm:$0xff]  }
   0x6   :  { %441 = vmatprep.mubr.bf16.mxu0 %v1677_v11  ;;  %v1672_v14 = vld [vmem:[%s2264_s1 + $0x30] sm:$0xff]   ;;  %v1674_v16 = vld [vmem:[%s2264_s1 + $0x38] sm:$0xff]   ;;  %v1675_v17 = vld [vmem:[%s2265_s0] ss:$8 sps:$4 sm:$0xff]  }
   0x7   :  { %1517 = vmatpush3.bf16.msra.mxu0 %v1662_v3  ;;  %v1678_v18 = vld [vmem:[%s2265_s0 + $0x14] ss:$8 sps:$4 sm:$0xff]   ;;  %v1680_v19 = vld [vmem:[%s2265_s0 + $0x10] ss:$8 sps:$4 sm:$0xff]   ;;  %v1681_v20 = vld [vmem:[%s2265_s0 + $0x24] ss:$8 sps:$4 sm:$0xff]  }
   0x8   :  { %1518 = vmatprep.subr.bf16.mxu0 %v1663_v4  ;;  %v670_v21 = vld [vmem:[%s2266_s2 + $0x8] sm:$0xff]  ;;  %v672_v22 = vld [vmem:[%s2266_s2 + $0x18] sm:$0xff]  ;;  %v669_v24 = vld [vmem:[%s2266_s2] sm:$0xff] }
   0x9   :  { %v1626_v23 = vpack.c.bf16 %v672_v22, %v670_v21  ;;  %v671_v25 = vld [vmem:[%s2266_s2 + $0x10] sm:$0xff]  ;;  %v674_v26 = vld [vmem:[%s2266_s2 + $0x28] sm:$0xff]  ;;  %v676_v28 = vld [vmem:[%s2266_s2 + $0x38] sm:$0xff] }
   0xa   :  { %v1628_v27 = vpack.c.bf16 %v671_v25, %v669_v24  ;;  %v673_v29 = vld [vmem:[%s2266_s2 + $0x20] sm:$0xff]  ;;  %v675_v30 = vld [vmem:[%s2266_s2 + $0x30] sm:$0xff]  ;;  %v1630_v31 = vpack.c.bf16 %v676_v28, %v674_v26  ;;  %v678_v32 = vld [vmem:[%s2266_s2 + $0x48] sm:$0xff]  ;;  %v1723_v25 = vmov 0.0  }
   0xb   :  { %1519 = vmatpush3.bf16.msra.mxu0 %v1664_v5  ;;  %1627 = vmatprep.subr.bf16.mxu1 %v1626_v23  ;;  %v680_v33 = vld [vmem:[%s2266_s2 + $0x58] sm:$0xff]  ;;  %v1632_v34 = vpack.c.bf16 %v675_v30, %v673_v29  ;;  %v677_v36 = vld [vmem:[%s2266_s2 + $0x40] sm:$0xff]  ;;  %v679_v37 = vld [vmem:[%s2266_s2 + $0x50] sm:$0xff] }
   0xc   :  { %1520 = vmatprep.subr.bf16.mxu0 %v1665_v6  ;;  %1629 = vmatpush1.bf16.msra.mxu1 %v1628_v27  ;;  %v1634_v35 = vpack.c.bf16 %v680_v33, %v678_v32  ;;  %v682_v38 = vld [vmem:[%s2266_s2 + $0x68] sm:$0xff]  ;;  %v684_v39 = vld [vmem:[%s2266_s2 + $0x78] sm:$0xff]  ;;  %v1636_v40 = vpack.c.bf16 %v679_v37, %v677_v36  ;;  %v681_v43 = vld [vmem:[%s2266_s2 + $0x60] sm:$0xff] }
   0xd   :  { %1631 = vmatprep.subr.bf16.mxu1 %v1630_v31  ;;  %v1683_v41 = vld [vmem:[%s2265_s0 + $0x20] ss:$8 sps:$4 sm:$0xff]   ;;  %v1638_v42 = vpack.c.bf16 %v684_v39, %v682_v38  ;;  %v683_v44 = vld [vmem:[%s2266_s2 + $0x70] sm:$0xff]  ;;  %v688_v47 = vld [vmem:[%s2266_s2 + $0x98] sm:$0xff]  ;;  %765 = vmatprep.mubr.f32.mxu1 %v1723_v25 }
   0xe   :  { %v1684_v45 = vld [vmem:[%s2265_s0 + $0x34] ss:$8 sps:$4 sm:$0xff]   ;;  %v686_v46 = vld [vmem:[%s2266_s2 + $0x88] sm:$0xff]  ;;  %v1640_v48 = vpack.c.bf16 %v683_v44, %v681_v43  ;;  %v685_v50 = vld [vmem:[%s2266_s2 + $0x80] sm:$0xff] }
   0xf   :  { %1521 = vmatpush3.bf16.msra.mxu0 %v1666_v7  ;;  %v1642_v49 = vpack.c.bf16 %v688_v47, %v686_v46  ;;  %v687_v51 = vld [vmem:[%s2266_s2 + $0x90] sm:$0xff]  ;;  %v690_v52 = vld [vmem:[%s2266_s2 + $0xa8] sm:$0xff]  ;;  %v692_v53 = vld [vmem:[%s2266_s2 + $0xb8] sm:$0xff] }
  0x10   :  { %1522 = vmatprep.subr.bf16.mxu0 %v1667_v8  ;;  %1633 = vmatpush1.bf16.msra.mxu1 %v1632_v34  ;;  %v1644_v54 = vpack.c.bf16 %v687_v51, %v685_v50  ;;  %v1686_v55 = vld [vmem:[%s2265_s0 + $0x30] ss:$8 sps:$4 sm:$0xff]   ;;  %v1646_v56 = vpack.c.bf16 %v692_v53, %v690_v52  ;;  %v689_v57 = vld [vmem:[%s2266_s2 + $0xa0] sm:$0xff]  ;;  %v694_v60 = vld [vmem:[%s2266_s2 + $0xc8] sm:$0xff] }
  0x11   :  { %1635 = vmatprep.subr.bf16.mxu1 %v1634_v35  ;;  %v691_v58 = vld [vmem:[%s2266_s2 + $0xb0] sm:$0xff]  ;;  %v1687_v59 = vld [vmem:[%s2265_s0 + $0x44] ss:$8 sps:$4 sm:$0xff]   ;;  %v696_v61 = vld [vmem:[%s2266_s2 + $0xd8] sm:$0xff] }
  0x12   :  { %v1648_v62 = vpack.c.bf16 %v691_v58, %v689_v57  ;;  %v1650_v63 = vpack.c.bf16 %v696_v61, %v694_v60  ;;  %v693_v0 = vld [vmem:[%s2266_s2 + $0xc0] sm:$0xff]  ;;  %v695_v1 = vld [vmem:[%s2266_s2 + $0xd0] sm:$0xff] }
  0x13   :  { %1523 = vmatpush3.bf16.msra.mxu0 %v1668_v9  ;;  %v1652_v2 = vpack.c.bf16 %v695_v1, %v693_v0  ;;  %v1689_v3 = vld [vmem:[%s2265_s0 + $0x40] ss:$8 sps:$4 sm:$0xff]   ;;  %v1690_v4 = vld [vmem:[%s2265_s0 + $0x54] ss:$8 sps:$4 sm:$0xff]   ;;  %v1692_v5 = vld [vmem:[%s2265_s0 + $0x50] ss:$8 sps:$4 sm:$0xff]  }
  0x14   :  { %1524 = vmatprep.subr.bf16.mxu0 %v1669_v10  ;;  %1637 = vmatpush1.bf16.msra.mxu1 %v1636_v40  ;;  %v1693_v6 = vld [vmem:[%s2265_s0 + $0x64] ss:$8 sps:$4 sm:$0xff]   ;;  %v1695_v7 = vld [vmem:[%s2265_s0 + $0x60] ss:$8 sps:$4 sm:$0xff]   ;;  %v1696_v8 = vld [vmem:[%s2265_s0 + $0x74] ss:$8 sps:$4 sm:$0xff]  }
  0x15   :  { %1639 = vmatprep.subr.bf16.mxu1 %v1638_v42  ;;  %v1698_v9 = vld [vmem:[%s2265_s0 + $0x70] ss:$8 sps:$4 sm:$0xff]   ;;  %v1699_v10 = vld [vmem:[%s2265_s0 + $0x84] ss:$8 sps:$4 sm:$0xff]   ;;  %v1701_v11 = vld [vmem:[%s2265_s0 + $0x80] ss:$8 sps:$4 sm:$0xff]  }
  0x16   :  { %v699_v21 = vld [vmem:[%s2266_s2 + $0xf0] sm:$0xff]  ;;  %v1711_v24 = vld [vmem:[%s2265_s0 + $0xc4] ss:$8 sps:$4 sm:$0xff]   ;;  %v1713_v26 = vld [vmem:[%s2265_s0 + $0xc0] ss:$8 sps:$4 sm:$0xff]  }
  0x17   :  { %1525 = vmatpush3.bf16.msra.mxu0 %v1670_v12  ;;  %v1702_v12 = vld [vmem:[%s2265_s0 + $0x94] ss:$8 sps:$4 sm:$0xff]   ;;  %v1710_v23 = vld [vmem:[%s2265_s0 + $0xb0] ss:$8 sps:$4 sm:$0xff]   ;;  %v1717_v29 = vld [vmem:[%s2265_s0 + $0xe4] ss:$8 sps:$4 sm:$0xff]  }
  0x18   :  { %1526 = vmatprep.subr.bf16.mxu0 %v1671_v13  ;;  %1641 = vmatpush1.bf16.msra.mxu1 %v1640_v48  ;;  %v1704_v13 = vld [vmem:[%s2265_s0 + $0x90] ss:$8 sps:$4 sm:$0xff]   ;;  %v1714_v27 = vld [vmem:[%s2265_s0 + $0xd4] ss:$8 sps:$4 sm:$0xff]   ;;  %v1719_v30 = vld [vmem:[%s2265_s0 + $0xe0] ss:$8 sps:$4 sm:$0xff]  }
  0x19   :  { %1643 = vmatprep.subr.bf16.mxu1 %v1642_v49  ;;  %v1716_v28 = vld [vmem:[%s2265_s0 + $0xd0] ss:$8 sps:$4 sm:$0xff]   ;;  %v1720_v31 = vld [vmem:[%s2265_s0 + $0xf4] ss:$8 sps:$4 sm:$0xff]  }
  0x1a   :  { %v1722_v32 = vld [vmem:[%s2265_s0 + $0xf0] ss:$8 sps:$4 sm:$0xff]  }
  0x1b   :  { %1527 = vmatpush3.bf16.msra.mxu0 %v1672_v14  ;;  %v1705_v14 = vld [vmem:[%s2265_s0 + $0xa4] ss:$8 sps:$4 sm:$0xff]  }
  0x1c   :  { %1528 = vmatprep.subr.bf16.mxu0 %v1673_v15  ;;  %1645 = vmatpush1.bf16.msra.mxu1 %v1644_v54  ;;  %v1707_v15 = vld [vmem:[%s2265_s0 + $0xa0] ss:$8 sps:$4 sm:$0xff]  }
  0x1d   :  { %1647 = vmatprep.subr.bf16.mxu1 %v1646_v56 }
  0x1f   :  { %1529 = vmatpush3.bf16.msra.mxu0 %v1674_v16  ;;  %v1708_v16 = vld [vmem:[%s2265_s0 + $0xb4] ss:$8 sps:$4 sm:$0xff]  }
  0x20   :  { %1649 = vmatpush1.bf16.msra.mxu1 %v1648_v62 }
  0x21   :  { %1651 = vmatprep.subr.bf16.mxu1 %v1650_v63 }
  0x22   :  { %442 = vmatmul.mubr.bf16.vlgmr.msra.gmra.mrb[0].mxu0 %v1675_v17  ;;  %v698_v17 = vld [vmem:[%s2266_s2 + $0xe8] sm:$0xff] }
  0x23   :  { %449 = vmatprep.mubr.bf16.mxu0 %v1678_v18  ;;  %v700_v18 = vld [vmem:[%s2266_s2 + $0xf8] sm:$0xff] }
  0x24   :  { %1653 = vmatpush1.bf16.msra.mxu1 %v1652_v2 }
  0x2a   :  { %450 = vmatmul.mubr.bf16.gmra.mrb[4].mxu0 %v1680_v19  ;;  %v1654_v19 = vpack.c.bf16 %v700_v18, %v698_v17 }
  0x2b   :  { %457 = vmatprep.mubr.bf16.mxu0 %v1681_v20  ;;  %v697_v20 = vld [vmem:[%s2266_s2 + $0xe0] sm:$0xff] }
  0x2c   :  { %v1656_v22 = vpack.c.bf16 %v699_v21, %v697_v20  ;;  %1655 = vmatprep.subr.bf16.mxu1 %v1654_v19 }
  0x2e   :  { %1657 = vmatpush1.bf16.msra.mxu1 %v1656_v22 }
  0x32   :  { %458 = vmatmul.mubr.bf16.gmra.mrb[8].mxu0 %v1683_v41 }
  0x33   :  { %465 = vmatprep.mubr.bf16.mxu0 %v1684_v45 }
  0x3a   :  { %466 = vmatmul.mubr.bf16.gmra.mrb[12].mxu0 %v1686_v55 }
  0x3b   :  { %473 = vmatprep.mubr.bf16.mxu0 %v1687_v59 }
  0x42   :  { %474 = vmatmul.mubr.bf16.gmra.mrb[16].mxu0 %v1689_v3 }
  0x43   :  { %481 = vmatprep.mubr.bf16.mxu0 %v1690_v4 }
  0x4a   :  { %482 = vmatmul.mubr.bf16.gmra.mrb[20].mxu0 %v1692_v5 }
  0x4b   :  { %489 = vmatprep.mubr.bf16.mxu0 %v1693_v6 }
  0x52   :  { %490 = vmatmul.mubr.bf16.gmra.mrb[24].mxu0 %v1695_v7 }
  0x53   :  { %497 = vmatprep.mubr.bf16.mxu0 %v1696_v8 }
  0x5a   :  { %498 = vmatmul.mubr.bf16.gmra.mrb[28].mxu0 %v1698_v9 }
  0x5b   :  { %505 = vmatprep.mubr.bf16.mxu0 %v1699_v10 }
  0x62   :  { %506 = vmatmul.mubr.bf16.gmra.mrb[32].mxu0 %v1701_v11 }
  0x63   :  { %513 = vmatprep.mubr.bf16.mxu0 %v1702_v12 }
  0x6a   :  { %514 = vmatmul.mubr.bf16.gmra.mrb[36].mxu0 %v1704_v13 }
  0x6b   :  { %521 = vmatprep.mubr.bf16.mxu0 %v1705_v14 }
  0x72   :  { %522 = vmatmul.mubr.bf16.gmra.mrb[40].mxu0 %v1707_v15 }
  0x73   :  { %529 = vmatprep.mubr.bf16.mxu0 %v1708_v16 }
  0x7a   :  { %530 = vmatmul.mubr.bf16.gmra.mrb[44].mxu0 %v1710_v23 }
  0x7b   :  { %537 = vmatprep.mubr.bf16.mxu0 %v1711_v24 }
  0x82   :  { %538 = vmatmul.mubr.bf16.gmra.mrb[48].mxu0 %v1713_v26 }
  0x83   :  { %545 = vmatprep.mubr.bf16.mxu0 %v1714_v27 }
  0x8a   :  { %546 = vmatmul.mubr.bf16.gmra.mrb[52].mxu0 %v1716_v28 }
  0x8b   :  { %553 = vmatprep.mubr.bf16.mxu0 %v1717_v29 }
  0x92   :  { %554 = vmatmul.mubr.bf16.gmra.mrb[56].mxu0 %v1719_v30 }
  0x93   :  { %561 = vmatprep.mubr.bf16.mxu0 %v1720_v31 }
  0x9a   :  { %562 = vmatmul.mubr.bf16.gmra.mrb[60].mxu0 %v1722_v32 }
  0xf5   :  { %v1530_v33 = vpop.f32.mrb[0].mxu0 }
  0xf6   :  { %v1531_v34 = vpop.f32.mrb[1].mxu0 }
  0xf7   :  { %v1532_v35 = vadd.f32 %v1531_v34, %v1530_v33  ;;  %v1533_v36 = vpop.f32.mrb[2].mxu0 }
  0xf8   :  { %v1534_v37 = vpop.f32.mrb[3].mxu0 }
  0xf9   :  { %v1535_v38 = vadd.f32 %v1534_v37, %v1533_v36  ;;  %766 = vmatmul.mubr.f32.vlgmr.msra.gmra.mrb[0].mxu1 %v1532_v35 }
  0xfa   :  { %771 = vmatprep.mubr.f32.mxu1 %v1723_v25 }
  0xfd   :  { %v1536_v39 = vpop.f32.mrb[4].mxu0  ;;  %772 = vmatmul.mubr.f32.gmra.mrb[2].mxu1 %v1535_v38 }
  0xfe   :  { %v1537_v40 = vpop.f32.mrb[5].mxu0  ;;  %777 = vmatprep.mubr.f32.mxu1 %v1723_v25 }
  0xff   :  { %v1538_v41 = vadd.f32 %v1537_v40, %v1536_v39  ;;  %v1539_v42 = vpop.f32.mrb[6].mxu0 }
 0x100   :  { %v1540_v43 = vpop.f32.mrb[7].mxu0 }
 0x101   :  { %v1541_v44 = vadd.f32 %v1540_v43, %v1539_v42  ;;  %778 = vmatmul.mubr.f32.gmra.mrb[4].mxu1 %v1538_v41 }
 0x102   :  { %783 = vmatprep.mubr.f32.mxu1 %v1723_v25 }
 0x105   :  { %v1542_v45 = vpop.f32.mrb[8].mxu0  ;;  %784 = vmatmul.mubr.f32.gmra.mrb[6].mxu1 %v1541_v44 }
 0x106   :  { %v1543_v46 = vpop.f32.mrb[9].mxu0  ;;  %789 = vmatprep.mubr.f32.mxu1 %v1723_v25 }
 0x107   :  { %v1544_v47 = vadd.f32 %v1543_v46, %v1542_v45  ;;  %v1545_v48 = vpop.f32.mrb[10].mxu0 }
 0x108   :  { %v1546_v49 = vpop.f32.mrb[11].mxu0 }
 0x109   :  { %v1547_v50 = vadd.f32 %v1546_v49, %v1545_v48  ;;  %790 = vmatmul.mubr.f32.gmra.mrb[8].mxu1 %v1544_v47 }
 0x10a   :  { %795 = vmatprep.mubr.f32.mxu1 %v1723_v25 }
 0x10d   :  { %v1548_v51 = vpop.f32.mrb[12].mxu0  ;;  %796 = vmatmul.mubr.f32.gmra.mrb[10].mxu1 %v1547_v50 }
 0x10e   :  { %v1549_v52 = vpop.f32.mrb[13].mxu0  ;;  %801 = vmatprep.mubr.f32.mxu1 %v1723_v25 }
 0x10f   :  { %v1550_v53 = vadd.f32 %v1549_v52, %v1548_v51  ;;  %v1551_v54 = vpop.f32.mrb[14].mxu0 }
 0x110   :  { %v1552_v55 = vpop.f32.mrb[15].mxu0 }
 0x111   :  { %v1553_v56 = vadd.f32 %v1552_v55, %v1551_v54  ;;  %802 = vmatmul.mubr.f32.gmra.mrb[12].mxu1 %v1550_v53 }
 0x112   :  { %807 = vmatprep.mubr.f32.mxu1 %v1723_v25 }
 0x115   :  { %v1554_v57 = vpop.f32.mrb[16].mxu0  ;;  %808 = vmatmul.mubr.f32.gmra.mrb[14].mxu1 %v1553_v56 }
 0x116   :  { %v1555_v58 = vpop.f32.mrb[17].mxu0  ;;  %813 = vmatprep.mubr.f32.mxu1 %v1723_v25 }
 0x117   :  { %v1556_v59 = vadd.f32 %v1555_v58, %v1554_v57  ;;  %v1557_v60 = vpop.f32.mrb[18].mxu0 }
 0x118   :  { %v1558_v61 = vpop.f32.mrb[19].mxu0 }
 0x119   :  { %v1559_v62 = vadd.f32 %v1558_v61, %v1557_v60  ;;  %814 = vmatmul.mubr.f32.gmra.mrb[16].mxu1 %v1556_v59 }
 0x11a   :  { %819 = vmatprep.mubr.f32.mxu1 %v1723_v25 }
 0x11d   :  { %v1560_v63 = vpop.f32.mrb[20].mxu0  ;;  %820 = vmatmul.mubr.f32.gmra.mrb[18].mxu1 %v1559_v62 }
 0x11e   :  { %v1561_v0 = vpop.f32.mrb[21].mxu0  ;;  %825 = vmatprep.mubr.f32.mxu1 %v1723_v25 }
 0x11f   :  { %v1562_v1 = vadd.f32 %v1561_v0, %v1560_v63  ;;  %v1563_v2 = vpop.f32.mrb[22].mxu0 }
 0x120   :  { %v1564_v3 = vpop.f32.mrb[23].mxu0 }
 0x121   :  { %v1565_v4 = vadd.f32 %v1564_v3, %v1563_v2  ;;  %826 = vmatmul.mubr.f32.gmra.mrb[20].mxu1 %v1562_v1  ;;  %v960_v2 = vlaneseq }
 0x122   :  { %831 = vmatprep.mubr.f32.mxu1 %v1723_v25 }
 0x123   :  { %v961_v3 = vshrl.u32 %v960_v2, 7 }
 0x125   :  { %v1566_v5 = vpop.f32.mrb[24].mxu0  ;;  %832 = vmatmul.mubr.f32.gmra.mrb[22].mxu1 %v1565_v4  ;;  %v962_v4 = vsub.s32 0, %v961_v3 }
 0x126   :  { %v1567_v6 = vpop.f32.mrb[25].mxu0  ;;  %837 = vmatprep.mubr.f32.mxu1 %v1723_v25 }
 0x127   :  { %v1568_v7 = vadd.f32 %v1567_v6, %v1566_v5  ;;  %v1569_v8 = vpop.f32.mrb[26].mxu0  ;;  %v958_v5 = vld [vmem:[%s2267_s3] sm:$0x3]  ;;  %v966_v6 = vsub.s32 1, %v961_v3 }
 0x128   :  { %v1570_v9 = vpop.f32.mrb[27].mxu0 }
 0x129   :  { %v1571_v10 = vadd.f32 %v1570_v9, %v1569_v8  ;;  %838 = vmatmul.mubr.f32.gmra.mrb[24].mxu1 %v1568_v7  ;;  %v1034_v7 = vld [vmem:[%s2268_s4] sm:$0x3]  ;;  %v2032_v8 = vrot.slane %v958_v5, %v962_v4  ;;  %v2034_v9 = vrot.slane %v958_v5, %v966_v6 }
 0x12a   :  { %843 = vmatprep.mubr.f32.mxu1 %v1723_v25 }
 0x12d   :  { %v1572_v11 = vpop.f32.mrb[28].mxu0  ;;  %844 = vmatmul.mubr.f32.gmra.mrb[26].mxu1 %v1571_v10  ;;  %v2036_v10 = vrot.slane %v1034_v7, %v962_v4 }
 0x12e   :  { %v1573_v12 = vpop.f32.mrb[29].mxu0  ;;  %849 = vmatprep.mubr.f32.mxu1 %v1723_v25 }
 0x12f   :  { %v1574_v13 = vadd.f32 %v1573_v12, %v1572_v11  ;;  %v1575_v14 = vpop.f32.mrb[30].mxu0  ;;  %v2038_v11 = vrot.slane %v1034_v7, %v966_v6 }
 0x130   :  { %v1576_v15 = vpop.f32.mrb[31].mxu0 }
 0x131   :  { %v1577_v16 = vadd.f32 %v1576_v15, %v1575_v14  ;;  %850 = vmatmul.mubr.f32.gmra.mrb[28].mxu1 %v1574_v13 }
 0x132   :  { %855 = vmatprep.mubr.f32.mxu1 %v1723_v25 }
 0x135   :  { %v1578_v17 = vpop.f32.mrb[32].mxu0  ;;  %856 = vmatmul.mubr.f32.gmra.mrb[30].mxu1 %v1577_v16 }
 0x136   :  { %v1579_v18 = vpop.f32.mrb[33].mxu0  ;;  %861 = vmatprep.mubr.f32.mxu1 %v1723_v25 }
 0x137   :  { %v1580_v19 = vadd.f32 %v1579_v18, %v1578_v17  ;;  %v1581_v20 = vpop.f32.mrb[34].mxu0 }
 0x138   :  { %v1582_v21 = vpop.f32.mrb[35].mxu0 }
 0x139   :  { %v1583_v22 = vadd.f32 %v1582_v21, %v1581_v20  ;;  %862 = vmatmul.mubr.f32.gmra.mrb[32].mxu1 %v1580_v19 }
 0x13a   :  { %867 = vmatprep.mubr.f32.mxu1 %v1723_v25 }
 0x13d   :  { %v1584_v23 = vpop.f32.mrb[36].mxu0  ;;  %868 = vmatmul.mubr.f32.gmra.mrb[34].mxu1 %v1583_v22 }
 0x13e   :  { %v1585_v24 = vpop.f32.mrb[37].mxu0  ;;  %873 = vmatprep.mubr.f32.mxu1 %v1723_v25 }
 0x13f   :  { %v1586_v26 = vadd.f32 %v1585_v24, %v1584_v23  ;;  %v1587_v27 = vpop.f32.mrb[38].mxu0 }
 0x140   :  { %v1588_v28 = vpop.f32.mrb[39].mxu0 }
 0x141   :  { %v1589_v29 = vadd.f32 %v1588_v28, %v1587_v27  ;;  %874 = vmatmul.mubr.f32.gmra.mrb[36].mxu1 %v1586_v26 }
 0x142   :  { %879 = vmatprep.mubr.f32.mxu1 %v1723_v25 }
 0x145   :  { %v1590_v30 = vpop.f32.mrb[40].mxu0  ;;  %880 = vmatmul.mubr.f32.gmra.mrb[38].mxu1 %v1589_v29 }
 0x146   :  { %v1591_v31 = vpop.f32.mrb[41].mxu0  ;;  %885 = vmatprep.mubr.f32.mxu1 %v1723_v25 }
 0x147   :  { %v1592_v32 = vadd.f32 %v1591_v31, %v1590_v30  ;;  %v1593_v33 = vpop.f32.mrb[42].mxu0 }
 0x148   :  { %v1594_v34 = vpop.f32.mrb[43].mxu0 }
 0x149   :  { %v1595_v35 = vadd.f32 %v1594_v34, %v1593_v33  ;;  %886 = vmatmul.mubr.f32.gmra.mrb[40].mxu1 %v1592_v32 }
 0x14a   :  { %891 = vmatprep.mubr.f32.mxu1 %v1723_v25 }
 0x14d   :  { %v1596_v36 = vpop.f32.mrb[44].mxu0  ;;  %892 = vmatmul.mubr.f32.gmra.mrb[42].mxu1 %v1595_v35 }
 0x14e   :  { %v1597_v37 = vpop.f32.mrb[45].mxu0  ;;  %897 = vmatprep.mubr.f32.mxu1 %v1723_v25 }
 0x14f   :  { %v1598_v38 = vadd.f32 %v1597_v37, %v1596_v36  ;;  %v1599_v39 = vpop.f32.mrb[46].mxu0 }
 0x150   :  { %v1600_v40 = vpop.f32.mrb[47].mxu0 }
 0x151   :  { %v1601_v41 = vadd.f32 %v1600_v40, %v1599_v39  ;;  %898 = vmatmul.mubr.f32.gmra.mrb[44].mxu1 %v1598_v38 }
 0x152   :  { %903 = vmatprep.mubr.f32.mxu1 %v1723_v25 }
 0x155   :  { %v1602_v42 = vpop.f32.mrb[48].mxu0  ;;  %904 = vmatmul.mubr.f32.gmra.mrb[46].mxu1 %v1601_v41 }
 0x156   :  { %v1603_v43 = vpop.f32.mrb[49].mxu0  ;;  %909 = vmatprep.mubr.f32.mxu1 %v1723_v25 }
 0x157   :  { %v1604_v44 = vadd.f32 %v1603_v43, %v1602_v42  ;;  %v1605_v45 = vpop.f32.mrb[50].mxu0 }
 0x158   :  { %v1606_v46 = vpop.f32.mrb[51].mxu0 }
 0x159   :  { %v1607_v47 = vadd.f32 %v1606_v46, %v1605_v45  ;;  %910 = vmatmul.mubr.f32.gmra.mrb[48].mxu1 %v1604_v44 }
 0x15a   :  { %915 = vmatprep.mubr.f32.mxu1 %v1723_v25 }
 0x15d   :  { %v1608_v48 = vpop.f32.mrb[52].mxu0  ;;  %916 = vmatmul.mubr.f32.gmra.mrb[50].mxu1 %v1607_v47 }
 0x15e   :  { %v1609_v49 = vpop.f32.mrb[53].mxu0  ;;  %921 = vmatprep.mubr.f32.mxu1 %v1723_v25 }
 0x15f   :  { %v1610_v50 = vadd.f32 %v1609_v49, %v1608_v48  ;;  %v1611_v51 = vpop.f32.mrb[54].mxu0 }
 0x160   :  { %v1612_v52 = vpop.f32.mrb[55].mxu0 }
 0x161   :  { %v1613_v53 = vadd.f32 %v1612_v52, %v1611_v51  ;;  %922 = vmatmul.mubr.f32.gmra.mrb[52].mxu1 %v1610_v50 }
 0x162   :  { %927 = vmatprep.mubr.f32.mxu1 %v1723_v25 }
 0x165   :  { %v1614_v54 = vpop.f32.mrb[56].mxu0  ;;  %928 = vmatmul.mubr.f32.gmra.mrb[54].mxu1 %v1613_v53 }
 0x166   :  { %v1615_v55 = vpop.f32.mrb[57].mxu0  ;;  %933 = vmatprep.mubr.f32.mxu1 %v1723_v25 }
 0x167   :  { %v1616_v56 = vadd.f32 %v1615_v55, %v1614_v54  ;;  %v1617_v57 = vpop.f32.mrb[58].mxu0 }
 0x168   :  { %v1618_v58 = vpop.f32.mrb[59].mxu0 }
 0x169   :  { %v1619_v59 = vadd.f32 %v1618_v58, %v1617_v57  ;;  %934 = vmatmul.mubr.f32.gmra.mrb[56].mxu1 %v1616_v56 }
 0x16a   :  { %939 = vmatprep.mubr.f32.mxu1 %v1723_v25 }
 0x16d   :  { %v1620_v60 = vpop.f32.mrb[60].mxu0  ;;  %940 = vmatmul.mubr.f32.gmra.mrb[58].mxu1 %v1619_v59 }
 0x16e   :  { %v1621_v61 = vpop.f32.mrb[61].mxu0  ;;  %945 = vmatprep.mubr.f32.mxu1 %v1723_v25 }
 0x16f   :  { %v1622_v62 = vadd.f32 %v1621_v61, %v1620_v60  ;;  %v1623_v63 = vpop.f32.mrb[62].mxu0 }
 0x170   :  { %v1624_v0 = vpop.f32.mrb[63].mxu0 }
 0x171   :  { %v1625_v1 = vadd.f32 %v1624_v0, %v1623_v63  ;;  %946 = vmatmul.mubr.f32.gmra.mrb[60].mxu1 %v1622_v62 }
 0x172   :  { %951 = vmatprep.mubr.f32.mxu1 %v1723_v25 }
 0x175   :  { %952 = vmatmul.mubr.f32.gmra.mrb[62].mxu1 %v1625_v1 }
 0x1cc   :  { %v767_v25 = vpop.f32.mrb[0].mxu1 }
 0x1cd   :  { %v970_v12 = vmul.f32 %v2032_v8, %v767_v25  ;;  %v769_v13 = vpop.f32.mrb[1].mxu1 }
 0x1ce   :  { %v971_v14 = vmul.f32 %v2034_v9, %v769_v13 }
 0x1cf   :  { %v1046_v15 = vadd.f32 %v2036_v10, %v970_v12 }
 0x1d0   :  { %v1047_v16 = vadd.f32 %v2038_v11, %v971_v14  ;;  %v773_v17 = vpop.f32.mrb[2].mxu1 }
 0x1d1   :  { %v1110_v18 = vmax.f32 %v1046_v15, 0.0  ;;  %v972_v19 = vmul.f32 %v2032_v8, %v773_v17  ;;  %v775_v20 = vpop.f32.mrb[3].mxu1 }
 0x1d2   :  { %v1111_v21 = vmax.f32 %v1047_v16, 0.0  ;;  %v973_v22 = vmul.f32 %v2034_v9, %v775_v20 }
 0x1d3   :  { %v1048_v23 = vadd.f32 %v2036_v10, %v972_v19 }
 0x1d4   :  { %v1482_v24 = vpack.c.bf16 %v1111_v21, %v1110_v18  ;;  %v1049_v26 = vadd.f32 %v2038_v11, %v973_v22  ;;  %v779_v27 = vpop.f32.mrb[4].mxu1 }
 0x1d5   :  { %v1112_v28 = vmax.f32 %v1048_v23, 0.0  ;;  %v974_v29 = vmul.f32 %v2032_v8, %v779_v27  ;;  %v781_v30 = vpop.f32.mrb[5].mxu1 }
 0x1d6   :  { %1366 = vst [vmem:[%s2269_s5] sm:$0xff] %v1482_v24  ;;  %v1113_v31 = vmax.f32 %v1049_v26, 0.0  ;;  %v975_v32 = vmul.f32 %v2034_v9, %v781_v30 }
 0x1d7   :  { %v1050_v33 = vadd.f32 %v2036_v10, %v974_v29 }
 0x1d8   :  { %v1483_v34 = vpack.c.bf16 %v1113_v31, %v1112_v28  ;;  %v1051_v35 = vadd.f32 %v2038_v11, %v975_v32  ;;  %v785_v36 = vpop.f32.mrb[6].mxu1 }
 0x1d9   :  { %v1114_v37 = vmax.f32 %v1050_v33, 0.0  ;;  %v976_v38 = vmul.f32 %v2032_v8, %v785_v36  ;;  %v787_v39 = vpop.f32.mrb[7].mxu1 }
 0x1da   :  { %1367 = vst [vmem:[%s2269_s5 + $0x8] sm:$0xff] %v1483_v34  ;;  %v1115_v40 = vmax.f32 %v1051_v35, 0.0  ;;  %v977_v41 = vmul.f32 %v2034_v9, %v787_v39 }
 0x1db   :  { %v1052_v42 = vadd.f32 %v2036_v10, %v976_v38 }
 0x1dc   :  { %v1484_v43 = vpack.c.bf16 %v1115_v40, %v1114_v37  ;;  %v1053_v44 = vadd.f32 %v2038_v11, %v977_v41  ;;  %v791_v45 = vpop.f32.mrb[8].mxu1 }
 0x1dd   :  { %v1116_v46 = vmax.f32 %v1052_v42, 0.0  ;;  %v978_v47 = vmul.f32 %v2032_v8, %v791_v45  ;;  %v793_v48 = vpop.f32.mrb[9].mxu1 }
 0x1de   :  { %1368 = vst [vmem:[%s2269_s5 + $0x10] sm:$0xff] %v1484_v43  ;;  %v1117_v49 = vmax.f32 %v1053_v44, 0.0  ;;  %v979_v50 = vmul.f32 %v2034_v9, %v793_v48 }
 0x1df   :  { %v1054_v51 = vadd.f32 %v2036_v10, %v978_v47 }
 0x1e0   :  { %v1485_v52 = vpack.c.bf16 %v1117_v49, %v1116_v46  ;;  %v1055_v53 = vadd.f32 %v2038_v11, %v979_v50  ;;  %v797_v54 = vpop.f32.mrb[10].mxu1 }
 0x1e1   :  { %v1118_v55 = vmax.f32 %v1054_v51, 0.0  ;;  %v980_v56 = vmul.f32 %v2032_v8, %v797_v54  ;;  %v799_v57 = vpop.f32.mrb[11].mxu1 }
 0x1e2   :  { %1369 = vst [vmem:[%s2269_s5 + $0x18] sm:$0xff] %v1485_v52  ;;  %v1119_v58 = vmax.f32 %v1055_v53, 0.0  ;;  %v981_v59 = vmul.f32 %v2034_v9, %v799_v57 }
 0x1e3   :  { %v1056_v60 = vadd.f32 %v2036_v10, %v980_v56 }
 0x1e4   :  { %v1486_v61 = vpack.c.bf16 %v1119_v58, %v1118_v55  ;;  %v1057_v62 = vadd.f32 %v2038_v11, %v981_v59  ;;  %v803_v63 = vpop.f32.mrb[12].mxu1 }
 0x1e5   :  { %v1120_v0 = vmax.f32 %v1056_v60, 0.0  ;;  %v982_v1 = vmul.f32 %v2032_v8, %v803_v63  ;;  %v805_v2 = vpop.f32.mrb[13].mxu1 }
 0x1e6   :  { %1370 = vst [vmem:[%s2269_s5 + $0x20] sm:$0xff] %v1486_v61  ;;  %v1121_v3 = vmax.f32 %v1057_v62, 0.0  ;;  %v983_v4 = vmul.f32 %v2034_v9, %v805_v2 }
 0x1e7   :  { %v1058_v5 = vadd.f32 %v2036_v10, %v982_v1 }
 0x1e8   :  { %v1487_v6 = vpack.c.bf16 %v1121_v3, %v1120_v0  ;;  %v1059_v7 = vadd.f32 %v2038_v11, %v983_v4  ;;  %v809_v25 = vpop.f32.mrb[14].mxu1 }
 0x1e9   :  { %v1122_v12 = vmax.f32 %v1058_v5, 0.0  ;;  %v984_v13 = vmul.f32 %v2032_v8, %v809_v25  ;;  %v811_v14 = vpop.f32.mrb[15].mxu1 }
 0x1ea   :  { %1371 = vst [vmem:[%s2269_s5 + $0x28] sm:$0xff] %v1487_v6  ;;  %v1123_v15 = vmax.f32 %v1059_v7, 0.0  ;;  %v985_v16 = vmul.f32 %v2034_v9, %v811_v14 }
 0x1eb   :  { %v1060_v17 = vadd.f32 %v2036_v10, %v984_v13 }
 0x1ec   :  { %v1488_v18 = vpack.c.bf16 %v1123_v15, %v1122_v12  ;;  %v1061_v19 = vadd.f32 %v2038_v11, %v985_v16  ;;  %v815_v20 = vpop.f32.mrb[16].mxu1 }
 0x1ed   :  { %v1124_v21 = vmax.f32 %v1060_v17, 0.0  ;;  %v986_v22 = vmul.f32 %v2032_v8, %v815_v20  ;;  %v817_v23 = vpop.f32.mrb[17].mxu1 }
 0x1ee   :  { %1372 = vst [vmem:[%s2269_s5 + $0x30] sm:$0xff] %v1488_v18  ;;  %v1125_v24 = vmax.f32 %v1061_v19, 0.0  ;;  %v987_v26 = vmul.f32 %v2034_v9, %v817_v23 }
 0x1ef   :  { %v1062_v27 = vadd.f32 %v2036_v10, %v986_v22 }
 0x1f0   :  { %v1489_v28 = vpack.c.bf16 %v1125_v24, %v1124_v21  ;;  %v1063_v29 = vadd.f32 %v2038_v11, %v987_v26  ;;  %v821_v30 = vpop.f32.mrb[18].mxu1 }
 0x1f1   :  { %v1126_v31 = vmax.f32 %v1062_v27, 0.0  ;;  %v988_v32 = vmul.f32 %v2032_v8, %v821_v30  ;;  %v823_v33 = vpop.f32.mrb[19].mxu1 }
 0x1f2   :  { %1373 = vst [vmem:[%s2269_s5 + $0x38] sm:$0xff] %v1489_v28  ;;  %v1127_v34 = vmax.f32 %v1063_v29, 0.0  ;;  %v989_v35 = vmul.f32 %v2034_v9, %v823_v33 }
 0x1f3   :  { %v1064_v36 = vadd.f32 %v2036_v10, %v988_v32 }
 0x1f4   :  { %v1490_v37 = vpack.c.bf16 %v1127_v34, %v1126_v31  ;;  %v1065_v38 = vadd.f32 %v2038_v11, %v989_v35  ;;  %v827_v39 = vpop.f32.mrb[20].mxu1 }
 0x1f5   :  { %v1128_v40 = vmax.f32 %v1064_v36, 0.0  ;;  %v990_v41 = vmul.f32 %v2032_v8, %v827_v39  ;;  %v829_v42 = vpop.f32.mrb[21].mxu1 }
 0x1f6   :  { %1374 = vst [vmem:[%s2269_s5 + $0x40] sm:$0xff] %v1490_v37  ;;  %v1129_v43 = vmax.f32 %v1065_v38, 0.0  ;;  %v991_v44 = vmul.f32 %v2034_v9, %v829_v42 }
 0x1f7   :  { %v1066_v45 = vadd.f32 %v2036_v10, %v990_v41 }
 0x1f8   :  { %v1491_v46 = vpack.c.bf16 %v1129_v43, %v1128_v40  ;;  %v1067_v47 = vadd.f32 %v2038_v11, %v991_v44  ;;  %v833_v48 = vpop.f32.mrb[22].mxu1 }
 0x1f9   :  { %v1130_v49 = vmax.f32 %v1066_v45, 0.0  ;;  %v992_v50 = vmul.f32 %v2032_v8, %v833_v48  ;;  %v835_v51 = vpop.f32.mrb[23].mxu1 }
 0x1fa   :  { %1375 = vst [vmem:[%s2269_s5 + $0x48] sm:$0xff] %v1491_v46  ;;  %v1131_v52 = vmax.f32 %v1067_v47, 0.0  ;;  %v993_v53 = vmul.f32 %v2034_v9, %v835_v51 }
 0x1fb   :  { %v1068_v54 = vadd.f32 %v2036_v10, %v992_v50 }
 0x1fc   :  { %v1492_v55 = vpack.c.bf16 %v1131_v52, %v1130_v49  ;;  %v1069_v56 = vadd.f32 %v2038_v11, %v993_v53  ;;  %v839_v57 = vpop.f32.mrb[24].mxu1 }
 0x1fd   :  { %v1132_v58 = vmax.f32 %v1068_v54, 0.0  ;;  %v994_v59 = vmul.f32 %v2032_v8, %v839_v57  ;;  %v841_v60 = vpop.f32.mrb[25].mxu1 }
 0x1fe   :  { %1376 = vst [vmem:[%s2269_s5 + $0x50] sm:$0xff] %v1492_v55  ;;  %v1133_v61 = vmax.f32 %v1069_v56, 0.0  ;;  %v995_v62 = vmul.f32 %v2034_v9, %v841_v60 }
 0x1ff   :  { %v1070_v63 = vadd.f32 %v2036_v10, %v994_v59 }
 0x200   :  { %v1493_v0 = vpack.c.bf16 %v1133_v61, %v1132_v58  ;;  %v1071_v1 = vadd.f32 %v2038_v11, %v995_v62  ;;  %v845_v2 = vpop.f32.mrb[26].mxu1 }
 0x201   :  { %v1134_v3 = vmax.f32 %v1070_v63, 0.0  ;;  %v996_v4 = vmul.f32 %v2032_v8, %v845_v2  ;;  %v847_v5 = vpop.f32.mrb[27].mxu1 }
 0x202   :  { %1377 = vst [vmem:[%s2269_s5 + $0x58] sm:$0xff] %v1493_v0  ;;  %v1135_v6 = vmax.f32 %v1071_v1, 0.0  ;;  %v997_v7 = vmul.f32 %v2034_v9, %v847_v5 }
 0x203   :  { %v1072_v25 = vadd.f32 %v2036_v10, %v996_v4 }
 0x204   :  { %v1494_v12 = vpack.c.bf16 %v1135_v6, %v1134_v3  ;;  %v1073_v13 = vadd.f32 %v2038_v11, %v997_v7  ;;  %v851_v14 = vpop.f32.mrb[28].mxu1 }
 0x205   :  { %v1136_v15 = vmax.f32 %v1072_v25, 0.0  ;;  %v998_v16 = vmul.f32 %v2032_v8, %v851_v14  ;;  %v853_v17 = vpop.f32.mrb[29].mxu1 }
 0x206   :  { %1378 = vst [vmem:[%s2269_s5 + $0x60] sm:$0xff] %v1494_v12  ;;  %v1137_v18 = vmax.f32 %v1073_v13, 0.0  ;;  %v999_v19 = vmul.f32 %v2034_v9, %v853_v17 }
 0x207   :  { %v1074_v20 = vadd.f32 %v2036_v10, %v998_v16 }
 0x208   :  { %v1495_v21 = vpack.c.bf16 %v1137_v18, %v1136_v15  ;;  %v1075_v22 = vadd.f32 %v2038_v11, %v999_v19  ;;  %v857_v23 = vpop.f32.mrb[30].mxu1 }
 0x209   :  { %v1138_v24 = vmax.f32 %v1074_v20, 0.0  ;;  %v1000_v26 = vmul.f32 %v2032_v8, %v857_v23  ;;  %v859_v27 = vpop.f32.mrb[31].mxu1 }
 0x20a   :  { %1379 = vst [vmem:[%s2269_s5 + $0x68] sm:$0xff] %v1495_v21  ;;  %v1139_v28 = vmax.f32 %v1075_v22, 0.0  ;;  %v1001_v29 = vmul.f32 %v2034_v9, %v859_v27 }
 0x20b   :  { %v1076_v30 = vadd.f32 %v2036_v10, %v1000_v26 }
 0x20c   :  { %v1496_v31 = vpack.c.bf16 %v1139_v28, %v1138_v24  ;;  %v1077_v32 = vadd.f32 %v2038_v11, %v1001_v29  ;;  %v863_v33 = vpop.f32.mrb[32].mxu1 }
 0x20d   :  { %v1140_v34 = vmax.f32 %v1076_v30, 0.0  ;;  %v1002_v35 = vmul.f32 %v2032_v8, %v863_v33  ;;  %v865_v36 = vpop.f32.mrb[33].mxu1 }
 0x20e   :  { %1380 = vst [vmem:[%s2269_s5 + $0x70] sm:$0xff] %v1496_v31  ;;  %v1141_v37 = vmax.f32 %v1077_v32, 0.0  ;;  %v1003_v38 = vmul.f32 %v2034_v9, %v865_v36 }
 0x20f   :  { %v1078_v39 = vadd.f32 %v2036_v10, %v1002_v35 }
 0x210   :  { %v1497_v40 = vpack.c.bf16 %v1141_v37, %v1140_v34  ;;  %v1079_v41 = vadd.f32 %v2038_v11, %v1003_v38  ;;  %v869_v42 = vpop.f32.mrb[34].mxu1 }
 0x211   :  { %v1142_v43 = vmax.f32 %v1078_v39, 0.0  ;;  %v1004_v44 = vmul.f32 %v2032_v8, %v869_v42  ;;  %v871_v45 = vpop.f32.mrb[35].mxu1 }
 0x212   :  { %1381 = vst [vmem:[%s2269_s5 + $0x78] sm:$0xff] %v1497_v40  ;;  %v1143_v46 = vmax.f32 %v1079_v41, 0.0  ;;  %v1005_v47 = vmul.f32 %v2034_v9, %v871_v45 }
 0x213   :  { %v1080_v48 = vadd.f32 %v2036_v10, %v1004_v44 }
 0x214   :  { %v1498_v49 = vpack.c.bf16 %v1143_v46, %v1142_v43  ;;  %v1081_v50 = vadd.f32 %v2038_v11, %v1005_v47  ;;  %v875_v51 = vpop.f32.mrb[36].mxu1 }
 0x215   :  { %v1144_v52 = vmax.f32 %v1080_v48, 0.0  ;;  %v1006_v53 = vmul.f32 %v2032_v8, %v875_v51  ;;  %v877_v54 = vpop.f32.mrb[37].mxu1 }
 0x216   :  { %1382 = vst [vmem:[%s2269_s5 + $0x80] sm:$0xff] %v1498_v49  ;;  %v1145_v55 = vmax.f32 %v1081_v50, 0.0  ;;  %v1007_v56 = vmul.f32 %v2034_v9, %v877_v54 }
 0x217   :  { %v1082_v57 = vadd.f32 %v2036_v10, %v1006_v53 }
 0x218   :  { %v1499_v58 = vpack.c.bf16 %v1145_v55, %v1144_v52  ;;  %v1083_v59 = vadd.f32 %v2038_v11, %v1007_v56  ;;  %v881_v60 = vpop.f32.mrb[38].mxu1 }
 0x219   :  { %v1146_v61 = vmax.f32 %v1082_v57, 0.0  ;;  %v1008_v62 = vmul.f32 %v2032_v8, %v881_v60  ;;  %v883_v63 = vpop.f32.mrb[39].mxu1 }
 0x21a   :  { %1383 = vst [vmem:[%s2269_s5 + $0x88] sm:$0xff] %v1499_v58  ;;  %v1147_v0 = vmax.f32 %v1083_v59, 0.0  ;;  %v1009_v1 = vmul.f32 %v2034_v9, %v883_v63 }
 0x21b   :  { %v1084_v2 = vadd.f32 %v2036_v10, %v1008_v62 }
 0x21c   :  { %v1500_v3 = vpack.c.bf16 %v1147_v0, %v1146_v61  ;;  %v1085_v4 = vadd.f32 %v2038_v11, %v1009_v1  ;;  %v887_v5 = vpop.f32.mrb[40].mxu1 }
 0x21d   :  { %v1148_v6 = vmax.f32 %v1084_v2, 0.0  ;;  %v1010_v7 = vmul.f32 %v2032_v8, %v887_v5  ;;  %v889_v25 = vpop.f32.mrb[41].mxu1 }
 0x21e   :  { %1384 = vst [vmem:[%s2269_s5 + $0x90] sm:$0xff] %v1500_v3  ;;  %v1149_v12 = vmax.f32 %v1085_v4, 0.0  ;;  %v1011_v13 = vmul.f32 %v2034_v9, %v889_v25 }
 0x21f   :  { %v1086_v14 = vadd.f32 %v2036_v10, %v1010_v7 }
 0x220   :  { %v1501_v15 = vpack.c.bf16 %v1149_v12, %v1148_v6  ;;  %v1087_v16 = vadd.f32 %v2038_v11, %v1011_v13  ;;  %v893_v17 = vpop.f32.mrb[42].mxu1 }
 0x221   :  { %v1150_v18 = vmax.f32 %v1086_v14, 0.0  ;;  %v1012_v19 = vmul.f32 %v2032_v8, %v893_v17  ;;  %v895_v20 = vpop.f32.mrb[43].mxu1 }
 0x222   :  { %1385 = vst [vmem:[%s2269_s5 + $0x98] sm:$0xff] %v1501_v15  ;;  %v1151_v21 = vmax.f32 %v1087_v16, 0.0  ;;  %v1013_v22 = vmul.f32 %v2034_v9, %v895_v20 }
 0x223   :  { %v1088_v23 = vadd.f32 %v2036_v10, %v1012_v19 }
 0x224   :  { %v1502_v24 = vpack.c.bf16 %v1151_v21, %v1150_v18  ;;  %v1089_v26 = vadd.f32 %v2038_v11, %v1013_v22  ;;  %v899_v27 = vpop.f32.mrb[44].mxu1 }
 0x225   :  { %v1152_v28 = vmax.f32 %v1088_v23, 0.0  ;;  %v1014_v29 = vmul.f32 %v2032_v8, %v899_v27  ;;  %v901_v30 = vpop.f32.mrb[45].mxu1 }
 0x226   :  { %1386 = vst [vmem:[%s2269_s5 + $0xa0] sm:$0xff] %v1502_v24  ;;  %v1153_v31 = vmax.f32 %v1089_v26, 0.0  ;;  %v1015_v32 = vmul.f32 %v2034_v9, %v901_v30 }
 0x227   :  { %v1090_v33 = vadd.f32 %v2036_v10, %v1014_v29 }
 0x228   :  { %v1503_v34 = vpack.c.bf16 %v1153_v31, %v1152_v28  ;;  %v1091_v35 = vadd.f32 %v2038_v11, %v1015_v32  ;;  %v905_v36 = vpop.f32.mrb[46].mxu1 }
 0x229   :  { %v1154_v37 = vmax.f32 %v1090_v33, 0.0  ;;  %v1016_v38 = vmul.f32 %v2032_v8, %v905_v36  ;;  %v907_v39 = vpop.f32.mrb[47].mxu1 }
 0x22a   :  { %1387 = vst [vmem:[%s2269_s5 + $0xa8] sm:$0xff] %v1503_v34  ;;  %v1155_v40 = vmax.f32 %v1091_v35, 0.0  ;;  %v1017_v41 = vmul.f32 %v2034_v9, %v907_v39 }
 0x22b   :  { %v1092_v42 = vadd.f32 %v2036_v10, %v1016_v38 }
 0x22c   :  { %v1504_v43 = vpack.c.bf16 %v1155_v40, %v1154_v37  ;;  %v1093_v44 = vadd.f32 %v2038_v11, %v1017_v41  ;;  %v911_v45 = vpop.f32.mrb[48].mxu1 }
 0x22d   :  { %v1156_v46 = vmax.f32 %v1092_v42, 0.0  ;;  %v1018_v47 = vmul.f32 %v2032_v8, %v911_v45  ;;  %v913_v48 = vpop.f32.mrb[49].mxu1 }
 0x22e   :  { %1388 = vst [vmem:[%s2269_s5 + $0xb0] sm:$0xff] %v1504_v43  ;;  %v1157_v49 = vmax.f32 %v1093_v44, 0.0  ;;  %v1019_v50 = vmul.f32 %v2034_v9, %v913_v48 }
 0x22f   :  { %v1094_v51 = vadd.f32 %v2036_v10, %v1018_v47 }
 0x230   :  { %v1505_v52 = vpack.c.bf16 %v1157_v49, %v1156_v46  ;;  %v1095_v53 = vadd.f32 %v2038_v11, %v1019_v50  ;;  %v917_v54 = vpop.f32.mrb[50].mxu1 }
 0x231   :  { %v1158_v55 = vmax.f32 %v1094_v51, 0.0  ;;  %v1020_v56 = vmul.f32 %v2032_v8, %v917_v54  ;;  %v919_v57 = vpop.f32.mrb[51].mxu1 }
 0x232   :  { %1389 = vst [vmem:[%s2269_s5 + $0xb8] sm:$0xff] %v1505_v52  ;;  %v1159_v58 = vmax.f32 %v1095_v53, 0.0  ;;  %v1021_v59 = vmul.f32 %v2034_v9, %v919_v57 }
 0x233   :  { %v1096_v60 = vadd.f32 %v2036_v10, %v1020_v56 }
 0x234   :  { %v1506_v61 = vpack.c.bf16 %v1159_v58, %v1158_v55  ;;  %v1097_v62 = vadd.f32 %v2038_v11, %v1021_v59  ;;  %v923_v63 = vpop.f32.mrb[52].mxu1 }
 0x235   :  { %v1160_v0 = vmax.f32 %v1096_v60, 0.0  ;;  %v1022_v1 = vmul.f32 %v2032_v8, %v923_v63  ;;  %v925_v2 = vpop.f32.mrb[53].mxu1 }
 0x236   :  { %1390 = vst [vmem:[%s2269_s5 + $0xc0] sm:$0xff] %v1506_v61  ;;  %v1161_v3 = vmax.f32 %v1097_v62, 0.0  ;;  %v1023_v4 = vmul.f32 %v2034_v9, %v925_v2 }
 0x237   :  { %v1098_v5 = vadd.f32 %v2036_v10, %v1022_v1 }
 0x238   :  { %v1507_v6 = vpack.c.bf16 %v1161_v3, %v1160_v0  ;;  %v1099_v7 = vadd.f32 %v2038_v11, %v1023_v4  ;;  %v929_v25 = vpop.f32.mrb[54].mxu1 }
 0x239   :  { %v1162_v12 = vmax.f32 %v1098_v5, 0.0  ;;  %v1024_v13 = vmul.f32 %v2032_v8, %v929_v25  ;;  %v931_v14 = vpop.f32.mrb[55].mxu1 }
 0x23a   :  { %1391 = vst [vmem:[%s2269_s5 + $0xc8] sm:$0xff] %v1507_v6  ;;  %v1163_v15 = vmax.f32 %v1099_v7, 0.0  ;;  %v1025_v16 = vmul.f32 %v2034_v9, %v931_v14 }
 0x23b   :  { %v1100_v17 = vadd.f32 %v2036_v10, %v1024_v13 }
 0x23c   :  { %v1508_v18 = vpack.c.bf16 %v1163_v15, %v1162_v12  ;;  %v1101_v19 = vadd.f32 %v2038_v11, %v1025_v16  ;;  %v935_v20 = vpop.f32.mrb[56].mxu1 }
 0x23d   :  { %v1164_v21 = vmax.f32 %v1100_v17, 0.0  ;;  %v1026_v22 = vmul.f32 %v2032_v8, %v935_v20  ;;  %v937_v23 = vpop.f32.mrb[57].mxu1 }
 0x23e   :  { %1392 = vst [vmem:[%s2269_s5 + $0xd0] sm:$0xff] %v1508_v18  ;;  %v1165_v24 = vmax.f32 %v1101_v19, 0.0  ;;  %v1027_v26 = vmul.f32 %v2034_v9, %v937_v23 }
 0x23f   :  { %v1102_v27 = vadd.f32 %v2036_v10, %v1026_v22 }
 0x240   :  { %v1509_v28 = vpack.c.bf16 %v1165_v24, %v1164_v21  ;;  %v1103_v29 = vadd.f32 %v2038_v11, %v1027_v26  ;;  %v941_v30 = vpop.f32.mrb[58].mxu1 }
 0x241   :  { %v1166_v31 = vmax.f32 %v1102_v27, 0.0  ;;  %v1028_v32 = vmul.f32 %v2032_v8, %v941_v30  ;;  %v943_v33 = vpop.f32.mrb[59].mxu1 }
 0x242   :  { %1393 = vst [vmem:[%s2269_s5 + $0xd8] sm:$0xff] %v1509_v28  ;;  %v1167_v34 = vmax.f32 %v1103_v29, 0.0  ;;  %v1029_v35 = vmul.f32 %v2034_v9, %v943_v33 }
 0x243   :  { %v1104_v36 = vadd.f32 %v2036_v10, %v1028_v32 }
 0x244   :  { %v1510_v37 = vpack.c.bf16 %v1167_v34, %v1166_v31  ;;  %v1105_v38 = vadd.f32 %v2038_v11, %v1029_v35  ;;  %v947_v39 = vpop.f32.mrb[60].mxu1 }
 0x245   :  { %v1168_v40 = vmax.f32 %v1104_v36, 0.0  ;;  %v1030_v41 = vmul.f32 %v2032_v8, %v947_v39  ;;  %v949_v42 = vpop.f32.mrb[61].mxu1 }
 0x246   :  { %1394 = vst [vmem:[%s2269_s5 + $0xe0] sm:$0xff] %v1510_v37  ;;  %v1169_v43 = vmax.f32 %v1105_v38, 0.0  ;;  %v1031_v44 = vmul.f32 %v2034_v9, %v949_v42 }
 0x247   :  { %v1106_v45 = vadd.f32 %v2036_v10, %v1030_v41 }
 0x248   :  { %v1511_v46 = vpack.c.bf16 %v1169_v43, %v1168_v40  ;;  %v1107_v47 = vadd.f32 %v2038_v11, %v1031_v44  ;;  %v953_v48 = vpop.f32.mrb[62].mxu1 }
 0x249   :  { %v1170_v49 = vmax.f32 %v1106_v45, 0.0  ;;  %v1032_v50 = vmul.f32 %v2032_v8, %v953_v48  ;;  %v955_v51 = vpop.f32.mrb[63].mxu1 }
 0x24a   :  { %1395 = vst [vmem:[%s2269_s5 + $0xe8] sm:$0xff] %v1511_v46  ;;  %v1171_v52 = vmax.f32 %v1107_v47, 0.0  ;;  %v1033_v53 = vmul.f32 %v2034_v9, %v955_v51 }
 0x24b   :  { %v1108_v54 = vadd.f32 %v2036_v10, %v1032_v50 }
 0x24c   :  { %v1512_v55 = vpack.c.bf16 %v1171_v52, %v1170_v49  ;;  %v1109_v56 = vadd.f32 %v2038_v11, %v1033_v53 }
 0x24d   :  { %v1172_v57 = vmax.f32 %v1108_v54, 0.0 }
 0x24e   :  { %1396 = vst [vmem:[%s2269_s5 + $0xf0] sm:$0xff] %v1512_v55  ;;  %v1173_v58 = vmax.f32 %v1109_v56, 0.0 }
 0x250   :  { %v1513_v8 = vpack.c.bf16 %v1173_v58, %v1172_v57 }
 0x252   :  { %1397 = vst [vmem:[%s2269_s5 + $0xf8] sm:$0xff] %v1513_v8 }

// kernel: gnn_forward.7
= control target key start
LH: loop header
LB: loop body
LE: loop exit
PB: predicated region body
PF: predicated region fallthrough
CT: control target
= control target key end

     0   :  { %s1361_s1 = inlined_call_operand.vmem [shape: bf16[256,128], index: 1, kind: input, shape index: {}]   ;;  %s1362_s0 = inlined_call_operand.vmem [shape: bf16[256,256], index: 0, kind: input, shape index: {}]   ;;  %s1363_s2 = inlined_call_operand.vmem [shape: f32[1,128], index: 2, kind: input, shape index: {}]   ;;  %s1364_s3 = inlined_call_operand.vmem [shape: f32[1,128], index: 3, kind: input, shape index: {}]   ;;  %s1365_s4 = inlined_call_operand.vmem [shape: f32[256,128], index: 4, kind: output, shape index: {}]  }
   0x1   :  { %v958_v0 = vld [vmem:[%s1361_s1 + $0x40] sm:$0xff]   ;;  %v960_v2 = vld [vmem:[%s1361_s1 + $0x48] sm:$0xff]   ;;  %v962_v4 = vld [vmem:[%s1361_s1 + $0x50] sm:$0xff]  }
   0x2   :  { %v959_v1 = vld [vmem:[%s1361_s1] sm:$0xff]   ;;  %830 = vmatprep.subr.bf16.mxu0 %v958_v0  ;;  %942 = vmatprep.subr.bf16.mxu1 %v958_v0  ;;  %v961_v3 = vld [vmem:[%s1361_s1 + $0x8] sm:$0xff]   ;;  %v963_v5 = vld [vmem:[%s1361_s1 + $0x10] sm:$0xff]  }
   0x3   :  { %831 = vmatpush3.bf16.msra.mxu0 %v959_v1  ;;  %950 = vmatpush3.bf16.msra.mxu1 %v959_v1  ;;  %v964_v6 = vld [vmem:[%s1361_s1 + $0x58] sm:$0xff]   ;;  %v966_v8 = vld [vmem:[%s1361_s1 + $0x60] sm:$0xff]   ;;  %v968_v10 = vld [vmem:[%s1361_s1 + $0x68] sm:$0xff]  }
   0x4   :  { %832 = vmatprep.subr.bf16.mxu0 %v960_v2  ;;  %943 = vmatprep.subr.bf16.mxu1 %v960_v2  ;;  %v965_v7 = vld [vmem:[%s1361_s1 + $0x18] sm:$0xff]   ;;  %v967_v9 = vld [vmem:[%s1361_s1 + $0x20] sm:$0xff]   ;;  %v969_v13 = vld [vmem:[%s1361_s1 + $0x28] sm:$0xff]  }
   0x5   :  { %v976_v11 = vld [vmem:[%s1362_s0 + $0x4] ss:$8 sps:$4 sm:$0xff]   ;;  %v970_v14 = vld [vmem:[%s1361_s1 + $0x70] sm:$0xff]   ;;  %v972_v16 = vld [vmem:[%s1361_s1 + $0x78] sm:$0xff]  }
   0x6   :  { %v979_v12 = vld [vmem:[%s1362_s0 + $0x84] ss:$8 sps:$4 sm:$0xff]   ;;  %438 = vmatprep.mubr.bf16.mxu0 %v976_v11  ;;  %v971_v15 = vld [vmem:[%s1361_s1 + $0x30] sm:$0xff]   ;;  %v973_v17 = vld [vmem:[%s1361_s1 + $0x38] sm:$0xff]  }
   0x7   :  { %833 = vmatpush3.bf16.msra.mxu0 %v961_v3  ;;  %951 = vmatpush3.bf16.msra.mxu1 %v961_v3  ;;  %v974_v18 = vld [vmem:[%s1362_s0] ss:$8 sps:$4 sm:$0xff]   ;;  %v980_v20 = vld [vmem:[%s1362_s0 + $0x14] ss:$8 sps:$4 sm:$0xff]   ;;  %v984_v22 = vld [vmem:[%s1362_s0 + $0x10] ss:$8 sps:$4 sm:$0xff]  }
   0x8   :  { %834 = vmatprep.subr.bf16.mxu0 %v962_v4  ;;  %944 = vmatprep.subr.bf16.mxu1 %v962_v4  ;;  %v977_v19 = vld [vmem:[%s1362_s0 + $0x80] ss:$8 sps:$4 sm:$0xff]   ;;  %v982_v21 = vld [vmem:[%s1362_s0 + $0x94] ss:$8 sps:$4 sm:$0xff]   ;;  %v985_v23 = vld [vmem:[%s1362_s0 + $0x90] ss:$8 sps:$4 sm:$0xff]  }
   0x9   :  { %502 = vmatprep.mubr.bf16.mxu1 %v979_v12  ;;  %v986_v24 = vld [vmem:[%s1362_s0 + $0x24] ss:$8 sps:$4 sm:$0xff]   ;;  %v990_v26 = vld [vmem:[%s1362_s0 + $0x20] ss:$8 sps:$4 sm:$0xff]   ;;  %v992_v28 = vld [vmem:[%s1362_s0 + $0x34] ss:$8 sps:$4 sm:$0xff]  }
   0xa   :  { %v988_v25 = vld [vmem:[%s1362_s0 + $0xa4] ss:$8 sps:$4 sm:$0xff]   ;;  %v991_v27 = vld [vmem:[%s1362_s0 + $0xa0] ss:$8 sps:$4 sm:$0xff]   ;;  %v994_v29 = vld [vmem:[%s1362_s0 + $0xb4] ss:$8 sps:$4 sm:$0xff]  }
   0xb   :  { %835 = vmatpush3.bf16.msra.mxu0 %v963_v5  ;;  %952 = vmatpush3.bf16.msra.mxu1 %v963_v5  ;;  %v996_v30 = vld [vmem:[%s1362_s0 + $0x30] ss:$8 sps:$4 sm:$0xff]   ;;  %v998_v32 = vld [vmem:[%s1362_s0 + $0x44] ss:$8 sps:$4 sm:$0xff]   ;;  %v1002_v34 = vld [vmem:[%s1362_s0 + $0x40] ss:$8 sps:$4 sm:$0xff]  }
   0xc   :  { %836 = vmatprep.subr.bf16.mxu0 %v964_v6  ;;  %945 = vmatprep.subr.bf16.mxu1 %v964_v6  ;;  %v997_v31 = vld [vmem:[%s1362_s0 + $0xb0] ss:$8 sps:$4 sm:$0xff]   ;;  %v1000_v33 = vld [vmem:[%s1362_s0 + $0xc4] ss:$8 sps:$4 sm:$0xff]   ;;  %v1003_v35 = vld [vmem:[%s1362_s0 + $0xc0] ss:$8 sps:$4 sm:$0xff]  }
   0xd   :  { %v1004_v36 = vld [vmem:[%s1362_s0 + $0x54] ss:$8 sps:$4 sm:$0xff]   ;;  %v1008_v38 = vld [vmem:[%s1362_s0 + $0x50] ss:$8 sps:$4 sm:$0xff]   ;;  %v1010_v40 = vld [vmem:[%s1362_s0 + $0x64] ss:$8 sps:$4 sm:$0xff]  }
   0xe   :  { %v1006_v37 = vld [vmem:[%s1362_s0 + $0xd4] ss:$8 sps:$4 sm:$0xff]   ;;  %v1009_v39 = vld [vmem:[%s1362_s0 + $0xd0] ss:$8 sps:$4 sm:$0xff]   ;;  %v1012_v41 = vld [vmem:[%s1362_s0 + $0xe4] ss:$8 sps:$4 sm:$0xff]  }
   0xf   :  { %837 = vmatpush3.bf16.msra.mxu0 %v965_v7  ;;  %953 = vmatpush3.bf16.msra.mxu1 %v965_v7  ;;  %v1014_v42 = vld [vmem:[%s1362_s0 + $0x60] ss:$8 sps:$4 sm:$0xff]   ;;  %v1016_v44 = vld [vmem:[%s1362_s0 + $0x74] ss:$8 sps:$4 sm:$0xff]   ;;  %v1020_v46 = vld [vmem:[%s1362_s0 + $0x70] ss:$8 sps:$4 sm:$0xff]  }
  0x10   :  { %838 = vmatprep.subr.bf16.mxu0 %v966_v8  ;;  %946 = vmatprep.subr.bf16.mxu1 %v966_v8  ;;  %v1015_v43 = vld [vmem:[%s1362_s0 + $0xe0] ss:$8 sps:$4 sm:$0xff]   ;;  %v1018_v45 = vld [vmem:[%s1362_s0 + $0xf4] ss:$8 sps:$4 sm:$0xff]   ;;  %v1021_v47 = vld [vmem:[%s1362_s0 + $0xf0] ss:$8 sps:$4 sm:$0xff]  }
  0x11   :  { %v1194_v51 = vld [vmem:[%s1363_s2] ss:$0 sm:$0xff] }
  0x12   :  { %v1199_v57 = vld [vmem:[%s1364_s3] ss:$0 sm:$0xff] }
  0x13   :  { %839 = vmatpush3.bf16.msra.mxu0 %v967_v9  ;;  %954 = vmatpush3.bf16.msra.mxu1 %v967_v9 }
  0x14   :  { %840 = vmatprep.subr.bf16.mxu0 %v968_v10  ;;  %947 = vmatprep.subr.bf16.mxu1 %v968_v10 }
  0x17   :  { %841 = vmatpush3.bf16.msra.mxu0 %v969_v13  ;;  %955 = vmatpush3.bf16.msra.mxu1 %v969_v13 }
  0x18   :  { %842 = vmatprep.subr.bf16.mxu0 %v970_v14  ;;  %948 = vmatprep.subr.bf16.mxu1 %v970_v14 }
  0x1b   :  { %843 = vmatpush3.bf16.msra.mxu0 %v971_v15  ;;  %956 = vmatpush3.bf16.msra.mxu1 %v971_v15 }
  0x1c   :  { %844 = vmatprep.subr.bf16.mxu0 %v972_v16  ;;  %949 = vmatprep.subr.bf16.mxu1 %v972_v16 }
  0x1f   :  { %845 = vmatpush3.bf16.msra.mxu0 %v973_v17  ;;  %957 = vmatpush3.bf16.msra.mxu1 %v973_v17 }
  0x22   :  { %439 = vmatmul.mubr.bf16.vlgmr.msra.gmra.mrb[0].mxu0 %v974_v18  ;;  %503 = vmatmul.mubr.bf16.vlgmr.msra.gmra.mrb[0].mxu1 %v977_v19 }
  0x23   :  { %446 = vmatprep.mubr.bf16.mxu0 %v980_v20  ;;  %510 = vmatprep.mubr.bf16.mxu1 %v982_v21 }
  0x2a   :  { %447 = vmatmul.mubr.bf16.gmra.mrb[4].mxu0 %v984_v22  ;;  %511 = vmatmul.mubr.bf16.gmra.mrb[4].mxu1 %v985_v23 }
  0x2b   :  { %454 = vmatprep.mubr.bf16.mxu0 %v986_v24  ;;  %518 = vmatprep.mubr.bf16.mxu1 %v988_v25 }
  0x32   :  { %455 = vmatmul.mubr.bf16.gmra.mrb[8].mxu0 %v990_v26  ;;  %519 = vmatmul.mubr.bf16.gmra.mrb[8].mxu1 %v991_v27 }
  0x33   :  { %462 = vmatprep.mubr.bf16.mxu0 %v992_v28  ;;  %526 = vmatprep.mubr.bf16.mxu1 %v994_v29 }
  0x3a   :  { %463 = vmatmul.mubr.bf16.gmra.mrb[12].mxu0 %v996_v30  ;;  %527 = vmatmul.mubr.bf16.gmra.mrb[12].mxu1 %v997_v31 }
  0x3b   :  { %470 = vmatprep.mubr.bf16.mxu0 %v998_v32  ;;  %534 = vmatprep.mubr.bf16.mxu1 %v1000_v33 }
  0x42   :  { %471 = vmatmul.mubr.bf16.gmra.mrb[16].mxu0 %v1002_v34  ;;  %535 = vmatmul.mubr.bf16.gmra.mrb[16].mxu1 %v1003_v35 }
  0x43   :  { %478 = vmatprep.mubr.bf16.mxu0 %v1004_v36  ;;  %542 = vmatprep.mubr.bf16.mxu1 %v1006_v37 }
  0x4a   :  { %479 = vmatmul.mubr.bf16.gmra.mrb[20].mxu0 %v1008_v38  ;;  %543 = vmatmul.mubr.bf16.gmra.mrb[20].mxu1 %v1009_v39 }
  0x4b   :  { %486 = vmatprep.mubr.bf16.mxu0 %v1010_v40  ;;  %550 = vmatprep.mubr.bf16.mxu1 %v1012_v41 }
  0x52   :  { %487 = vmatmul.mubr.bf16.gmra.mrb[24].mxu0 %v1014_v42  ;;  %551 = vmatmul.mubr.bf16.gmra.mrb[24].mxu1 %v1015_v43 }
  0x53   :  { %494 = vmatprep.mubr.bf16.mxu0 %v1016_v44  ;;  %558 = vmatprep.mubr.bf16.mxu1 %v1018_v45 }
  0x5a   :  { %495 = vmatmul.mubr.bf16.gmra.mrb[28].mxu0 %v1020_v46  ;;  %559 = vmatmul.mubr.bf16.gmra.mrb[28].mxu1 %v1021_v47 }
  0xf5   :  { %v846_v48 = vpop.f32.mrb[0].mxu0  ;;  %v894_v49 = vpop.f32.mrb[0].mxu1 }
  0xf6   :  { %v847_v50 = vpop.f32.mrb[1].mxu0  ;;  %v895_v52 = vpop.f32.mrb[1].mxu1 }
  0xf7   :  { %v848_v53 = vadd.f32 %v847_v50, %v846_v48  ;;  %v896_v54 = vadd.f32 %v895_v52, %v894_v49  ;;  %v849_v55 = vpop.f32.mrb[2].mxu0  ;;  %v897_v56 = vpop.f32.mrb[2].mxu1 }
  0xf8   :  { %v850_v58 = vpop.f32.mrb[3].mxu0  ;;  %v898_v59 = vpop.f32.mrb[3].mxu1 }
  0xf9   :  { %v673_v60 = vmul.f32 %v848_v53, %v1194_v51  ;;  %v689_v61 = vmul.f32 %v896_v54, %v1194_v51  ;;  %v851_v62 = vadd.f32 %v850_v58, %v849_v55  ;;  %v899_v63 = vadd.f32 %v898_v59, %v897_v56 }
  0xfb   :  { %v712_v0 = vadd.f32 %v1199_v57, %v673_v60  ;;  %v728_v1 = vadd.f32 %v1199_v57, %v689_v61  ;;  %v674_v2 = vmul.f32 %v851_v62, %v1194_v51  ;;  %v690_v3 = vmul.f32 %v899_v63, %v1194_v51 }
  0xfd   :  { %744 = vst [vmem:[%s1365_s4] sm:$0xff] %v712_v0  ;;  %760 = vst [vmem:[%s1365_s4 + $0x80] sm:$0xff] %v728_v1  ;;  %v713_v4 = vadd.f32 %v1199_v57, %v674_v2  ;;  %v729_v5 = vadd.f32 %v1199_v57, %v690_v3  ;;  %v852_v6 = vpop.f32.mrb[4].mxu0  ;;  %v900_v7 = vpop.f32.mrb[4].mxu1 }
  0xfe   :  { %v853_v8 = vpop.f32.mrb[5].mxu0  ;;  %v901_v9 = vpop.f32.mrb[5].mxu1 }
  0xff   :  { %745 = vst [vmem:[%s1365_s4 + $0x8] sm:$0xff] %v713_v4  ;;  %761 = vst [vmem:[%s1365_s4 + $0x88] sm:$0xff] %v729_v5  ;;  %v854_v10 = vadd.f32 %v853_v8, %v852_v6  ;;  %v902_v11 = vadd.f32 %v901_v9, %v900_v7  ;;  %v855_v12 = vpop.f32.mrb[6].mxu0  ;;  %v903_v13 = vpop.f32.mrb[6].mxu1 }
 0x100   :  { %v856_v14 = vpop.f32.mrb[7].mxu0  ;;  %v904_v15 = vpop.f32.mrb[7].mxu1 }
 0x101   :  { %v675_v16 = vmul.f32 %v854_v10, %v1194_v51  ;;  %v691_v17 = vmul.f32 %v902_v11, %v1194_v51  ;;  %v857_v18 = vadd.f32 %v856_v14, %v855_v12  ;;  %v905_v19 = vadd.f32 %v904_v15, %v903_v13 }
 0x103   :  { %v714_v20 = vadd.f32 %v1199_v57, %v675_v16  ;;  %v730_v21 = vadd.f32 %v1199_v57, %v691_v17  ;;  %v676_v22 = vmul.f32 %v857_v18, %v1194_v51  ;;  %v692_v23 = vmul.f32 %v905_v19, %v1194_v51 }
 0x105   :  { %746 = vst [vmem:[%s1365_s4 + $0x10] sm:$0xff] %v714_v20  ;;  %762 = vst [vmem:[%s1365_s4 + $0x90] sm:$0xff] %v730_v21  ;;  %v715_v24 = vadd.f32 %v1199_v57, %v676_v22  ;;  %v731_v25 = vadd.f32 %v1199_v57, %v692_v23  ;;  %v858_v26 = vpop.f32.mrb[8].mxu0  ;;  %v906_v27 = vpop.f32.mrb[8].mxu1 }
 0x106   :  { %v859_v28 = vpop.f32.mrb[9].mxu0  ;;  %v907_v29 = vpop.f32.mrb[9].mxu1 }
 0x107   :  { %747 = vst [vmem:[%s1365_s4 + $0x18] sm:$0xff] %v715_v24  ;;  %763 = vst [vmem:[%s1365_s4 + $0x98] sm:$0xff] %v731_v25  ;;  %v860_v30 = vadd.f32 %v859_v28, %v858_v26  ;;  %v908_v31 = vadd.f32 %v907_v29, %v906_v27  ;;  %v861_v32 = vpop.f32.mrb[10].mxu0  ;;  %v909_v33 = vpop.f32.mrb[10].mxu1 }
 0x108   :  { %v862_v34 = vpop.f32.mrb[11].mxu0  ;;  %v910_v35 = vpop.f32.mrb[11].mxu1 }
 0x109   :  { %v677_v36 = vmul.f32 %v860_v30, %v1194_v51  ;;  %v693_v37 = vmul.f32 %v908_v31, %v1194_v51  ;;  %v863_v38 = vadd.f32 %v862_v34, %v861_v32  ;;  %v911_v39 = vadd.f32 %v910_v35, %v909_v33 }
 0x10b   :  { %v716_v40 = vadd.f32 %v1199_v57, %v677_v36  ;;  %v732_v41 = vadd.f32 %v1199_v57, %v693_v37  ;;  %v678_v42 = vmul.f32 %v863_v38, %v1194_v51  ;;  %v694_v43 = vmul.f32 %v911_v39, %v1194_v51 }
 0x10d   :  { %748 = vst [vmem:[%s1365_s4 + $0x20] sm:$0xff] %v716_v40  ;;  %764 = vst [vmem:[%s1365_s4 + $0xa0] sm:$0xff] %v732_v41  ;;  %v717_v44 = vadd.f32 %v1199_v57, %v678_v42  ;;  %v733_v45 = vadd.f32 %v1199_v57, %v694_v43  ;;  %v864_v46 = vpop.f32.mrb[12].mxu0  ;;  %v912_v47 = vpop.f32.mrb[12].mxu1 }
 0x10e   :  { %v865_v48 = vpop.f32.mrb[13].mxu0  ;;  %v913_v49 = vpop.f32.mrb[13].mxu1 }
 0x10f   :  { %749 = vst [vmem:[%s1365_s4 + $0x28] sm:$0xff] %v717_v44  ;;  %765 = vst [vmem:[%s1365_s4 + $0xa8] sm:$0xff] %v733_v45  ;;  %v866_v50 = vadd.f32 %v865_v48, %v864_v46  ;;  %v914_v52 = vadd.f32 %v913_v49, %v912_v47  ;;  %v867_v53 = vpop.f32.mrb[14].mxu0  ;;  %v915_v54 = vpop.f32.mrb[14].mxu1 }
 0x110   :  { %v868_v55 = vpop.f32.mrb[15].mxu0  ;;  %v916_v56 = vpop.f32.mrb[15].mxu1 }
 0x111   :  { %v679_v58 = vmul.f32 %v866_v50, %v1194_v51  ;;  %v695_v59 = vmul.f32 %v914_v52, %v1194_v51  ;;  %v869_v60 = vadd.f32 %v868_v55, %v867_v53  ;;  %v917_v61 = vadd.f32 %v916_v56, %v915_v54 }
 0x113   :  { %v718_v62 = vadd.f32 %v1199_v57, %v679_v58  ;;  %v734_v63 = vadd.f32 %v1199_v57, %v695_v59  ;;  %v680_v0 = vmul.f32 %v869_v60, %v1194_v51  ;;  %v696_v1 = vmul.f32 %v917_v61, %v1194_v51 }
 0x115   :  { %750 = vst [vmem:[%s1365_s4 + $0x30] sm:$0xff] %v718_v62  ;;  %766 = vst [vmem:[%s1365_s4 + $0xb0] sm:$0xff] %v734_v63  ;;  %v719_v2 = vadd.f32 %v1199_v57, %v680_v0  ;;  %v735_v3 = vadd.f32 %v1199_v57, %v696_v1  ;;  %v870_v4 = vpop.f32.mrb[16].mxu0  ;;  %v918_v5 = vpop.f32.mrb[16].mxu1 }
 0x116   :  { %v871_v6 = vpop.f32.mrb[17].mxu0  ;;  %v919_v7 = vpop.f32.mrb[17].mxu1 }
 0x117   :  { %751 = vst [vmem:[%s1365_s4 + $0x38] sm:$0xff] %v719_v2  ;;  %767 = vst [vmem:[%s1365_s4 + $0xb8] sm:$0xff] %v735_v3  ;;  %v872_v8 = vadd.f32 %v871_v6, %v870_v4  ;;  %v920_v9 = vadd.f32 %v919_v7, %v918_v5  ;;  %v873_v10 = vpop.f32.mrb[18].mxu0  ;;  %v921_v11 = vpop.f32.mrb[18].mxu1 }
 0x118   :  { %v874_v12 = vpop.f32.mrb[19].mxu0  ;;  %v922_v13 = vpop.f32.mrb[19].mxu1 }
 0x119   :  { %v681_v14 = vmul.f32 %v872_v8, %v1194_v51  ;;  %v697_v15 = vmul.f32 %v920_v9, %v1194_v51  ;;  %v875_v16 = vadd.f32 %v874_v12, %v873_v10  ;;  %v923_v17 = vadd.f32 %v922_v13, %v921_v11 }
 0x11b   :  { %v720_v18 = vadd.f32 %v1199_v57, %v681_v14  ;;  %v736_v19 = vadd.f32 %v1199_v57, %v697_v15  ;;  %v682_v20 = vmul.f32 %v875_v16, %v1194_v51  ;;  %v698_v21 = vmul.f32 %v923_v17, %v1194_v51 }
 0x11d   :  { %752 = vst [vmem:[%s1365_s4 + $0x40] sm:$0xff] %v720_v18  ;;  %768 = vst [vmem:[%s1365_s4 + $0xc0] sm:$0xff] %v736_v19  ;;  %v721_v22 = vadd.f32 %v1199_v57, %v682_v20  ;;  %v737_v23 = vadd.f32 %v1199_v57, %v698_v21  ;;  %v876_v24 = vpop.f32.mrb[20].mxu0  ;;  %v924_v25 = vpop.f32.mrb[20].mxu1 }
 0x11e   :  { %v877_v26 = vpop.f32.mrb[21].mxu0  ;;  %v925_v27 = vpop.f32.mrb[21].mxu1 }
 0x11f   :  { %753 = vst [vmem:[%s1365_s4 + $0x48] sm:$0xff] %v721_v22  ;;  %769 = vst [vmem:[%s1365_s4 + $0xc8] sm:$0xff] %v737_v23  ;;  %v878_v28 = vadd.f32 %v877_v26, %v876_v24  ;;  %v926_v29 = vadd.f32 %v925_v27, %v924_v25  ;;  %v879_v30 = vpop.f32.mrb[22].mxu0  ;;  %v927_v31 = vpop.f32.mrb[22].mxu1 }
 0x120   :  { %v880_v32 = vpop.f32.mrb[23].mxu0  ;;  %v928_v33 = vpop.f32.mrb[23].mxu1 }
 0x121   :  { %v683_v34 = vmul.f32 %v878_v28, %v1194_v51  ;;  %v699_v35 = vmul.f32 %v926_v29, %v1194_v51  ;;  %v881_v36 = vadd.f32 %v880_v32, %v879_v30  ;;  %v929_v37 = vadd.f32 %v928_v33, %v927_v31 }
 0x123   :  { %v722_v38 = vadd.f32 %v1199_v57, %v683_v34  ;;  %v738_v39 = vadd.f32 %v1199_v57, %v699_v35  ;;  %v684_v40 = vmul.f32 %v881_v36, %v1194_v51  ;;  %v700_v41 = vmul.f32 %v929_v37, %v1194_v51 }
 0x125   :  { %754 = vst [vmem:[%s1365_s4 + $0x50] sm:$0xff] %v722_v38  ;;  %770 = vst [vmem:[%s1365_s4 + $0xd0] sm:$0xff] %v738_v39  ;;  %v723_v42 = vadd.f32 %v1199_v57, %v684_v40  ;;  %v739_v43 = vadd.f32 %v1199_v57, %v700_v41  ;;  %v882_v44 = vpop.f32.mrb[24].mxu0  ;;  %v930_v45 = vpop.f32.mrb[24].mxu1 }
 0x126   :  { %v883_v46 = vpop.f32.mrb[25].mxu0  ;;  %v931_v47 = vpop.f32.mrb[25].mxu1 }
 0x127   :  { %755 = vst [vmem:[%s1365_s4 + $0x58] sm:$0xff] %v723_v42  ;;  %771 = vst [vmem:[%s1365_s4 + $0xd8] sm:$0xff] %v739_v43  ;;  %v884_v48 = vadd.f32 %v883_v46, %v882_v44  ;;  %v932_v49 = vadd.f32 %v931_v47, %v930_v45  ;;  %v885_v50 = vpop.f32.mrb[26].mxu0  ;;  %v933_v52 = vpop.f32.mrb[26].mxu1 }
 0x128   :  { %v886_v53 = vpop.f32.mrb[27].mxu0  ;;  %v934_v54 = vpop.f32.mrb[27].mxu1 }
 0x129   :  { %v685_v55 = vmul.f32 %v884_v48, %v1194_v51  ;;  %v701_v56 = vmul.f32 %v932_v49, %v1194_v51  ;;  %v887_v58 = vadd.f32 %v886_v53, %v885_v50  ;;  %v935_v59 = vadd.f32 %v934_v54, %v933_v52 }
 0x12b   :  { %v724_v60 = vadd.f32 %v1199_v57, %v685_v55  ;;  %v740_v61 = vadd.f32 %v1199_v57, %v701_v56  ;;  %v686_v62 = vmul.f32 %v887_v58, %v1194_v51  ;;  %v702_v63 = vmul.f32 %v935_v59, %v1194_v51 }
 0x12d   :  { %756 = vst [vmem:[%s1365_s4 + $0x60] sm:$0xff] %v724_v60  ;;  %772 = vst [vmem:[%s1365_s4 + $0xe0] sm:$0xff] %v740_v61  ;;  %v725_v0 = vadd.f32 %v1199_v57, %v686_v62  ;;  %v741_v1 = vadd.f32 %v1199_v57, %v702_v63  ;;  %v888_v2 = vpop.f32.mrb[28].mxu0  ;;  %v936_v3 = vpop.f32.mrb[28].mxu1 }
 0x12e   :  { %v889_v4 = vpop.f32.mrb[29].mxu0  ;;  %v937_v5 = vpop.f32.mrb[29].mxu1 }
 0x12f   :  { %757 = vst [vmem:[%s1365_s4 + $0x68] sm:$0xff] %v725_v0  ;;  %773 = vst [vmem:[%s1365_s4 + $0xe8] sm:$0xff] %v741_v1  ;;  %v890_v6 = vadd.f32 %v889_v4, %v888_v2  ;;  %v938_v7 = vadd.f32 %v937_v5, %v936_v3  ;;  %v891_v8 = vpop.f32.mrb[30].mxu0  ;;  %v939_v9 = vpop.f32.mrb[30].mxu1 }
 0x130   :  { %v892_v10 = vpop.f32.mrb[31].mxu0  ;;  %v940_v11 = vpop.f32.mrb[31].mxu1 }
 0x131   :  { %v687_v12 = vmul.f32 %v890_v6, %v1194_v51  ;;  %v703_v13 = vmul.f32 %v938_v7, %v1194_v51  ;;  %v893_v14 = vadd.f32 %v892_v10, %v891_v8  ;;  %v941_v15 = vadd.f32 %v940_v11, %v939_v9 }
 0x133   :  { %v726_v16 = vadd.f32 %v1199_v57, %v687_v12  ;;  %v742_v17 = vadd.f32 %v1199_v57, %v703_v13  ;;  %v688_v18 = vmul.f32 %v893_v14, %v1194_v51  ;;  %v704_v19 = vmul.f32 %v941_v15, %v1194_v51 }
 0x135   :  { %758 = vst [vmem:[%s1365_s4 + $0x70] sm:$0xff] %v726_v16  ;;  %774 = vst [vmem:[%s1365_s4 + $0xf0] sm:$0xff] %v742_v17  ;;  %v727_v20 = vadd.f32 %v1199_v57, %v688_v18  ;;  %v743_v21 = vadd.f32 %v1199_v57, %v704_v19 }
 0x137   :  { %759 = vst [vmem:[%s1365_s4 + $0x78] sm:$0xff] %v727_v20  ;;  %775 = vst [vmem:[%s1365_s4 + $0xf8] sm:$0xff] %v743_v21 }

// kernel: gnn_forward.5
= control target key start
LH: loop header
LB: loop body
LE: loop exit
PB: predicated region body
PF: predicated region fallthrough
CT: control target
= control target key end

     0   :  { %s2629_s1 = inlined_call_operand.vmem [shape: bf16[256,256], index: 1, kind: input, shape index: {}]   ;;  %s2630_s0 = inlined_call_operand.vmem [shape: bf16[256,256], index: 0, kind: input, shape index: {}]   ;;  %s2631_s2 = inlined_call_operand.vmem [shape: f32[256,256], index: 2, kind: input, shape index: {}]   ;;  %s2632_s3 = inlined_call_operand.vmem [shape: f32[1,256], index: 3, kind: input, shape index: {}]   ;;  %s2633_s4 = inlined_call_operand.vmem [shape: f32[1,256], index: 4, kind: input, shape index: {}]   ;;  %s2634_s5 = inlined_call_operand.vmem [shape: bf16[256,256], index: 5, kind: output, shape index: {}]  }
   0x1   :  { %v1881_v0 = vld [vmem:[%s2629_s1 + $0x4] ss:$8 sps:$4 sm:$0xff]   ;;  %v1883_v1 = vld [vmem:[%s2629_s1] ss:$8 sps:$4 sm:$0xff]   ;;  %v1884_v2 = vld [vmem:[%s2629_s1 + $0x14] ss:$8 sps:$4 sm:$0xff]  }
   0x2   :  { %536 = vmatprep.subr.bf16.mxu0 %v1881_v0  ;;  %v1886_v3 = vld [vmem:[%s2629_s1 + $0x10] ss:$8 sps:$4 sm:$0xff]   ;;  %v1887_v4 = vld [vmem:[%s2629_s1 + $0x24] ss:$8 sps:$4 sm:$0xff]   ;;  %v1889_v5 = vld [vmem:[%s2629_s1 + $0x20] ss:$8 sps:$4 sm:$0xff]  }
   0x3   :  { %537 = vmatpush1.bf16.msra.mxu0 %v1883_v1  ;;  %v1890_v6 = vld [vmem:[%s2629_s1 + $0x34] ss:$8 sps:$4 sm:$0xff]   ;;  %v1892_v7 = vld [vmem:[%s2629_s1 + $0x30] ss:$8 sps:$4 sm:$0xff]   ;;  %v1893_v8 = vld [vmem:[%s2629_s1 + $0x44] ss:$8 sps:$4 sm:$0xff]  }
   0x4   :  { %538 = vmatprep.subr.bf16.mxu0 %v1884_v2  ;;  %v1895_v9 = vld [vmem:[%s2629_s1 + $0x40] ss:$8 sps:$4 sm:$0xff]   ;;  %v1896_v10 = vld [vmem:[%s2629_s1 + $0x54] ss:$8 sps:$4 sm:$0xff]   ;;  %v1898_v11 = vld [vmem:[%s2629_s1 + $0x50] ss:$8 sps:$4 sm:$0xff]  }
   0x5   :  { %v1899_v12 = vld [vmem:[%s2629_s1 + $0x64] ss:$8 sps:$4 sm:$0xff]   ;;  %v1901_v14 = vld [vmem:[%s2629_s1 + $0x60] ss:$8 sps:$4 sm:$0xff]   ;;  %v1902_v15 = vld [vmem:[%s2629_s1 + $0x74] ss:$8 sps:$4 sm:$0xff]  }
   0x6   :  { %v1931_v13 = vld [vmem:[%s2630_s0 + $0x4] ss:$8 sps:$4 sm:$0xff]   ;;  %v1904_v16 = vld [vmem:[%s2629_s1 + $0x70] ss:$8 sps:$4 sm:$0xff]   ;;  %v1907_v18 = vld [vmem:[%s2629_s1 + $0x80] ss:$8 sps:$4 sm:$0xff]  }
   0x7   :  { %539 = vmatpush1.bf16.msra.mxu0 %v1886_v3  ;;  %568 = vmatprep.mubr.bf16.mxu0 %v1931_v13  ;;  %v1905_v17 = vld [vmem:[%s2629_s1 + $0x84] ss:$8 sps:$4 sm:$0xff]   ;;  %v1908_v19 = vld [vmem:[%s2629_s1 + $0x94] ss:$8 sps:$4 sm:$0xff]   ;;  %v1910_v20 = vld [vmem:[%s2629_s1 + $0x90] ss:$8 sps:$4 sm:$0xff]  }
   0x8   :  { %540 = vmatprep.subr.bf16.mxu0 %v1887_v4  ;;  %v1911_v21 = vld [vmem:[%s2629_s1 + $0xa4] ss:$8 sps:$4 sm:$0xff]   ;;  %v1913_v22 = vld [vmem:[%s2629_s1 + $0xa0] ss:$8 sps:$4 sm:$0xff]   ;;  %v1914_v23 = vld [vmem:[%s2629_s1 + $0xb4] ss:$8 sps:$4 sm:$0xff]  }
   0x9   :  { %v1916_v24 = vld [vmem:[%s2629_s1 + $0xb0] ss:$8 sps:$4 sm:$0xff]   ;;  %v1917_v25 = vld [vmem:[%s2629_s1 + $0xc4] ss:$8 sps:$4 sm:$0xff]   ;;  %v1919_v26 = vld [vmem:[%s2629_s1 + $0xc0] ss:$8 sps:$4 sm:$0xff]  }
   0xa   :  { %v1920_v27 = vld [vmem:[%s2629_s1 + $0xd4] ss:$8 sps:$4 sm:$0xff]   ;;  %v1922_v28 = vld [vmem:[%s2629_s1 + $0xd0] ss:$8 sps:$4 sm:$0xff]   ;;  %v1923_v29 = vld [vmem:[%s2629_s1 + $0xe4] ss:$8 sps:$4 sm:$0xff]  }
   0xb   :  { %541 = vmatpush1.bf16.msra.mxu0 %v1889_v5  ;;  %v1925_v30 = vld [vmem:[%s2629_s1 + $0xe0] ss:$8 sps:$4 sm:$0xff]   ;;  %v1926_v31 = vld [vmem:[%s2629_s1 + $0xf4] ss:$8 sps:$4 sm:$0xff]   ;;  %v1928_v32 = vld [vmem:[%s2629_s1 + $0xf0] ss:$8 sps:$4 sm:$0xff]  }
   0xc   :  { %542 = vmatprep.subr.bf16.mxu0 %v1890_v6  ;;  %v925_v33 = vld [vmem:[%s2631_s2 + $0x8] sm:$0xff]  ;;  %v927_v34 = vld [vmem:[%s2631_s2 + $0x18] sm:$0xff]  ;;  %v924_v35 = vld [vmem:[%s2631_s2] sm:$0xff] }
   0xd   :  { %v1817_v36 = vpack.c.bf16 %v927_v34, %v925_v33  ;;  %v926_v37 = vld [vmem:[%s2631_s2 + $0x10] sm:$0xff]  ;;  %v929_v38 = vld [vmem:[%s2631_s2 + $0x28] sm:$0xff]  ;;  %v931_v39 = vld [vmem:[%s2631_s2 + $0x38] sm:$0xff] }
   0xe   :  { %v1819_v40 = vpack.c.bf16 %v926_v37, %v924_v35  ;;  %v1821_v41 = vpack.c.bf16 %v931_v39, %v929_v38  ;;  %v928_v42 = vld [vmem:[%s2631_s2 + $0x20] sm:$0xff]  ;;  %v930_v43 = vld [vmem:[%s2631_s2 + $0x30] sm:$0xff]  ;;  %v933_v44 = vld [vmem:[%s2631_s2 + $0x48] sm:$0xff] }
   0xf   :  { %543 = vmatpush1.bf16.msra.mxu0 %v1892_v7  ;;  %v1929_v45 = vld [vmem:[%s2630_s0] ss:$8 sps:$4 sm:$0xff]   ;;  %1818 = vmatprep.subr.bf16.mxu1 %v1817_v36  ;;  %v935_v46 = vld [vmem:[%s2631_s2 + $0x58] sm:$0xff]  ;;  %v1823_v48 = vpack.c.bf16 %v930_v43, %v928_v42  ;;  %v934_v51 = vld [vmem:[%s2631_s2 + $0x50] sm:$0xff] }
  0x10   :  { %544 = vmatprep.subr.bf16.mxu0 %v1893_v8  ;;  %v1932_v47 = vld [vmem:[%s2630_s0 + $0x14] ss:$8 sps:$4 sm:$0xff]   ;;  %1820 = vmatpush1.bf16.msra.mxu1 %v1819_v40  ;;  %v1825_v49 = vpack.c.bf16 %v935_v46, %v933_v44  ;;  %v932_v50 = vld [vmem:[%s2631_s2 + $0x40] sm:$0xff]  ;;  %v937_v52 = vld [vmem:[%s2631_s2 + $0x68] sm:$0xff] }
  0x11   :  { %1822 = vmatprep.subr.bf16.mxu1 %v1821_v41  ;;  %v939_v53 = vld [vmem:[%s2631_s2 + $0x78] sm:$0xff]  ;;  %v1827_v54 = vpack.c.bf16 %v934_v51, %v932_v50  ;;  %v936_v56 = vld [vmem:[%s2631_s2 + $0x60] sm:$0xff]  ;;  %v938_v57 = vld [vmem:[%s2631_s2 + $0x70] sm:$0xff] }
  0x12   :  { %v1829_v55 = vpack.c.bf16 %v939_v53, %v937_v52  ;;  %v941_v58 = vld [vmem:[%s2631_s2 + $0x88] sm:$0xff]  ;;  %v943_v59 = vld [vmem:[%s2631_s2 + $0x98] sm:$0xff]  ;;  %v1831_v62 = vpack.c.bf16 %v938_v57, %v936_v56  ;;  %v940_v0 = vld [vmem:[%s2631_s2 + $0x80] sm:$0xff] }
  0x13   :  { %545 = vmatpush1.bf16.msra.mxu0 %v1895_v9  ;;  %v1934_v60 = vld [vmem:[%s2630_s0 + $0x10] ss:$8 sps:$4 sm:$0xff]   ;;  %v1935_v61 = vld [vmem:[%s2630_s0 + $0x24] ss:$8 sps:$4 sm:$0xff]   ;;  %v1833_v63 = vpack.c.bf16 %v943_v59, %v941_v58  ;;  %v1943_v38 = vld [vmem:[%s2630_s0 + $0x40] ss:$8 sps:$4 sm:$0xff]  }
  0x14   :  { %546 = vmatprep.subr.bf16.mxu0 %v1896_v10  ;;  %1824 = vmatpush1.bf16.msra.mxu1 %v1823_v48  ;;  %v942_v1 = vld [vmem:[%s2631_s2 + $0x90] sm:$0xff]  ;;  %v945_v2 = vld [vmem:[%s2631_s2 + $0xa8] sm:$0xff]  ;;  %v947_v3 = vld [vmem:[%s2631_s2 + $0xb8] sm:$0xff] }
  0x15   :  { %1826 = vmatprep.subr.bf16.mxu1 %v1825_v49  ;;  %v1835_v4 = vpack.c.bf16 %v942_v1, %v940_v0  ;;  %v1837_v5 = vpack.c.bf16 %v947_v3, %v945_v2  ;;  %v944_v6 = vld [vmem:[%s2631_s2 + $0xa0] sm:$0xff]  ;;  %v946_v7 = vld [vmem:[%s2631_s2 + $0xb0] sm:$0xff]  ;;  %v949_v8 = vld [vmem:[%s2631_s2 + $0xc8] sm:$0xff] }
  0x16   :  { %v951_v9 = vld [vmem:[%s2631_s2 + $0xd8] sm:$0xff]  ;;  %v1937_v10 = vld [vmem:[%s2630_s0 + $0x20] ss:$8 sps:$4 sm:$0xff]   ;;  %v962_v35 = vld [vmem:[%s2631_s2 + $0x130] sm:$0xff] }
  0x17   :  { %547 = vmatpush1.bf16.msra.mxu0 %v1898_v11  ;;  %v1938_v11 = vld [vmem:[%s2630_s0 + $0x34] ss:$8 sps:$4 sm:$0xff]   ;;  %v1841_v13 = vpack.c.bf16 %v951_v9, %v949_v8  ;;  %v960_v34 = vld [vmem:[%s2631_s2 + $0x120] sm:$0xff]  ;;  %v965_v36 = vld [vmem:[%s2631_s2 + $0x148] sm:$0xff] }
  0x18   :  { %548 = vmatprep.subr.bf16.mxu0 %v1899_v12  ;;  %1828 = vmatpush1.bf16.msra.mxu1 %v1827_v54  ;;  %v1839_v12 = vpack.c.bf16 %v946_v7, %v944_v6  ;;  %v967_v37 = vld [vmem:[%s2631_s2 + $0x158] sm:$0xff]  ;;  %v1855_v40 = vpack.c.bf16 %v962_v35, %v960_v34  ;;  %v964_v42 = vld [vmem:[%s2631_s2 + $0x140] sm:$0xff]  ;;  %v966_v43 = vld [vmem:[%s2631_s2 + $0x150] sm:$0xff] }
  0x19   :  { %1830 = vmatprep.subr.bf16.mxu1 %v1829_v55  ;;  %v1944_v39 = vld [vmem:[%s2630_s0 + $0x54] ss:$8 sps:$4 sm:$0xff]   ;;  %v1857_v41 = vpack.c.bf16 %v967_v37, %v965_v36  ;;  %v969_v44 = vld [vmem:[%s2631_s2 + $0x168] sm:$0xff]  ;;  %v1859_v46 = vpack.c.bf16 %v966_v43, %v964_v42  ;;  %v968_v48 = vld [vmem:[%s2631_s2 + $0x160] sm:$0xff] }
  0x1a   :  { %v970_v49 = vld [vmem:[%s2631_s2 + $0x170] sm:$0xff]  ;;  %v973_v50 = vld [vmem:[%s2631_s2 + $0x188] sm:$0xff]  ;;  %v975_v51 = vld [vmem:[%s2631_s2 + $0x198] sm:$0xff] }
  0x1b   :  { %549 = vmatpush1.bf16.msra.mxu0 %v1901_v14  ;;  %v948_v14 = vld [vmem:[%s2631_s2 + $0xc0] sm:$0xff]  ;;  %v1946_v52 = vld [vmem:[%s2630_s0 + $0x50] ss:$8 sps:$4 sm:$0xff]   ;;  %v1863_v54 = vpack.c.bf16 %v970_v49, %v968_v48  ;;  %v1865_v55 = vpack.c.bf16 %v975_v51, %v973_v50  ;;  %v977_v58 = vld [vmem:[%s2631_s2 + $0x1a8] sm:$0xff] }
  0x1c   :  { %550 = vmatprep.subr.bf16.mxu0 %v1902_v15  ;;  %1832 = vmatpush1.bf16.msra.mxu1 %v1831_v62  ;;  %v950_v15 = vld [vmem:[%s2631_s2 + $0xd0] sm:$0xff]  ;;  %v1947_v53 = vld [vmem:[%s2630_s0 + $0x64] ss:$8 sps:$4 sm:$0xff]   ;;  %v979_v59 = vld [vmem:[%s2631_s2 + $0x1b8] sm:$0xff] }
  0x1d   :  { %1834 = vmatprep.subr.bf16.mxu1 %v1833_v63  ;;  %v972_v56 = vld [vmem:[%s2631_s2 + $0x180] sm:$0xff]  ;;  %v974_v57 = vld [vmem:[%s2631_s2 + $0x190] sm:$0xff]  ;;  %v981_v0 = vld [vmem:[%s2631_s2 + $0x1c8] sm:$0xff] }
  0x1e   :  { %v976_v62 = vld [vmem:[%s2631_s2 + $0x1a0] sm:$0xff]  ;;  %v978_v63 = vld [vmem:[%s2631_s2 + $0x1b0] sm:$0xff]  ;;  %v983_v1 = vld [vmem:[%s2631_s2 + $0x1d8] sm:$0xff] }
  0x1f   :  { %551 = vmatpush1.bf16.msra.mxu0 %v1904_v16  ;;  %v953_v16 = vld [vmem:[%s2631_s2 + $0xe8] sm:$0xff]  ;;  %v1950_v3 = vld [vmem:[%s2630_s0 + $0x74] ss:$8 sps:$4 sm:$0xff]   ;;  %v980_v6 = vld [vmem:[%s2631_s2 + $0x1c0] sm:$0xff] }
  0x20   :  { %552 = vmatprep.subr.bf16.mxu0 %v1905_v17  ;;  %1836 = vmatpush1.bf16.msra.mxu1 %v1835_v4  ;;  %v955_v17 = vld [vmem:[%s2631_s2 + $0xf8] sm:$0xff]  ;;  %v1949_v2 = vld [vmem:[%s2630_s0 + $0x60] ss:$8 sps:$4 sm:$0xff]   ;;  %v1871_v4 = vpack.c.bf16 %v978_v63, %v976_v62  ;;  %v982_v7 = vld [vmem:[%s2631_s2 + $0x1d0] sm:$0xff] }
  0x21   :  { %1838 = vmatprep.subr.bf16.mxu1 %v1837_v5  ;;  %v1873_v5 = vpack.c.bf16 %v983_v1, %v981_v0  ;;  %v985_v8 = vld [vmem:[%s2631_s2 + $0x1e8] sm:$0xff]  ;;  %v987_v9 = vld [vmem:[%s2631_s2 + $0x1f8] sm:$0xff] }
  0x23   :  { %553 = vmatpush1.bf16.msra.mxu0 %v1907_v18  ;;  %v1843_v18 = vpack.c.bf16 %v950_v15, %v948_v14  ;;  %v1955_v14 = vld [vmem:[%s2630_s0 + $0x80] ss:$8 sps:$4 sm:$0xff]   ;;  %v1956_v15 = vld [vmem:[%s2630_s0 + $0x94] ss:$8 sps:$4 sm:$0xff]  }
  0x24   :  { %554 = vmatprep.subr.bf16.mxu0 %v1908_v19  ;;  %1840 = vmatpush1.bf16.msra.mxu1 %v1839_v12  ;;  %v1845_v19 = vpack.c.bf16 %v955_v17, %v953_v16  ;;  %v1952_v12 = vld [vmem:[%s2630_s0 + $0x70] ss:$8 sps:$4 sm:$0xff]   ;;  %v1959_v17 = vld [vmem:[%s2630_s0 + $0xa4] ss:$8 sps:$4 sm:$0xff]  }
  0x25   :  { %1842 = vmatprep.subr.bf16.mxu1 %v1841_v13  ;;  %v1953_v13 = vld [vmem:[%s2630_s0 + $0x84] ss:$8 sps:$4 sm:$0xff]   ;;  %v1958_v16 = vld [vmem:[%s2630_s0 + $0x90] ss:$8 sps:$4 sm:$0xff]  }
  0x27   :  { %555 = vmatpush1.bf16.msra.mxu0 %v1910_v20  ;;  %v952_v20 = vld [vmem:[%s2631_s2 + $0xe0] sm:$0xff] }
  0x28   :  { %556 = vmatprep.subr.bf16.mxu0 %v1911_v21  ;;  %v954_v21 = vld [vmem:[%s2631_s2 + $0xf0] sm:$0xff]  ;;  %1844 = vmatpush1.bf16.msra.mxu1 %v1843_v18  ;;  %v1961_v18 = vld [vmem:[%s2630_s0 + $0xa0] ss:$8 sps:$4 sm:$0xff]  }
  0x29   :  { %1846 = vmatprep.subr.bf16.mxu1 %v1845_v19  ;;  %v1962_v19 = vld [vmem:[%s2630_s0 + $0xb4] ss:$8 sps:$4 sm:$0xff]  }
  0x2b   :  { %557 = vmatpush1.bf16.msra.mxu0 %v1913_v22  ;;  %v957_v22 = vld [vmem:[%s2631_s2 + $0x108] sm:$0xff] }
  0x2c   :  { %558 = vmatprep.subr.bf16.mxu0 %v1914_v23  ;;  %v959_v23 = vld [vmem:[%s2631_s2 + $0x118] sm:$0xff] }
  0x2f   :  { %559 = vmatpush1.bf16.msra.mxu0 %v1916_v24  ;;  %v1940_v24 = vld [vmem:[%s2630_s0 + $0x30] ss:$8 sps:$4 sm:$0xff]  }
  0x30   :  { %560 = vmatprep.subr.bf16.mxu0 %v1917_v25  ;;  %v1941_v25 = vld [vmem:[%s2630_s0 + $0x44] ss:$8 sps:$4 sm:$0xff]  }
  0x33   :  { %561 = vmatpush1.bf16.msra.mxu0 %v1919_v26  ;;  %v1847_v26 = vpack.c.bf16 %v954_v21, %v952_v20  ;;  %v984_v20 = vld [vmem:[%s2631_s2 + $0x1e0] sm:$0xff]  ;;  %v986_v21 = vld [vmem:[%s2631_s2 + $0x1f0] sm:$0xff] }
  0x34   :  { %562 = vmatprep.subr.bf16.mxu0 %v1920_v27  ;;  %v1849_v27 = vpack.c.bf16 %v959_v23, %v957_v22  ;;  %v1879_v22 = vpack.c.bf16 %v986_v21, %v984_v20  ;;  %v1964_v23 = vld [vmem:[%s2630_s0 + $0xb0] ss:$8 sps:$4 sm:$0xff]  }
  0x35   :  { %1848 = vmatpush1.bf16.msra.mxu1 %v1847_v26  ;;  %v1968_v26 = vld [vmem:[%s2630_s0 + $0xd4] ss:$8 sps:$4 sm:$0xff]  }
  0x36   :  { %1850 = vmatprep.subr.bf16.mxu1 %v1849_v27  ;;  %v1970_v27 = vld [vmem:[%s2630_s0 + $0xd0] ss:$8 sps:$4 sm:$0xff]  }
  0x37   :  { %563 = vmatpush1.bf16.msra.mxu0 %v1922_v28  ;;  %v956_v28 = vld [vmem:[%s2631_s2 + $0x100] sm:$0xff] }
  0x38   :  { %564 = vmatprep.subr.bf16.mxu0 %v1923_v29  ;;  %v958_v29 = vld [vmem:[%s2631_s2 + $0x110] sm:$0xff] }
  0x3b   :  { %565 = vmatpush1.bf16.msra.mxu0 %v1925_v30  ;;  %v961_v30 = vld [vmem:[%s2631_s2 + $0x128] sm:$0xff] }
  0x3c   :  { %566 = vmatprep.subr.bf16.mxu0 %v1926_v31  ;;  %v963_v31 = vld [vmem:[%s2631_s2 + $0x138] sm:$0xff] }
  0x3d   :  { %v1853_v33 = vpack.c.bf16 %v963_v31, %v961_v30  ;;  %v1974_v30 = vld [vmem:[%s2630_s0 + $0xf4] ss:$8 sps:$4 sm:$0xff]   ;;  %v1976_v31 = vld [vmem:[%s2630_s0 + $0xf0] ss:$8 sps:$4 sm:$0xff]  }
  0x3f   :  { %567 = vmatpush1.bf16.msra.mxu0 %v1928_v32  ;;  %v1851_v32 = vpack.c.bf16 %v958_v29, %v956_v28  ;;  %v1971_v28 = vld [vmem:[%s2630_s0 + $0xe4] ss:$8 sps:$4 sm:$0xff]   ;;  %v1973_v29 = vld [vmem:[%s2630_s0 + $0xe0] ss:$8 sps:$4 sm:$0xff]  }
  0x41   :  { %1852 = vmatpush1.bf16.msra.mxu1 %v1851_v32 }
  0x42   :  { %569 = vmatmul.mubr.bf16.vlgmr.msra.gmra.mrb[0].mxu0 %v1929_v45  ;;  %1854 = vmatprep.subr.bf16.mxu1 %v1853_v33  ;;  %v971_v45 = vld [vmem:[%s2631_s2 + $0x178] sm:$0xff] }
  0x43   :  { %578 = vmatprep.mubr.bf16.mxu0 %v1932_v47  ;;  %v1861_v47 = vpack.c.bf16 %v971_v45, %v969_v44 }
  0x45   :  { %1856 = vmatpush1.bf16.msra.mxu1 %v1855_v40 }
  0x46   :  { %1858 = vmatprep.subr.bf16.mxu1 %v1857_v41 }
  0x49   :  { %1860 = vmatpush1.bf16.msra.mxu1 %v1859_v46 }
  0x4a   :  { %579 = vmatmul.mubr.bf16.gmra.mrb[4].mxu0 %v1934_v60  ;;  %1862 = vmatprep.subr.bf16.mxu1 %v1861_v47  ;;  %v1867_v60 = vpack.c.bf16 %v974_v57, %v972_v56 }
  0x4b   :  { %588 = vmatprep.mubr.bf16.mxu0 %v1935_v61  ;;  %v1869_v61 = vpack.c.bf16 %v979_v59, %v977_v58 }
  0x4d   :  { %1864 = vmatpush1.bf16.msra.mxu1 %v1863_v54 }
  0x4e   :  { %1866 = vmatprep.subr.bf16.mxu1 %v1865_v55 }
  0x51   :  { %1868 = vmatpush1.bf16.msra.mxu1 %v1867_v60 }
  0x52   :  { %589 = vmatmul.mubr.bf16.gmra.mrb[8].mxu0 %v1937_v10  ;;  %1870 = vmatprep.subr.bf16.mxu1 %v1869_v61  ;;  %v1875_v10 = vpack.c.bf16 %v982_v7, %v980_v6 }
  0x53   :  { %598 = vmatprep.mubr.bf16.mxu0 %v1938_v11  ;;  %v1877_v11 = vpack.c.bf16 %v987_v9, %v985_v8 }
  0x55   :  { %1872 = vmatpush1.bf16.msra.mxu1 %v1871_v4 }
  0x56   :  { %1874 = vmatprep.subr.bf16.mxu1 %v1873_v5 }
  0x59   :  { %1876 = vmatpush1.bf16.msra.mxu1 %v1875_v10 }
  0x5a   :  { %599 = vmatmul.mubr.bf16.gmra.mrb[12].mxu0 %v1940_v24  ;;  %1878 = vmatprep.subr.bf16.mxu1 %v1877_v11  ;;  %v1965_v24 = vld [vmem:[%s2630_s0 + $0xc4] ss:$8 sps:$4 sm:$0xff]  }
  0x5b   :  { %608 = vmatprep.mubr.bf16.mxu0 %v1941_v25  ;;  %v1967_v25 = vld [vmem:[%s2630_s0 + $0xc0] ss:$8 sps:$4 sm:$0xff]  }
  0x5d   :  { %1880 = vmatpush1.bf16.msra.mxu1 %v1879_v22 }
  0x62   :  { %609 = vmatmul.mubr.bf16.gmra.mrb[16].mxu0 %v1943_v38 }
  0x63   :  { %618 = vmatprep.mubr.bf16.mxu0 %v1944_v39 }
  0x6a   :  { %619 = vmatmul.mubr.bf16.gmra.mrb[20].mxu0 %v1946_v52 }
  0x6b   :  { %628 = vmatprep.mubr.bf16.mxu0 %v1947_v53 }
  0x72   :  { %629 = vmatmul.mubr.bf16.gmra.mrb[24].mxu0 %v1949_v2 }
  0x73   :  { %638 = vmatprep.mubr.bf16.mxu0 %v1950_v3 }
  0x7a   :  { %639 = vmatmul.mubr.bf16.gmra.mrb[28].mxu0 %v1952_v12 }
  0x7b   :  { %648 = vmatprep.mubr.bf16.mxu0 %v1953_v13 }
  0x82   :  { %649 = vmatmul.mubr.bf16.gmra.mrb[32].mxu0 %v1955_v14 }
  0x83   :  { %658 = vmatprep.mubr.bf16.mxu0 %v1956_v15 }
  0x8a   :  { %659 = vmatmul.mubr.bf16.gmra.mrb[36].mxu0 %v1958_v16 }
  0x8b   :  { %668 = vmatprep.mubr.bf16.mxu0 %v1959_v17 }
  0x92   :  { %669 = vmatmul.mubr.bf16.gmra.mrb[40].mxu0 %v1961_v18 }
  0x93   :  { %678 = vmatprep.mubr.bf16.mxu0 %v1962_v19 }
  0x9a   :  { %679 = vmatmul.mubr.bf16.gmra.mrb[44].mxu0 %v1964_v23 }
  0x9b   :  { %688 = vmatprep.mubr.bf16.mxu0 %v1965_v24 }
  0xa2   :  { %689 = vmatmul.mubr.bf16.gmra.mrb[48].mxu0 %v1967_v25 }
  0xa3   :  { %698 = vmatprep.mubr.bf16.mxu0 %v1968_v26 }
  0xaa   :  { %699 = vmatmul.mubr.bf16.gmra.mrb[52].mxu0 %v1970_v27 }
  0xab   :  { %708 = vmatprep.mubr.bf16.mxu0 %v1971_v28 }
  0xb2   :  { %709 = vmatmul.mubr.bf16.gmra.mrb[56].mxu0 %v1973_v29 }
  0xb3   :  { %718 = vmatprep.mubr.bf16.mxu0 %v1974_v30 }
  0xba   :  { %719 = vmatmul.mubr.bf16.gmra.mrb[60].mxu0 %v1976_v31 }
 0x115   :  { %v570_v32 = vpop.f32.mrb[0].mxu0 }
 0x116   :  { %v572_v33 = vpop.f32.mrb[1].mxu0 }
 0x117   :  { %v574_v34 = vpop.f32.mrb[2].mxu0  ;;  %1052 = vmatprep.mubr.f32.mxu1 %v572_v33 }
 0x118   :  { %v576_v35 = vpop.f32.mrb[3].mxu0  ;;  %1053 = vmatmul.mubr.f32.vlgmr.msra.gmra.mrb[0].mxu1 %v570_v32  ;;  %v1247_v32 = vlaneseq }
 0x119   :  { %1058 = vmatprep.mubr.f32.mxu1 %v576_v35  ;;  %v1245_v35 = vld [vmem:[%s2632_s3] sm:$0x3] }
 0x11a   :  { %v1248_v33 = vshrl.u32 %v1247_v32, 7 }
 0x11c   :  { %1059 = vmatmul.mubr.f32.gmra.mrb[2].mxu1 %v574_v34  ;;  %v1249_v34 = vsub.s32 0, %v1248_v33 }
 0x11d   :  { %v580_v36 = vpop.f32.mrb[4].mxu0 }
 0x11e   :  { %v582_v37 = vpop.f32.mrb[5].mxu0 }
 0x11f   :  { %v584_v38 = vpop.f32.mrb[6].mxu0  ;;  %1064 = vmatprep.mubr.f32.mxu1 %v582_v37  ;;  %v1321_v37 = vld [vmem:[%s2633_s4] sm:$0x3] }
 0x120   :  { %v586_v39 = vpop.f32.mrb[7].mxu0  ;;  %1065 = vmatmul.mubr.f32.gmra.mrb[4].mxu1 %v580_v36  ;;  %v1253_v36 = vsub.s32 1, %v1248_v33 }
 0x121   :  { %1070 = vmatprep.mubr.f32.mxu1 %v586_v39 }
 0x122   :  { %v2399_v39 = vrot.slane %v1245_v35, %v1253_v36 }
 0x124   :  { %1071 = vmatmul.mubr.f32.gmra.mrb[6].mxu1 %v584_v38  ;;  %v2397_v38 = vrot.slane %v1245_v35, %v1249_v34 }
 0x125   :  { %v590_v40 = vpop.f32.mrb[8].mxu0 }
 0x126   :  { %v592_v41 = vpop.f32.mrb[9].mxu0 }
 0x127   :  { %v594_v42 = vpop.f32.mrb[10].mxu0  ;;  %1076 = vmatprep.mubr.f32.mxu1 %v592_v41 }
 0x128   :  { %v596_v43 = vpop.f32.mrb[11].mxu0  ;;  %1077 = vmatmul.mubr.f32.gmra.mrb[8].mxu1 %v590_v40  ;;  %v2401_v40 = vrot.slane %v1321_v37, %v1249_v34 }
 0x129   :  { %1082 = vmatprep.mubr.f32.mxu1 %v596_v43 }
 0x12c   :  { %1083 = vmatmul.mubr.f32.gmra.mrb[10].mxu1 %v594_v42  ;;  %v2403_v42 = vrot.slane %v1321_v37, %v1253_v36 }
 0x12d   :  { %v600_v44 = vpop.f32.mrb[12].mxu0 }
 0x12e   :  { %v602_v45 = vpop.f32.mrb[13].mxu0 }
 0x12f   :  { %v604_v46 = vpop.f32.mrb[14].mxu0  ;;  %1088 = vmatprep.mubr.f32.mxu1 %v602_v45 }
 0x130   :  { %v606_v47 = vpop.f32.mrb[15].mxu0  ;;  %1089 = vmatmul.mubr.f32.gmra.mrb[12].mxu1 %v600_v44 }
 0x131   :  { %1094 = vmatprep.mubr.f32.mxu1 %v606_v47 }
 0x134   :  { %1095 = vmatmul.mubr.f32.gmra.mrb[14].mxu1 %v604_v46 }
 0x135   :  { %v610_v48 = vpop.f32.mrb[16].mxu0 }
 0x136   :  { %v612_v49 = vpop.f32.mrb[17].mxu0 }
 0x137   :  { %v614_v50 = vpop.f32.mrb[18].mxu0  ;;  %1100 = vmatprep.mubr.f32.mxu1 %v612_v49 }
 0x138   :  { %v616_v51 = vpop.f32.mrb[19].mxu0  ;;  %1101 = vmatmul.mubr.f32.gmra.mrb[16].mxu1 %v610_v48 }
 0x139   :  { %1106 = vmatprep.mubr.f32.mxu1 %v616_v51 }
 0x13c   :  { %1107 = vmatmul.mubr.f32.gmra.mrb[18].mxu1 %v614_v50 }
 0x13d   :  { %v620_v52 = vpop.f32.mrb[20].mxu0 }
 0x13e   :  { %v622_v53 = vpop.f32.mrb[21].mxu0 }
 0x13f   :  { %v624_v54 = vpop.f32.mrb[22].mxu0  ;;  %1112 = vmatprep.mubr.f32.mxu1 %v622_v53 }
 0x140   :  { %v626_v55 = vpop.f32.mrb[23].mxu0  ;;  %1113 = vmatmul.mubr.f32.gmra.mrb[20].mxu1 %v620_v52 }
 0x141   :  { %1118 = vmatprep.mubr.f32.mxu1 %v626_v55 }
 0x144   :  { %1119 = vmatmul.mubr.f32.gmra.mrb[22].mxu1 %v624_v54 }
 0x145   :  { %v630_v56 = vpop.f32.mrb[24].mxu0 }
 0x146   :  { %v632_v57 = vpop.f32.mrb[25].mxu0 }
 0x147   :  { %v634_v58 = vpop.f32.mrb[26].mxu0  ;;  %1124 = vmatprep.mubr.f32.mxu1 %v632_v57 }
 0x148   :  { %v636_v59 = vpop.f32.mrb[27].mxu0  ;;  %1125 = vmatmul.mubr.f32.gmra.mrb[24].mxu1 %v630_v56 }
 0x149   :  { %1130 = vmatprep.mubr.f32.mxu1 %v636_v59 }
 0x14c   :  { %1131 = vmatmul.mubr.f32.gmra.mrb[26].mxu1 %v634_v58 }
 0x14d   :  { %v640_v60 = vpop.f32.mrb[28].mxu0 }
 0x14e   :  { %v642_v61 = vpop.f32.mrb[29].mxu0 }
 0x14f   :  { %v644_v62 = vpop.f32.mrb[30].mxu0  ;;  %1136 = vmatprep.mubr.f32.mxu1 %v642_v61 }
 0x150   :  { %v646_v63 = vpop.f32.mrb[31].mxu0  ;;  %1137 = vmatmul.mubr.f32.gmra.mrb[28].mxu1 %v640_v60 }
 0x151   :  { %1142 = vmatprep.mubr.f32.mxu1 %v646_v63 }
 0x154   :  { %1143 = vmatmul.mubr.f32.gmra.mrb[30].mxu1 %v644_v62 }
 0x155   :  { %v650_v0 = vpop.f32.mrb[32].mxu0 }
 0x156   :  { %v652_v1 = vpop.f32.mrb[33].mxu0 }
 0x157   :  { %v654_v2 = vpop.f32.mrb[34].mxu0  ;;  %1148 = vmatprep.mubr.f32.mxu1 %v652_v1 }
 0x158   :  { %v656_v3 = vpop.f32.mrb[35].mxu0  ;;  %1149 = vmatmul.mubr.f32.gmra.mrb[32].mxu1 %v650_v0 }
 0x159   :  { %1154 = vmatprep.mubr.f32.mxu1 %v656_v3 }
 0x15c   :  { %1155 = vmatmul.mubr.f32.gmra.mrb[34].mxu1 %v654_v2 }
 0x15d   :  { %v660_v4 = vpop.f32.mrb[36].mxu0 }
 0x15e   :  { %v662_v5 = vpop.f32.mrb[37].mxu0 }
 0x15f   :  { %v664_v6 = vpop.f32.mrb[38].mxu0  ;;  %1160 = vmatprep.mubr.f32.mxu1 %v662_v5 }
 0x160   :  { %v666_v7 = vpop.f32.mrb[39].mxu0  ;;  %1161 = vmatmul.mubr.f32.gmra.mrb[36].mxu1 %v660_v4 }
 0x161   :  { %1166 = vmatprep.mubr.f32.mxu1 %v666_v7 }
 0x164   :  { %1167 = vmatmul.mubr.f32.gmra.mrb[38].mxu1 %v664_v6 }
 0x165   :  { %v670_v8 = vpop.f32.mrb[40].mxu0 }
 0x166   :  { %v672_v9 = vpop.f32.mrb[41].mxu0 }
 0x167   :  { %v674_v10 = vpop.f32.mrb[42].mxu0  ;;  %1172 = vmatprep.mubr.f32.mxu1 %v672_v9 }
 0x168   :  { %v676_v11 = vpop.f32.mrb[43].mxu0  ;;  %1173 = vmatmul.mubr.f32.gmra.mrb[40].mxu1 %v670_v8 }
 0x169   :  { %1178 = vmatprep.mubr.f32.mxu1 %v676_v11 }
 0x16c   :  { %1179 = vmatmul.mubr.f32.gmra.mrb[42].mxu1 %v674_v10 }
 0x16d   :  { %v680_v12 = vpop.f32.mrb[44].mxu0 }
 0x16e   :  { %v682_v13 = vpop.f32.mrb[45].mxu0 }
 0x16f   :  { %v684_v14 = vpop.f32.mrb[46].mxu0  ;;  %1184 = vmatprep.mubr.f32.mxu1 %v682_v13 }
 0x170   :  { %v686_v15 = vpop.f32.mrb[47].mxu0  ;;  %1185 = vmatmul.mubr.f32.gmra.mrb[44].mxu1 %v680_v12 }
 0x171   :  { %1190 = vmatprep.mubr.f32.mxu1 %v686_v15 }
 0x174   :  { %1191 = vmatmul.mubr.f32.gmra.mrb[46].mxu1 %v684_v14 }
 0x175   :  { %v690_v16 = vpop.f32.mrb[48].mxu0 }
 0x176   :  { %v692_v17 = vpop.f32.mrb[49].mxu0 }
 0x177   :  { %v694_v18 = vpop.f32.mrb[50].mxu0  ;;  %1196 = vmatprep.mubr.f32.mxu1 %v692_v17 }
 0x178   :  { %v696_v19 = vpop.f32.mrb[51].mxu0  ;;  %1197 = vmatmul.mubr.f32.gmra.mrb[48].mxu1 %v690_v16 }
 0x179   :  { %1202 = vmatprep.mubr.f32.mxu1 %v696_v19 }
 0x17c   :  { %1203 = vmatmul.mubr.f32.gmra.mrb[50].mxu1 %v694_v18 }
 0x17d   :  { %v700_v20 = vpop.f32.mrb[52].mxu0 }
 0x17e   :  { %v702_v21 = vpop.f32.mrb[53].mxu0 }
 0x17f   :  { %v704_v22 = vpop.f32.mrb[54].mxu0  ;;  %1208 = vmatprep.mubr.f32.mxu1 %v702_v21 }
 0x180   :  { %v706_v23 = vpop.f32.mrb[55].mxu0  ;;  %1209 = vmatmul.mubr.f32.gmra.mrb[52].mxu1 %v700_v20 }
 0x181   :  { %1214 = vmatprep.mubr.f32.mxu1 %v706_v23 }
 0x184   :  { %1215 = vmatmul.mubr.f32.gmra.mrb[54].mxu1 %v704_v22 }
 0x185   :  { %v710_v24 = vpop.f32.mrb[56].mxu0 }
 0x186   :  { %v712_v25 = vpop.f32.mrb[57].mxu0 }
 0x187   :  { %v714_v26 = vpop.f32.mrb[58].mxu0  ;;  %1220 = vmatprep.mubr.f32.mxu1 %v712_v25 }
 0x188   :  { %v716_v27 = vpop.f32.mrb[59].mxu0  ;;  %1221 = vmatmul.mubr.f32.gmra.mrb[56].mxu1 %v710_v24 }
 0x189   :  { %1226 = vmatprep.mubr.f32.mxu1 %v716_v27 }
 0x18c   :  { %1227 = vmatmul.mubr.f32.gmra.mrb[58].mxu1 %v714_v26 }
 0x18d   :  { %v720_v28 = vpop.f32.mrb[60].mxu0 }
 0x18e   :  { %v722_v29 = vpop.f32.mrb[61].mxu0 }
 0x18f   :  { %v724_v30 = vpop.f32.mrb[62].mxu0  ;;  %1232 = vmatprep.mubr.f32.mxu1 %v722_v29 }
 0x190   :  { %v726_v31 = vpop.f32.mrb[63].mxu0  ;;  %1233 = vmatmul.mubr.f32.gmra.mrb[60].mxu1 %v720_v28 }
 0x191   :  { %1238 = vmatprep.mubr.f32.mxu1 %v726_v31 }
 0x194   :  { %1239 = vmatmul.mubr.f32.gmra.mrb[62].mxu1 %v724_v30 }
 0x1eb   :  { %v1054_v41 = vpop.f32.mrb[0].mxu1 }
 0x1ec   :  { %v1257_v43 = vmul.f32 %v2397_v38, %v1054_v41  ;;  %v1056_v44 = vpop.f32.mrb[1].mxu1 }
 0x1ed   :  { %v1258_v45 = vmul.f32 %v2399_v39, %v1056_v44 }
 0x1ee   :  { %v1333_v46 = vadd.f32 %v2401_v40, %v1257_v43 }
 0x1ef   :  { %v1334_v47 = vadd.f32 %v2403_v42, %v1258_v45  ;;  %v1060_v48 = vpop.f32.mrb[2].mxu1 }
 0x1f0   :  { %v1397_v49 = vmax.f32 %v1333_v46, 0.0  ;;  %v1259_v50 = vmul.f32 %v2397_v38, %v1060_v48  ;;  %v1062_v51 = vpop.f32.mrb[3].mxu1 }
 0x1f1   :  { %v1398_v52 = vmax.f32 %v1334_v47, 0.0  ;;  %v1260_v53 = vmul.f32 %v2399_v39, %v1062_v51 }
 0x1f2   :  { %v1335_v54 = vadd.f32 %v2401_v40, %v1259_v50 }
 0x1f3   :  { %v1785_v55 = vpack.c.bf16 %v1398_v52, %v1397_v49  ;;  %v1336_v56 = vadd.f32 %v2403_v42, %v1260_v53  ;;  %v1066_v57 = vpop.f32.mrb[4].mxu1 }
 0x1f4   :  { %v1399_v58 = vmax.f32 %v1335_v54, 0.0  ;;  %v1261_v59 = vmul.f32 %v2397_v38, %v1066_v57  ;;  %v1068_v60 = vpop.f32.mrb[5].mxu1 }
 0x1f5   :  { %1653 = vst [vmem:[%s2634_s5] sm:$0xff] %v1785_v55  ;;  %v1400_v61 = vmax.f32 %v1336_v56, 0.0  ;;  %v1262_v62 = vmul.f32 %v2399_v39, %v1068_v60 }
 0x1f6   :  { %v1337_v63 = vadd.f32 %v2401_v40, %v1261_v59 }
 0x1f7   :  { %v1786_v0 = vpack.c.bf16 %v1400_v61, %v1399_v58  ;;  %v1338_v1 = vadd.f32 %v2403_v42, %v1262_v62  ;;  %v1072_v2 = vpop.f32.mrb[6].mxu1 }
 0x1f8   :  { %v1401_v3 = vmax.f32 %v1337_v63, 0.0  ;;  %v1263_v4 = vmul.f32 %v2397_v38, %v1072_v2  ;;  %v1074_v5 = vpop.f32.mrb[7].mxu1 }
 0x1f9   :  { %1654 = vst [vmem:[%s2634_s5 + $0x8] sm:$0xff] %v1786_v0  ;;  %v1402_v6 = vmax.f32 %v1338_v1, 0.0  ;;  %v1264_v7 = vmul.f32 %v2399_v39, %v1074_v5 }
 0x1fa   :  { %v1339_v8 = vadd.f32 %v2401_v40, %v1263_v4 }
 0x1fb   :  { %v1787_v9 = vpack.c.bf16 %v1402_v6, %v1401_v3  ;;  %v1340_v10 = vadd.f32 %v2403_v42, %v1264_v7  ;;  %v1078_v11 = vpop.f32.mrb[8].mxu1 }
 0x1fc   :  { %v1403_v12 = vmax.f32 %v1339_v8, 0.0  ;;  %v1265_v13 = vmul.f32 %v2397_v38, %v1078_v11  ;;  %v1080_v14 = vpop.f32.mrb[9].mxu1 }
 0x1fd   :  { %1655 = vst [vmem:[%s2634_s5 + $0x10] sm:$0xff] %v1787_v9  ;;  %v1404_v15 = vmax.f32 %v1340_v10, 0.0  ;;  %v1266_v16 = vmul.f32 %v2399_v39, %v1080_v14 }
 0x1fe   :  { %v1341_v17 = vadd.f32 %v2401_v40, %v1265_v13 }
 0x1ff   :  { %v1788_v18 = vpack.c.bf16 %v1404_v15, %v1403_v12  ;;  %v1342_v19 = vadd.f32 %v2403_v42, %v1266_v16  ;;  %v1084_v20 = vpop.f32.mrb[10].mxu1 }
 0x200   :  { %v1405_v21 = vmax.f32 %v1341_v17, 0.0  ;;  %v1267_v22 = vmul.f32 %v2397_v38, %v1084_v20  ;;  %v1086_v23 = vpop.f32.mrb[11].mxu1 }
 0x201   :  { %1656 = vst [vmem:[%s2634_s5 + $0x18] sm:$0xff] %v1788_v18  ;;  %v1406_v24 = vmax.f32 %v1342_v19, 0.0  ;;  %v1268_v25 = vmul.f32 %v2399_v39, %v1086_v23 }
 0x202   :  { %v1343_v26 = vadd.f32 %v2401_v40, %v1267_v22 }
 0x203   :  { %v1789_v27 = vpack.c.bf16 %v1406_v24, %v1405_v21  ;;  %v1344_v28 = vadd.f32 %v2403_v42, %v1268_v25  ;;  %v1090_v29 = vpop.f32.mrb[12].mxu1 }
 0x204   :  { %v1407_v30 = vmax.f32 %v1343_v26, 0.0  ;;  %v1269_v31 = vmul.f32 %v2397_v38, %v1090_v29  ;;  %v1092_v32 = vpop.f32.mrb[13].mxu1 }
 0x205   :  { %1657 = vst [vmem:[%s2634_s5 + $0x20] sm:$0xff] %v1789_v27  ;;  %v1408_v33 = vmax.f32 %v1344_v28, 0.0  ;;  %v1270_v34 = vmul.f32 %v2399_v39, %v1092_v32 }
 0x206   :  { %v1345_v35 = vadd.f32 %v2401_v40, %v1269_v31 }
 0x207   :  { %v1790_v36 = vpack.c.bf16 %v1408_v33, %v1407_v30  ;;  %v1346_v37 = vadd.f32 %v2403_v42, %v1270_v34  ;;  %v1096_v41 = vpop.f32.mrb[14].mxu1 }
 0x208   :  { %v1409_v43 = vmax.f32 %v1345_v35, 0.0  ;;  %v1271_v44 = vmul.f32 %v2397_v38, %v1096_v41  ;;  %v1098_v45 = vpop.f32.mrb[15].mxu1 }
 0x209   :  { %1658 = vst [vmem:[%s2634_s5 + $0x28] sm:$0xff] %v1790_v36  ;;  %v1410_v46 = vmax.f32 %v1346_v37, 0.0  ;;  %v1272_v47 = vmul.f32 %v2399_v39, %v1098_v45 }
 0x20a   :  { %v1347_v48 = vadd.f32 %v2401_v40, %v1271_v44 }
 0x20b   :  { %v1791_v49 = vpack.c.bf16 %v1410_v46, %v1409_v43  ;;  %v1348_v50 = vadd.f32 %v2403_v42, %v1272_v47  ;;  %v1102_v51 = vpop.f32.mrb[16].mxu1 }
 0x20c   :  { %v1411_v52 = vmax.f32 %v1347_v48, 0.0  ;;  %v1273_v53 = vmul.f32 %v2397_v38, %v1102_v51  ;;  %v1104_v54 = vpop.f32.mrb[17].mxu1 }
 0x20d   :  { %1659 = vst [vmem:[%s2634_s5 + $0x30] sm:$0xff] %v1791_v49  ;;  %v1412_v55 = vmax.f32 %v1348_v50, 0.0  ;;  %v1274_v56 = vmul.f32 %v2399_v39, %v1104_v54 }
 0x20e   :  { %v1349_v57 = vadd.f32 %v2401_v40, %v1273_v53 }
 0x20f   :  { %v1792_v58 = vpack.c.bf16 %v1412_v55, %v1411_v52  ;;  %v1350_v59 = vadd.f32 %v2403_v42, %v1274_v56  ;;  %v1108_v60 = vpop.f32.mrb[18].mxu1 }
 0x210   :  { %v1413_v61 = vmax.f32 %v1349_v57, 0.0  ;;  %v1275_v62 = vmul.f32 %v2397_v38, %v1108_v60  ;;  %v1110_v63 = vpop.f32.mrb[19].mxu1 }
 0x211   :  { %1660 = vst [vmem:[%s2634_s5 + $0x38] sm:$0xff] %v1792_v58  ;;  %v1414_v0 = vmax.f32 %v1350_v59, 0.0  ;;  %v1276_v1 = vmul.f32 %v2399_v39, %v1110_v63 }
 0x212   :  { %v1351_v2 = vadd.f32 %v2401_v40, %v1275_v62 }
 0x213   :  { %v1793_v3 = vpack.c.bf16 %v1414_v0, %v1413_v61  ;;  %v1352_v4 = vadd.f32 %v2403_v42, %v1276_v1  ;;  %v1114_v5 = vpop.f32.mrb[20].mxu1 }
 0x214   :  { %v1415_v6 = vmax.f32 %v1351_v2, 0.0  ;;  %v1277_v7 = vmul.f32 %v2397_v38, %v1114_v5  ;;  %v1116_v8 = vpop.f32.mrb[21].mxu1 }
 0x215   :  { %1661 = vst [vmem:[%s2634_s5 + $0x40] sm:$0xff] %v1793_v3  ;;  %v1416_v9 = vmax.f32 %v1352_v4, 0.0  ;;  %v1278_v10 = vmul.f32 %v2399_v39, %v1116_v8 }
 0x216   :  { %v1353_v11 = vadd.f32 %v2401_v40, %v1277_v7 }
 0x217   :  { %v1794_v12 = vpack.c.bf16 %v1416_v9, %v1415_v6  ;;  %v1354_v13 = vadd.f32 %v2403_v42, %v1278_v10  ;;  %v1120_v14 = vpop.f32.mrb[22].mxu1 }
 0x218   :  { %v1417_v15 = vmax.f32 %v1353_v11, 0.0  ;;  %v1279_v16 = vmul.f32 %v2397_v38, %v1120_v14  ;;  %v1122_v17 = vpop.f32.mrb[23].mxu1 }
 0x219   :  { %1662 = vst [vmem:[%s2634_s5 + $0x48] sm:$0xff] %v1794_v12  ;;  %v1418_v18 = vmax.f32 %v1354_v13, 0.0  ;;  %v1280_v19 = vmul.f32 %v2399_v39, %v1122_v17 }
 0x21a   :  { %v1355_v20 = vadd.f32 %v2401_v40, %v1279_v16 }
 0x21b   :  { %v1795_v21 = vpack.c.bf16 %v1418_v18, %v1417_v15  ;;  %v1356_v22 = vadd.f32 %v2403_v42, %v1280_v19  ;;  %v1126_v23 = vpop.f32.mrb[24].mxu1 }
 0x21c   :  { %v1419_v24 = vmax.f32 %v1355_v20, 0.0  ;;  %v1281_v25 = vmul.f32 %v2397_v38, %v1126_v23  ;;  %v1128_v26 = vpop.f32.mrb[25].mxu1 }
 0x21d   :  { %1663 = vst [vmem:[%s2634_s5 + $0x50] sm:$0xff] %v1795_v21  ;;  %v1420_v27 = vmax.f32 %v1356_v22, 0.0  ;;  %v1282_v28 = vmul.f32 %v2399_v39, %v1128_v26 }
 0x21e   :  { %v1357_v29 = vadd.f32 %v2401_v40, %v1281_v25 }
 0x21f   :  { %v1796_v30 = vpack.c.bf16 %v1420_v27, %v1419_v24  ;;  %v1358_v31 = vadd.f32 %v2403_v42, %v1282_v28  ;;  %v1132_v32 = vpop.f32.mrb[26].mxu1 }
 0x220   :  { %v1421_v33 = vmax.f32 %v1357_v29, 0.0  ;;  %v1283_v34 = vmul.f32 %v2397_v38, %v1132_v32  ;;  %v1134_v35 = vpop.f32.mrb[27].mxu1 }
 0x221   :  { %1664 = vst [vmem:[%s2634_s5 + $0x58] sm:$0xff] %v1796_v30  ;;  %v1422_v36 = vmax.f32 %v1358_v31, 0.0  ;;  %v1284_v37 = vmul.f32 %v2399_v39, %v1134_v35 }
 0x222   :  { %v1359_v41 = vadd.f32 %v2401_v40, %v1283_v34 }
 0x223   :  { %v1797_v43 = vpack.c.bf16 %v1422_v36, %v1421_v33  ;;  %v1360_v44 = vadd.f32 %v2403_v42, %v1284_v37  ;;  %v1138_v45 = vpop.f32.mrb[28].mxu1 }
 0x224   :  { %v1423_v46 = vmax.f32 %v1359_v41, 0.0  ;;  %v1285_v47 = vmul.f32 %v2397_v38, %v1138_v45  ;;  %v1140_v48 = vpop.f32.mrb[29].mxu1 }
 0x225   :  { %1665 = vst [vmem:[%s2634_s5 + $0x60] sm:$0xff] %v1797_v43  ;;  %v1424_v49 = vmax.f32 %v1360_v44, 0.0  ;;  %v1286_v50 = vmul.f32 %v2399_v39, %v1140_v48 }
 0x226   :  { %v1361_v51 = vadd.f32 %v2401_v40, %v1285_v47 }
 0x227   :  { %v1798_v52 = vpack.c.bf16 %v1424_v49, %v1423_v46  ;;  %v1362_v53 = vadd.f32 %v2403_v42, %v1286_v50  ;;  %v1144_v54 = vpop.f32.mrb[30].mxu1 }
 0x228   :  { %v1425_v55 = vmax.f32 %v1361_v51, 0.0  ;;  %v1287_v56 = vmul.f32 %v2397_v38, %v1144_v54  ;;  %v1146_v57 = vpop.f32.mrb[31].mxu1 }
 0x229   :  { %1666 = vst [vmem:[%s2634_s5 + $0x68] sm:$0xff] %v1798_v52  ;;  %v1426_v58 = vmax.f32 %v1362_v53, 0.0  ;;  %v1288_v59 = vmul.f32 %v2399_v39, %v1146_v57 }
 0x22a   :  { %v1363_v60 = vadd.f32 %v2401_v40, %v1287_v56 }
 0x22b   :  { %v1799_v61 = vpack.c.bf16 %v1426_v58, %v1425_v55  ;;  %v1364_v62 = vadd.f32 %v2403_v42, %v1288_v59  ;;  %v1150_v63 = vpop.f32.mrb[32].mxu1 }
 0x22c   :  { %v1427_v0 = vmax.f32 %v1363_v60, 0.0  ;;  %v1289_v1 = vmul.f32 %v2397_v38, %v1150_v63  ;;  %v1152_v2 = vpop.f32.mrb[33].mxu1 }
 0x22d   :  { %1667 = vst [vmem:[%s2634_s5 + $0x70] sm:$0xff] %v1799_v61  ;;  %v1428_v3 = vmax.f32 %v1364_v62, 0.0  ;;  %v1290_v4 = vmul.f32 %v2399_v39, %v1152_v2 }
 0x22e   :  { %v1365_v5 = vadd.f32 %v2401_v40, %v1289_v1 }
 0x22f   :  { %v1800_v6 = vpack.c.bf16 %v1428_v3, %v1427_v0  ;;  %v1366_v7 = vadd.f32 %v2403_v42, %v1290_v4  ;;  %v1156_v8 = vpop.f32.mrb[34].mxu1 }
 0x230   :  { %v1429_v9 = vmax.f32 %v1365_v5, 0.0  ;;  %v1291_v10 = vmul.f32 %v2397_v38, %v1156_v8  ;;  %v1158_v11 = vpop.f32.mrb[35].mxu1 }
 0x231   :  { %1668 = vst [vmem:[%s2634_s5 + $0x78] sm:$0xff] %v1800_v6  ;;  %v1430_v12 = vmax.f32 %v1366_v7, 0.0  ;;  %v1292_v13 = vmul.f32 %v2399_v39, %v1158_v11 }
 0x232   :  { %v1367_v14 = vadd.f32 %v2401_v40, %v1291_v10 }
 0x233   :  { %v1801_v15 = vpack.c.bf16 %v1430_v12, %v1429_v9  ;;  %v1368_v16 = vadd.f32 %v2403_v42, %v1292_v13  ;;  %v1162_v17 = vpop.f32.mrb[36].mxu1 }
 0x234   :  { %v1431_v18 = vmax.f32 %v1367_v14, 0.0  ;;  %v1293_v19 = vmul.f32 %v2397_v38, %v1162_v17  ;;  %v1164_v20 = vpop.f32.mrb[37].mxu1 }
 0x235   :  { %1669 = vst [vmem:[%s2634_s5 + $0x80] sm:$0xff] %v1801_v15  ;;  %v1432_v21 = vmax.f32 %v1368_v16, 0.0  ;;  %v1294_v22 = vmul.f32 %v2399_v39, %v1164_v20 }
 0x236   :  { %v1369_v23 = vadd.f32 %v2401_v40, %v1293_v19 }
 0x237   :  { %v1802_v24 = vpack.c.bf16 %v1432_v21, %v1431_v18  ;;  %v1370_v25 = vadd.f32 %v2403_v42, %v1294_v22  ;;  %v1168_v26 = vpop.f32.mrb[38].mxu1 }
 0x238   :  { %v1433_v27 = vmax.f32 %v1369_v23, 0.0  ;;  %v1295_v28 = vmul.f32 %v2397_v38, %v1168_v26  ;;  %v1170_v29 = vpop.f32.mrb[39].mxu1 }
 0x239   :  { %1670 = vst [vmem:[%s2634_s5 + $0x88] sm:$0xff] %v1802_v24  ;;  %v1434_v30 = vmax.f32 %v1370_v25, 0.0  ;;  %v1296_v31 = vmul.f32 %v2399_v39, %v1170_v29 }
 0x23a   :  { %v1371_v32 = vadd.f32 %v2401_v40, %v1295_v28 }
 0x23b   :  { %v1803_v33 = vpack.c.bf16 %v1434_v30, %v1433_v27  ;;  %v1372_v34 = vadd.f32 %v2403_v42, %v1296_v31  ;;  %v1174_v35 = vpop.f32.mrb[40].mxu1 }
 0x23c   :  { %v1435_v36 = vmax.f32 %v1371_v32, 0.0  ;;  %v1297_v37 = vmul.f32 %v2397_v38, %v1174_v35  ;;  %v1176_v41 = vpop.f32.mrb[41].mxu1 }
 0x23d   :  { %1671 = vst [vmem:[%s2634_s5 + $0x90] sm:$0xff] %v1803_v33  ;;  %v1436_v43 = vmax.f32 %v1372_v34, 0.0  ;;  %v1298_v44 = vmul.f32 %v2399_v39, %v1176_v41 }
 0x23e   :  { %v1373_v45 = vadd.f32 %v2401_v40, %v1297_v37 }
 0x23f   :  { %v1804_v46 = vpack.c.bf16 %v1436_v43, %v1435_v36  ;;  %v1374_v47 = vadd.f32 %v2403_v42, %v1298_v44  ;;  %v1180_v48 = vpop.f32.mrb[42].mxu1 }
 0x240   :  { %v1437_v49 = vmax.f32 %v1373_v45, 0.0  ;;  %v1299_v50 = vmul.f32 %v2397_v38, %v1180_v48  ;;  %v1182_v51 = vpop.f32.mrb[43].mxu1 }
 0x241   :  { %1672 = vst [vmem:[%s2634_s5 + $0x98] sm:$0xff] %v1804_v46  ;;  %v1438_v52 = vmax.f32 %v1374_v47, 0.0  ;;  %v1300_v53 = vmul.f32 %v2399_v39, %v1182_v51 }
 0x242   :  { %v1375_v54 = vadd.f32 %v2401_v40, %v1299_v50 }
 0x243   :  { %v1805_v55 = vpack.c.bf16 %v1438_v52, %v1437_v49  ;;  %v1376_v56 = vadd.f32 %v2403_v42, %v1300_v53  ;;  %v1186_v57 = vpop.f32.mrb[44].mxu1 }
 0x244   :  { %v1439_v58 = vmax.f32 %v1375_v54, 0.0  ;;  %v1301_v59 = vmul.f32 %v2397_v38, %v1186_v57  ;;  %v1188_v60 = vpop.f32.mrb[45].mxu1 }
 0x245   :  { %1673 = vst [vmem:[%s2634_s5 + $0xa0] sm:$0xff] %v1805_v55  ;;  %v1440_v61 = vmax.f32 %v1376_v56, 0.0  ;;  %v1302_v62 = vmul.f32 %v2399_v39, %v1188_v60 }
 0x246   :  { %v1377_v63 = vadd.f32 %v2401_v40, %v1301_v59 }
 0x247   :  { %v1806_v0 = vpack.c.bf16 %v1440_v61, %v1439_v58  ;;  %v1378_v1 = vadd.f32 %v2403_v42, %v1302_v62  ;;  %v1192_v2 = vpop.f32.mrb[46].mxu1 }
 0x248   :  { %v1441_v3 = vmax.f32 %v1377_v63, 0.0  ;;  %v1303_v4 = vmul.f32 %v2397_v38, %v1192_v2  ;;  %v1194_v5 = vpop.f32.mrb[47].mxu1 }
 0x249   :  { %1674 = vst [vmem:[%s2634_s5 + $0xa8] sm:$0xff] %v1806_v0  ;;  %v1442_v6 = vmax.f32 %v1378_v1, 0.0  ;;  %v1304_v7 = vmul.f32 %v2399_v39, %v1194_v5 }
 0x24a   :  { %v1379_v8 = vadd.f32 %v2401_v40, %v1303_v4 }
 0x24b   :  { %v1807_v9 = vpack.c.bf16 %v1442_v6, %v1441_v3  ;;  %v1380_v10 = vadd.f32 %v2403_v42, %v1304_v7  ;;  %v1198_v11 = vpop.f32.mrb[48].mxu1 }
 0x24c   :  { %v1443_v12 = vmax.f32 %v1379_v8, 0.0  ;;  %v1305_v13 = vmul.f32 %v2397_v38, %v1198_v11  ;;  %v1200_v14 = vpop.f32.mrb[49].mxu1 }
 0x24d   :  { %1675 = vst [vmem:[%s2634_s5 + $0xb0] sm:$0xff] %v1807_v9  ;;  %v1444_v15 = vmax.f32 %v1380_v10, 0.0  ;;  %v1306_v16 = vmul.f32 %v2399_v39, %v1200_v14 }
 0x24e   :  { %v1381_v17 = vadd.f32 %v2401_v40, %v1305_v13 }
 0x24f   :  { %v1808_v18 = vpack.c.bf16 %v1444_v15, %v1443_v12  ;;  %v1382_v19 = vadd.f32 %v2403_v42, %v1306_v16  ;;  %v1204_v20 = vpop.f32.mrb[50].mxu1 }
 0x250   :  { %v1445_v21 = vmax.f32 %v1381_v17, 0.0  ;;  %v1307_v22 = vmul.f32 %v2397_v38, %v1204_v20  ;;  %v1206_v23 = vpop.f32.mrb[51].mxu1 }
 0x251   :  { %1676 = vst [vmem:[%s2634_s5 + $0xb8] sm:$0xff] %v1808_v18  ;;  %v1446_v24 = vmax.f32 %v1382_v19, 0.0  ;;  %v1308_v25 = vmul.f32 %v2399_v39, %v1206_v23 }
 0x252   :  { %v1383_v26 = vadd.f32 %v2401_v40, %v1307_v22 }
 0x253   :  { %v1809_v27 = vpack.c.bf16 %v1446_v24, %v1445_v21  ;;  %v1384_v28 = vadd.f32 %v2403_v42, %v1308_v25  ;;  %v1210_v29 = vpop.f32.mrb[52].mxu1 }
 0x254   :  { %v1447_v30 = vmax.f32 %v1383_v26, 0.0  ;;  %v1309_v31 = vmul.f32 %v2397_v38, %v1210_v29  ;;  %v1212_v32 = vpop.f32.mrb[53].mxu1 }
 0x255   :  { %1677 = vst [vmem:[%s2634_s5 + $0xc0] sm:$0xff] %v1809_v27  ;;  %v1448_v33 = vmax.f32 %v1384_v28, 0.0  ;;  %v1310_v34 = vmul.f32 %v2399_v39, %v1212_v32 }
 0x256   :  { %v1385_v35 = vadd.f32 %v2401_v40, %v1309_v31 }
 0x257   :  { %v1810_v36 = vpack.c.bf16 %v1448_v33, %v1447_v30  ;;  %v1386_v37 = vadd.f32 %v2403_v42, %v1310_v34  ;;  %v1216_v41 = vpop.f32.mrb[54].mxu1 }
 0x258   :  { %v1449_v43 = vmax.f32 %v1385_v35, 0.0  ;;  %v1311_v44 = vmul.f32 %v2397_v38, %v1216_v41  ;;  %v1218_v45 = vpop.f32.mrb[55].mxu1 }
 0x259   :  { %1678 = vst [vmem:[%s2634_s5 + $0xc8] sm:$0xff] %v1810_v36  ;;  %v1450_v46 = vmax.f32 %v1386_v37, 0.0  ;;  %v1312_v47 = vmul.f32 %v2399_v39, %v1218_v45 }
 0x25a   :  { %v1387_v48 = vadd.f32 %v2401_v40, %v1311_v44 }
 0x25b   :  { %v1811_v49 = vpack.c.bf16 %v1450_v46, %v1449_v43  ;;  %v1388_v50 = vadd.f32 %v2403_v42, %v1312_v47  ;;  %v1222_v51 = vpop.f32.mrb[56].mxu1 }
 0x25c   :  { %v1451_v52 = vmax.f32 %v1387_v48, 0.0  ;;  %v1313_v53 = vmul.f32 %v2397_v38, %v1222_v51  ;;  %v1224_v54 = vpop.f32.mrb[57].mxu1 }
 0x25d   :  { %1679 = vst [vmem:[%s2634_s5 + $0xd0] sm:$0xff] %v1811_v49  ;;  %v1452_v55 = vmax.f32 %v1388_v50, 0.0  ;;  %v1314_v56 = vmul.f32 %v2399_v39, %v1224_v54 }
 0x25e   :  { %v1389_v57 = vadd.f32 %v2401_v40, %v1313_v53 }
 0x25f   :  { %v1812_v58 = vpack.c.bf16 %v1452_v55, %v1451_v52  ;;  %v1390_v59 = vadd.f32 %v2403_v42, %v1314_v56  ;;  %v1228_v60 = vpop.f32.mrb[58].mxu1 }
 0x260   :  { %v1453_v61 = vmax.f32 %v1389_v57, 0.0  ;;  %v1315_v62 = vmul.f32 %v2397_v38, %v1228_v60  ;;  %v1230_v63 = vpop.f32.mrb[59].mxu1 }
 0x261   :  { %1680 = vst [vmem:[%s2634_s5 + $0xd8] sm:$0xff] %v1812_v58  ;;  %v1454_v0 = vmax.f32 %v1390_v59, 0.0  ;;  %v1316_v1 = vmul.f32 %v2399_v39, %v1230_v63 }
 0x262   :  { %v1391_v2 = vadd.f32 %v2401_v40, %v1315_v62 }
 0x263   :  { %v1813_v3 = vpack.c.bf16 %v1454_v0, %v1453_v61  ;;  %v1392_v4 = vadd.f32 %v2403_v42, %v1316_v1  ;;  %v1234_v5 = vpop.f32.mrb[60].mxu1 }
 0x264   :  { %v1455_v6 = vmax.f32 %v1391_v2, 0.0  ;;  %v1317_v7 = vmul.f32 %v2397_v38, %v1234_v5  ;;  %v1236_v8 = vpop.f32.mrb[61].mxu1 }
 0x265   :  { %1681 = vst [vmem:[%s2634_s5 + $0xe0] sm:$0xff] %v1813_v3  ;;  %v1456_v9 = vmax.f32 %v1392_v4, 0.0  ;;  %v1318_v10 = vmul.f32 %v2399_v39, %v1236_v8 }
 0x266   :  { %v1393_v11 = vadd.f32 %v2401_v40, %v1317_v7 }
 0x267   :  { %v1814_v12 = vpack.c.bf16 %v1456_v9, %v1455_v6  ;;  %v1394_v13 = vadd.f32 %v2403_v42, %v1318_v10  ;;  %v1240_v14 = vpop.f32.mrb[62].mxu1 }
 0x268   :  { %v1457_v15 = vmax.f32 %v1393_v11, 0.0  ;;  %v1319_v16 = vmul.f32 %v2397_v38, %v1240_v14  ;;  %v1242_v17 = vpop.f32.mrb[63].mxu1 }
 0x269   :  { %1682 = vst [vmem:[%s2634_s5 + $0xe8] sm:$0xff] %v1814_v12  ;;  %v1458_v18 = vmax.f32 %v1394_v13, 0.0  ;;  %v1320_v19 = vmul.f32 %v2399_v39, %v1242_v17 }
 0x26a   :  { %v1395_v20 = vadd.f32 %v2401_v40, %v1319_v16 }
 0x26b   :  { %v1815_v21 = vpack.c.bf16 %v1458_v18, %v1457_v15  ;;  %v1396_v22 = vadd.f32 %v2403_v42, %v1320_v19 }
 0x26c   :  { %v1459_v23 = vmax.f32 %v1395_v20, 0.0 }
 0x26d   :  { %1683 = vst [vmem:[%s2634_s5 + $0xf0] sm:$0xff] %v1815_v21  ;;  %v1460_v24 = vmax.f32 %v1396_v22, 0.0 }
 0x26f   :  { %v1816_v38 = vpack.c.bf16 %v1460_v24, %v1459_v23 }
 0x271   :  { %1684 = vst [vmem:[%s2634_s5 + $0xf8] sm:$0xff] %v1816_v38 }

</bundles_post_ra>
